<compile_context>
chip_gen: v6e
topology: v6e:2x2x1
jax: 0.10.0
libtpu: 0.0.40
codegen_flags: <defaults>
</compile_context>

<pallas_src>
import functools
import math

import numpy as np
import jax
import jax.numpy as jnp
from jax import lax
from jax.experimental import pallas as pl
from jax.experimental.pallas import tpu as pltpu


# ----------------------------------------------------------------------------
# Parameter / kernel-basis construction (plain numpy / JAX glue, data-independent)
# ----------------------------------------------------------------------------
def _rho1_rot_mat(theta):
    c, s = math.cos(theta), math.sin(theta)
    return np.array([[c, -s], [s, c]], dtype=np.float64)


def _reg_rot_mat(theta, k):
    # Faithful replication of EquiCtsConvBase.RegRotMat (incl. the hardcoded mod-8).
    slice_angle = 2.0 * math.pi / k
    index_shift = theta / slice_angle
    i = int(np.floor(index_shift))
    first_col = np.zeros(k, dtype=np.float64)
    offset = (theta - slice_angle * i) / slice_angle
    w_i, w_ip = 1.0 - offset, offset
    first_col[np.mod(i, 8)] = w_i
    first_col[np.mod(i + 1, 8)] = w_ip
    m = np.stack([np.roll(first_col, s) for s in range(k)], axis=-1)
    return m


def _basis_element_column(T, i, j, k, d):
    # C: [T, k, d]; C[0, i, j] = 1; C[t] = Reg(theta_t) @ C[0] @ Rho1(-theta_t)
    C = np.zeros((T, k, d), dtype=np.float64)
    C[0, i, j] = 1.0
    for ind in range(1, T):
        th = ind * 2.0 * math.pi / T
        C[ind] = _reg_rot_mat(th, k) @ C[0] @ _rho1_rot_mat(-th)
    return C


def _generate_kernel_basis(num_radii, num_theta, k, d, rho1_to_reg):
    # KB_outer: [num_radii, k, d, R, T, k, d]; K_bullseye: [R, T, k, d]
    assert k == 8, "RegRotMat hardcodes mod-8; basis only valid for k == 8"
    R = num_radii + 1
    KB_outer = np.zeros((num_radii, k, d, R, num_theta, k, d), dtype=np.float64)
    for i in range(k):
        for j in range(d):
            col = _basis_element_column(num_theta, i, j, k, d)
            for r1 in range(num_radii):
                KB_outer[r1, i, j, r1 + 1] = col
    K_bullseye = np.zeros((R, num_theta, k, d), dtype=np.float64)
    K_bullseye[0] = rho1_to_reg  # broadcast over theta
    return KB_outer, K_bullseye


# ----------------------------------------------------------------------------
# Pallas kernel
# ----------------------------------------------------------------------------
def _rel_equi_conv_kernel(iy_ref, fpos_ref, cpos_ref, mask_ref, ffeat_ref,
                          cfeat_ref, kmat_ref, out_ref, acc_ref, *,
                          num_radii, num_theta, inv_radius, operand_dtype):
    Rr = num_radii + 1          # radial bins (grid_sample W)
    Hp = num_theta + 2          # circularly padded theta bins (grid_sample H)
    G = Hp * Rr
    nj = pl.program_id(2)

    @pl.when(nj == 0)
    def _():
        acc_ref[...] = jnp.zeros_like(acc_ref)

    TM = acc_ref.shape[0]
    CID1 = acc_ref.shape[1]     # CID + 1 (last channel is all-ones -> Wsum)
    TN = iy_ref.shape[2]

    iy = iy_ref[0]                                # [TM, TN] angular sample coord (from wrapper)
    fx = fpos_ref[0, 0:1, :]                      # [1, TN]
    fy = fpos_ref[0, 1:2, :]                      # [1, TN]
    cx = cpos_ref[0, :, 0:1]                      # [TM, 1]
    cy = cpos_ref[0, :, 1:2]                      # [TM, 1]

    # Relative positions, r^2, r and attention recomputed in-kernel (no r/r2 HBM streams).
    relx = (fx - cx) * inv_radius                 # [TM, TN]
    rely = (fy - cy) * inv_radius
    r2 = relx * relx + rely * rely
    r = jnp.sqrt(r2 + 1e-9)                       # PolarCoords epsilon (matches reference)

    mask = mask_ref[0]                            # [1, TN]
    t = 1.0 - r2
    att = jnp.maximum(t * t * t, 0.0) * mask      # relu((1-|rel|^2)^3) * field_mask  [TM, TN]

    # grid_sample (bilinear, zeros padding, align_corners=False) radial coordinate:
    #   gx = 2*r - 1 -> ix = r*Rr - 0.5   (iy streamed precomputed from the wrapper)
    ix = r * Rr - 0.5
    ix0f = jnp.floor(ix)
    iy0f = jnp.floor(iy)
    wx1 = ix - ix0f
    wx0 = 1.0 - wx1
    wy1 = iy - iy0f
    wy0 = 1.0 - wy1

    # iy0 / iy0+1 are always in range (theta axis circularly padded, iy in [0.5, Hp-1.5]);
    # only the radial index needs zeros-padding checks.  Attention and mask are folded
    # into the corner weights here (so the big one-hot already carries them).
    in_lo = ix0f >= 0.0
    in_hi = ix0f <= float(Rr - 2)                 # ix0 + 1 <= Rr - 1
    a_wx0 = att * wx0
    a_wx1 = att * wx1
    w00 = jnp.where(in_lo, a_wx0 * wy0, 0.0)[:, None, :]   # [TM, 1, TN]
    w01 = jnp.where(in_hi, a_wx1 * wy0, 0.0)[:, None, :]
    w10 = jnp.where(in_lo, a_wx0 * wy1, 0.0)[:, None, :]
    w11 = jnp.where(in_hi, a_wx1 * wy1, 0.0)[:, None, :]

    # Fused one-hot build with G in the SUBLANE dim: aw[m, g, n]   (TN stays in lanes).
    flat00 = (iy0f.astype(jnp.int32) * Rr + ix0f.astype(jnp.int32))[:, None, :]   # [TM,1,TN]
    g_iota = lax.broadcasted_iota(jnp.int32, (1, G, 1), 1)
    diff = g_iota - flat00                        # [TM, G, TN]
    # Corner offsets 0 / 1 / Rr / Rr+1 are distinct (Rr >= 2), so each g gets one value.
    aw = jnp.where(diff == 0, w00,
         jnp.where(diff == 1, w01,
         jnp.where(diff == Rr, w10,
         jnp.where(diff == Rr + 1, w11, 0.0)))).astype(operand_dtype)              # [TM, G, TN]

    # Field features (plus the trailing all-ones channel), broadcast over the m tile.
    s = jnp.broadcast_to(ffeat_ref[0][None, :, :], (TM, CID1, TN)).astype(operand_dtype)

    # Batched MXU contraction over the big N axis:
    #   acc[m, c, g] += sum_n s[m, c, n] * aw[m, g, n]
    acc_ref[...] += lax.dot_general(
        s, aw, dimension_numbers=(((2,), (2,)), ((0,), (0,))),
        preferred_element_type=jnp.float32)       # [TM, CID1, G]

    # Epilogue once per (b, m-tile): apply the center-feature correction and contract
    # with the kernel table, emitted transposed ([OY, TM]) for a lane-dense store.
    @pl.when(nj == pl.num_programs(2) - 1)
    def _():
        OY = out_ref.shape[1]
        CID = kmat_ref.shape[0]
        acc = acc_ref[...]                        # [TM, CID1, G]
        wsum = acc[:, CID1 - 1, :]                # [TM, G]  = sum_n att*w  (ones channel)
        cfeat = cfeat_ref[0]                      # [TM, CID]
        out_t = jnp.zeros((OY, TM), jnp.float32)
        # Static unroll over CID (= c_in*2, small); runs once per (b, m-tile).
        # TODO(synk): a single dot_general contracting (CID, G) jointly would shave the
        # epilogue further but multi-contracting-dim dots are not reliably lowered.
        for c in range(CID):
            corrected = acc[:, c, :] - cfeat[:, c:c + 1] * wsum   # [TM, G]
            out_t = out_t + lax.dot_general(
                kmat_ref[c],                      # [OY, G]
                corrected,                        # [TM, G]
                dimension_numbers=(((1,), (1,)), ((), ())),
                preferred_element_type=jnp.float32)               # [OY, TM]
        out_ref[0] = out_t


# ----------------------------------------------------------------------------
# Wrapper (glue: atan2 -> iy, kernel table packing, tiling, layout plumbing)
# ----------------------------------------------------------------------------
def rel_equi_cts_conv_rho1_to_reg(field, center, field_feat, field_mask, ctr_feat, *,
                                  kernel, radius, num_radii, num_theta,
                                  operand_dtype=jnp.float32):
    B, N, _ = field.shape
    M = center.shape[1]
    c_out, c_in, R, T, kk, d = kernel.shape
    assert R == num_radii + 1 and T == num_theta and d == 2
    assert num_radii >= 1, "corner-offset fusion requires at least 2 radial bins"
    Hp = T + 2
    G = Hp * R
    CID = c_in * d                                 # rho1 input channels, flattened (i, x)
    CID1 = CID + 1                                 # + all-ones channel (accumulates Wsum)
    OY = c_out * kk                                # regular output channels, flattened (o, y)
    inv_radius = 1.0 / float(radius)

    # theta (PolarCoords) needs atan2; keep it outside the kernel and stream the already
    # affine-mapped grid_sample coordinate iy instead (one [B, M, N] array total).
    # TODO(synk): atan2 has no Mosaic lowering used here; only this array is streamed.
    rel = (field[:, None, :, :] - center[:, :, None, :]) * inv_radius  # [B, M, N, 2]
    nonzero = ~((rel[..., 0] == 0.0) & (rel[..., 1] == 0.0))
    theta = jnp.where(nonzero, jnp.arctan2(rel[..., 1], rel[..., 0]), 0.0)
    iy = ((theta * (1.0 / math.pi) * (T / (T + 2.0)) + 1.0) * (Hp * 0.5) - 0.5)
    iy = iy.astype(jnp.float32)                                        # [B, M, N]

    # Pack the theta-circularly-padded kernel table as [CID, OY, G]:
    #   kmat[(i,x), (o,y), (h,w)] = padded_kernel[o, i, y, x, radius=w, theta_pad=h]
    kp = jnp.transpose(kernel, (0, 1, 4, 5, 2, 3))                     # [o, i, y, x, R, T]
    kp = jnp.concatenate([kp[..., -1:], kp, kp[..., :1]], axis=-1)     # [o, i, y, x, R, T+2]
    kp = jnp.transpose(kp, (1, 3, 0, 2, 5, 4))                         # [i, x, o, y, T+2, R]
    kmat = kp.reshape(CID, OY, G).astype(jnp.float32)

    fpos = jnp.transpose(field, (0, 2, 1)).astype(jnp.float32)         # [B, 2, N]
    cpos = center.astype(jnp.float32)                                  # [B, M, 2]
    ffeat = jnp.transpose(field_feat.reshape(B, N, CID), (0, 2, 1)).astype(jnp.float32)
    ffeat_aug = jnp.concatenate([ffeat, jnp.ones((B, 1, N), jnp.float32)], axis=1)  # [B, CID+1, N]
    cfeat = ctr_feat.reshape(B, M, CID).astype(jnp.float32)            # [B, M, CID]
    mask = field_mask.reshape(B, 1, N).astype(jnp.float32)             # [B, 1, N]

    # Tile sizes.  The output lane dim is the M tile, so TM must be M (full) or a
    # multiple of 128; TN may grow to 256 now that the one-hot is ~4x smaller.
    if M <= 128:
        TM = M
    elif M % 128 == 0:
        TM = 128
    else:
        TM = M
    if N <= 128:
        TN = N
    elif N % 256 == 0:
        TN = 256
    elif N % 128 == 0:
        TN = 128
    else:
        TN = N
    # TODO(synk): non-divisible large M/N would need padded tiles with masked columns.
    assert M % TM == 0 and N % TN == 0
    # TODO(synk): on v7x (2 TensorCores) with B == 1 and M <= 128 there is only one
    # parallel program; splitting the N reduction into per-core partial sums would fix it.

    kern = functools.partial(_rel_equi_conv_kernel,
                             num_radii=num_radii, num_theta=num_theta,
                             inv_radius=inv_radius, operand_dtype=operand_dtype)

    out_t = pl.pallas_call(
        kern,
        out_shape=jax.ShapeDtypeStruct((B, OY, M), jnp.float32),
        grid_spec=pltpu.PrefetchScalarGridSpec(
            num_scalar_prefetch=0,
            grid=(B, M // TM, N // TN),                    # N last => reduction axis
            in_specs=[
                pl.BlockSpec((1, TM, TN), lambda b, mi, nj: (b, mi, nj)),    # iy
                pl.BlockSpec((1, 2, TN), lambda b, mi, nj: (b, 0, nj)),      # field pos [2, N]
                pl.BlockSpec((1, TM, 2), lambda b, mi, nj: (b, mi, 0)),      # center pos [M, 2]
                pl.BlockSpec((1, 1, TN), lambda b, mi, nj: (b, 0, nj)),      # field mask
                pl.BlockSpec((1, CID1, TN), lambda b, mi, nj: (b, 0, nj)),   # field feats + ones
                pl.BlockSpec((1, TM, CID), lambda b, mi, nj: (b, mi, 0)),    # center feats
                pl.BlockSpec((CID, OY, G), lambda b, mi, nj: (0, 0, 0)),     # kernel table
            ],
            out_specs=pl.BlockSpec((1, OY, TM), lambda b, mi, nj: (b, 0, mi)),
            scratch_shapes=[pltpu.VMEM((TM, CID1, G), jnp.float32)],         # A/Wsum accumulator
        ),
        compiler_params=pltpu.CompilerParams(
            dimension_semantics=("parallel", "parallel", "arbitrary"),
            vmem_limit_bytes=48 * 1024 * 1024),
    )(iy, fpos, cpos, mask, ffeat_aug, cfeat, kmat)

    # [B, OY, M] -> [B, M, OY] -> [B, M, c_out, k]   ('bmoy')
    return jnp.transpose(out_t, (0, 2, 1)).reshape(B, M, c_out, kk)


# ----------------------------------------------------------------------------
# Main
# ----------------------------------------------------------------------------
if __name__ == "__main__":
    # Module hyper-parameters
    in_channels, out_channels = 3, 4
    num_radii, num_theta, k, d = 2, 8, 8, 2
    radius = 1.5
    # Data sizes
    B, M, N = 2, 16, 16

    key = jax.random.PRNGKey(0)
    k1, k2, k3, k4, k5, k6, k7 = jax.random.split(key, 7)

    # Deterministic parameter init (mirrors __init__ shapes / scaling)
    scale = 1.0 / math.sqrt(float(in_channels))
    outer_weights = (jax.random.uniform(k1, (in_channels, out_channels, num_radii, k, d),
                                        dtype=jnp.float32) - 0.5) * scale
    bullseye_weights = (jax.random.uniform(k2, (in_channels, out_channels),
                                           dtype=jnp.float32) - 0.5) * scale

    # TODO(synk): EquiLinearRho1ToReg class was not provided; Rho1ToReg buffer is
    # synthesized as the standard rho1 -> C_k regular-rep embedding (deterministic).
    angles = 2.0 * np.pi * np.arange(k) / k
    rho1_to_reg = np.stack([np.cos(angles), np.sin(angles)], axis=-1)   # [k, 2]

    KB_outer, K_bullseye = _generate_kernel_basis(num_radii, num_theta, k, d, rho1_to_reg)

    # computeKernel(): [c_out, c_in, num_radii+1, num_theta, k, 2]
    kernel = (jnp.einsum('pabrtij,xypab->yxrtij',
                         jnp.asarray(KB_outer, jnp.float32), outer_weights,
                         precision=lax.Precision.HIGHEST)
              + jnp.einsum('rtij,xy->yxrtij',
                           jnp.asarray(K_bullseye, jnp.float32), bullseye_weights,
                           precision=lax.Precision.HIGHEST))

    # Inputs
    field = jax.random.uniform(k3, (B, N, 2), dtype=jnp.float32) * 2.0 - 1.0
    center = jax.random.uniform(k4, (B, M, 2), dtype=jnp.float32) * 2.0 - 1.0
    field_feat = jax.random.normal(k5, (B, N, in_channels, d), dtype=jnp.float32)
    ctr_feat = jax.random.normal(k6, (B, M, in_channels, d), dtype=jnp.float32)
    field_mask = (jax.random.uniform(k7, (B, N, 1)) > 0.2).astype(jnp.float32)

    # operand_dtype=jnp.bfloat16 is a v6e/v7x option once tolerance is validated;
    # f32 kept here for fidelity to the torch reference.
    out = rel_equi_cts_conv_rho1_to_reg(field, center, field_feat, field_mask, ctr_feat,
                                        kernel=kernel, radius=radius,
                                        num_radii=num_radii, num_theta=num_theta)
    jax.block_until_ready(out)
    assert out.shape == (B, M, out_channels, k)
    print("KERNEL_OK")
</pallas_src>

<mosaic_0001>
module attributes {stable_mosaic.version = 11 : i64} {
  func.func @_rel_equi_conv_kernel(%arg0: i32, %arg1: i32, %arg2: i32, %arg3: memref<1x16x16xf32, #tpu.memory_space<vmem>>, %arg4: memref<1x2x16xf32, #tpu.memory_space<vmem>>, %arg5: memref<1x16x2xf32, #tpu.memory_space<vmem>>, %arg6: memref<1x1x16xf32, #tpu.memory_space<vmem>>, %arg7: memref<1x7x16xf32, #tpu.memory_space<vmem>>, %arg8: memref<1x16x6xf32, #tpu.memory_space<vmem>>, %arg9: memref<6x32x30xf32, #tpu.memory_space<vmem>>, %arg10: memref<1x32x16xf32, #tpu.memory_space<vmem>>, %arg11: memref<16x7x30xf32, #tpu.memory_space<vmem>>) attributes {dimension_semantics = [#tpu.dimension_semantics<parallel>, #tpu.dimension_semantics<parallel>, #tpu.dimension_semantics<arbitrary>], iteration_bounds = array<i64: 2, 1, 1>, scalar_prefetch = 0 : i64, scratch_operands = 1 : i64, tpu.core_type = #tpu.core_type<tc>, window_params = [{transform_indices = @transform_0, window_bounds = array<i64: 1, 16, 16>}, {transform_indices = @transform_1, window_bounds = array<i64: 1, 2, 16>}, {transform_indices = @transform_2, window_bounds = array<i64: 1, 16, 2>}, {transform_indices = @transform_3, window_bounds = array<i64: 1, 1, 16>}, {transform_indices = @transform_4, window_bounds = array<i64: 1, 7, 16>}, {transform_indices = @transform_5, window_bounds = array<i64: 1, 16, 6>}, {pipeline_mode = #tpu.pipeline_mode<synchronous>, transform_indices = @transform_6, window_bounds = array<i64: 6, 32, 30>}, {transform_indices = @transform_7, window_bounds = array<i64: 1, 32, 16>}]} {
    %c0_i32 = arith.constant 0 : i32
    %0 = arith.cmpi eq, %arg2, %c0_i32 : i32
    %1 = arith.extui %0 : i1 to i32
    %c0_i32_0 = arith.constant 0 : i32
    %2 = arith.cmpi ne, %1, %c0_i32_0 : i32
    scf.if %2 {
      %cst_46 = arith.constant 0.000000e+00 : f32
      %116 = vector.broadcast %cst_46 : f32 to vector<16x7x30xf32>
      %c0_47 = arith.constant 0 : index
      %c0_48 = arith.constant 0 : index
      %c0_49 = arith.constant 0 : index
      %117 = vector.load %arg11[%c0_47, %c0_48, %c0_49] : memref<16x7x30xf32, #tpu.memory_space<vmem>>, vector<16x7x30xf32>
      tpu.vector_store %arg11[%c0_47, %c0_48, %c0_49], %116 {strides = array<i32>} : memref<16x7x30xf32, #tpu.memory_space<vmem>>, vector<16x7x30xf32>,
    } else {
    }
    %c0 = arith.constant 0 : index
    %c0_1 = arith.constant 0 : index
    %c0_2 = arith.constant 0 : index
    %3 = vector.load %arg3[%c0, %c0_1, %c0_2] : memref<1x16x16xf32, #tpu.memory_space<vmem>>, vector<1x16x16xf32>
    %4 = vector.shape_cast %3 : vector<1x16x16xf32> to vector<16x16xf32>
    %c0_3 = arith.constant 0 : index
    %c0_4 = arith.constant 0 : index
    %c0_5 = arith.constant 0 : index
    %5 = vector.load %arg4[%c0_3, %c0_4, %c0_5] : memref<1x2x16xf32, #tpu.memory_space<vmem>>, vector<1x1x16xf32>
    %6 = vector.shape_cast %5 : vector<1x1x16xf32> to vector<1x16xf32>
    %c0_6 = arith.constant 0 : index
    %c1 = arith.constant 1 : index
    %c0_7 = arith.constant 0 : index
    %7 = vector.load %arg4[%c0_6, %c1, %c0_7] : memref<1x2x16xf32, #tpu.memory_space<vmem>>, vector<1x1x16xf32>
    %8 = vector.shape_cast %7 : vector<1x1x16xf32> to vector<1x16xf32>
    %c0_8 = arith.constant 0 : index
    %c0_9 = arith.constant 0 : index
    %c0_10 = arith.constant 0 : index
    %9 = vector.load %arg5[%c0_8, %c0_9, %c0_10] : memref<1x16x2xf32, #tpu.memory_space<vmem>>, vector<1x16x1xf32>
    %10 = vector.shape_cast %9 : vector<1x16x1xf32> to vector<16x1xf32>
    %c0_11 = arith.constant 0 : index
    %c0_12 = arith.constant 0 : index
    %c1_13 = arith.constant 1 : index
    %11 = vector.load %arg5[%c0_11, %c0_12, %c1_13] : memref<1x16x2xf32, #tpu.memory_space<vmem>>, vector<1x16x1xf32>
    %12 = vector.shape_cast %11 : vector<1x16x1xf32> to vector<16x1xf32>
    %13 = vector.broadcast %6 : vector<1x16xf32> to vector<16x16xf32>
    %14 = vector.broadcast %10 : vector<16x1xf32> to vector<16x16xf32>
    %15 = arith.subf %13, %14 : vector<16x16xf32>
    %cst = arith.constant 0.666666686 : f32
    %16 = vector.broadcast %cst : f32 to vector<16x16xf32>
    %17 = arith.mulf %15, %16 : vector<16x16xf32>
    %18 = vector.broadcast %8 : vector<1x16xf32> to vector<16x16xf32>
    %19 = vector.broadcast %12 : vector<16x1xf32> to vector<16x16xf32>
    %20 = arith.subf %18, %19 : vector<16x16xf32>
    %cst_14 = arith.constant 0.666666686 : f32
    %21 = vector.broadcast %cst_14 : f32 to vector<16x16xf32>
    %22 = arith.mulf %20, %21 : vector<16x16xf32>
    %23 = arith.mulf %17, %17 : vector<16x16xf32>
    %24 = arith.mulf %22, %22 : vector<16x16xf32>
    %25 = arith.addf %23, %24 : vector<16x16xf32>
    %cst_15 = arith.constant 9.99999971E-10 : f32
    %26 = vector.broadcast %cst_15 : f32 to vector<16x16xf32>
    %27 = arith.addf %25, %26 : vector<16x16xf32>
    %28 = math.sqrt %27 : vector<16x16xf32>
    %c0_16 = arith.constant 0 : index
    %c0_17 = arith.constant 0 : index
    %c0_18 = arith.constant 0 : index
    %29 = vector.load %arg6[%c0_16, %c0_17, %c0_18] : memref<1x1x16xf32, #tpu.memory_space<vmem>>, vector<1x1x16xf32>
    %30 = vector.shape_cast %29 : vector<1x1x16xf32> to vector<1x16xf32>
    %cst_19 = arith.constant 1.000000e+00 : f32
    %31 = vector.broadcast %cst_19 : f32 to vector<16x16xf32>
    %32 = arith.subf %31, %25 : vector<16x16xf32>
    %33 = arith.mulf %32, %32 : vector<16x16xf32>
    %34 = arith.mulf %33, %32 : vector<16x16xf32>
    %cst_20 = arith.constant 0.000000e+00 : f32
    %35 = vector.broadcast %cst_20 : f32 to vector<16x16xf32>
    %36 = arith.maximumf %34, %35 : vector<16x16xf32>
    %37 = vector.broadcast %30 : vector<1x16xf32> to vector<16x16xf32>
    %38 = arith.mulf %36, %37 : vector<16x16xf32>
    %cst_21 = arith.constant 3.000000e+00 : f32
    %39 = vector.broadcast %cst_21 : f32 to vector<16x16xf32>
    %40 = arith.mulf %28, %39 : vector<16x16xf32>
    %cst_22 = arith.constant 5.000000e-01 : f32
    %41 = vector.broadcast %cst_22 : f32 to vector<16x16xf32>
    %42 = arith.subf %40, %41 : vector<16x16xf32>
    %43 = math.floor %42 : vector<16x16xf32>
    %44 = math.floor %4 : vector<16x16xf32>
    %45 = arith.subf %42, %43 : vector<16x16xf32>
    %cst_23 = arith.constant 1.000000e+00 : f32
    %46 = vector.broadcast %cst_23 : f32 to vector<16x16xf32>
    %47 = arith.subf %46, %45 : vector<16x16xf32>
    %48 = arith.subf %4, %44 : vector<16x16xf32>
    %cst_24 = arith.constant 1.000000e+00 : f32
    %49 = vector.broadcast %cst_24 : f32 to vector<16x16xf32>
    %50 = arith.subf %49, %48 : vector<16x16xf32>
    %cst_25 = arith.constant 0.000000e+00 : f32
    %51 = vector.broadcast %cst_25 : f32 to vector<16x16xf32>
    %52 = arith.cmpf oge, %43, %51 : vector<16x16xf32>
    %cst_26 = arith.constant 1.000000e+00 : f32
    %53 = vector.broadcast %cst_26 : f32 to vector<16x16xf32>
    %54 = arith.cmpf ole, %43, %53 : vector<16x16xf32>
    %55 = arith.mulf %38, %47 : vector<16x16xf32>
    %56 = arith.mulf %38, %45 : vector<16x16xf32>
    %57 = arith.mulf %55, %50 : vector<16x16xf32>
    %cst_27 = arith.constant 0.000000e+00 : f32
    %58 = vector.broadcast %cst_27 : f32 to vector<16x16xf32>
    %59 = arith.select %52, %57, %58 : vector<16x16xi1>, vector<16x16xf32>
    %60 = vector.shape_cast %59 : vector<16x16xf32> to vector<16x1x16xf32>
    %61 = arith.mulf %56, %50 : vector<16x16xf32>
    %cst_28 = arith.constant 0.000000e+00 : f32
    %62 = vector.broadcast %cst_28 : f32 to vector<16x16xf32>
    %63 = arith.select %54, %61, %62 : vector<16x16xi1>, vector<16x16xf32>
    %64 = vector.shape_cast %63 : vector<16x16xf32> to vector<16x1x16xf32>
    %65 = arith.mulf %55, %48 : vector<16x16xf32>
    %cst_29 = arith.constant 0.000000e+00 : f32
    %66 = vector.broadcast %cst_29 : f32 to vector<16x16xf32>
    %67 = arith.select %52, %65, %66 : vector<16x16xi1>, vector<16x16xf32>
    %68 = vector.shape_cast %67 : vector<16x16xf32> to vector<16x1x16xf32>
    %69 = arith.mulf %56, %48 : vector<16x16xf32>
    %cst_30 = arith.constant 0.000000e+00 : f32
    %70 = vector.broadcast %cst_30 : f32 to vector<16x16xf32>
    %71 = arith.select %54, %69, %70 : vector<16x16xi1>, vector<16x16xf32>
    %72 = vector.shape_cast %71 : vector<16x16xf32> to vector<16x1x16xf32>
    %73 = arith.fptosi %44 : vector<16x16xf32> to vector<16x16xi32>
    %c3_i32 = arith.constant 3 : i32
    %74 = vector.broadcast %c3_i32 : i32 to vector<16x16xi32>
    %75 = arith.muli %73, %74 : vector<16x16xi32>
    %76 = arith.fptosi %43 : vector<16x16xf32> to vector<16x16xi32>
    %77 = arith.addi %75, %76 : vector<16x16xi32>
    %78 = vector.shape_cast %77 : vector<16x16xi32> to vector<16x1x16xi32>
    %79 = tpu.iota {dimensions = array<i32: 1>} : vector<1x30x1xi32>
    %80 = vector.broadcast %79 : vector<1x30x1xi32> to vector<16x30x16xi32>
    %81 = vector.broadcast %78 : vector<16x1x16xi32> to vector<16x30x16xi32>
    %82 = arith.subi %80, %81 : vector<16x30x16xi32>
    %c0_i32_31 = arith.constant 0 : i32
    %83 = vector.broadcast %c0_i32_31 : i32 to vector<16x30x16xi32>
    %84 = arith.cmpi eq, %82, %83 : vector<16x30x16xi32>
    %c1_i32 = arith.constant 1 : i32
    %85 = vector.broadcast %c1_i32 : i32 to vector<16x30x16xi32>
    %86 = arith.cmpi eq, %82, %85 : vector<16x30x16xi32>
    %c3_i32_32 = arith.constant 3 : i32
    %87 = vector.broadcast %c3_i32_32 : i32 to vector<16x30x16xi32>
    %88 = arith.cmpi eq, %82, %87 : vector<16x30x16xi32>
    %c4_i32 = arith.constant 4 : i32
    %89 = vector.broadcast %c4_i32 : i32 to vector<16x30x16xi32>
    %90 = arith.cmpi eq, %82, %89 : vector<16x30x16xi32>
    %cst_33 = arith.constant 0.000000e+00 : f32
    %91 = vector.shape_cast %72 : vector<16x1x16xf32> to vector<16x1x16xf32>
    %92 = vector.broadcast %91 : vector<16x1x16xf32> to vector<16x30x16xf32>
    %93 = vector.broadcast %cst_33 : f32 to vector<16x30x16xf32>
    %94 = arith.select %90, %92, %93 : vector<16x30x16xi1>, vector<16x30x16xf32>
    %95 = vector.shape_cast %68 : vector<16x1x16xf32> to vector<16x1x16xf32>
    %96 = vector.broadcast %95 : vector<16x1x16xf32> to vector<16x30x16xf32>
    %97 = arith.select %88, %96, %94 : vector<16x30x16xi1>, vector<16x30x16xf32>
    %98 = vector.shape_cast %64 : vector<16x1x16xf32> to vector<16x1x16xf32>
    %99 = vector.broadcast %98 : vector<16x1x16xf32> to vector<16x30x16xf32>
    %100 = arith.select %86, %99, %97 : vector<16x30x16xi1>, vector<16x30x16xf32>
    %101 = vector.shape_cast %60 : vector<16x1x16xf32> to vector<16x1x16xf32>
    %102 = vector.broadcast %101 : vector<16x1x16xf32> to vector<16x30x16xf32>
    %103 = arith.select %84, %102, %100 : vector<16x30x16xi1>, vector<16x30x16xf32>
    %c0_34 = arith.constant 0 : index
    %c0_35 = arith.constant 0 : index
    %c0_36 = arith.constant 0 : index
    %104 = vector.load %arg7[%c0_34, %c0_35, %c0_36] : memref<1x7x16xf32, #tpu.memory_space<vmem>>, vector<1x7x16xf32>
    %105 = vector.shape_cast %104 : vector<1x7x16xf32> to vector<7x16xf32>
    %106 = vector.shape_cast %105 : vector<7x16xf32> to vector<1x7x16xf32>
    %107 = vector.shape_cast %106 : vector<1x7x16xf32> to vector<1x7x16xf32>
    %108 = vector.broadcast %107 : vector<1x7x16xf32> to vector<16x7x16xf32>
    %c0_37 = arith.constant 0 : index
    %c0_38 = arith.constant 0 : index
    %c0_39 = arith.constant 0 : index
    %109 = vector.load %arg11[%c0_37, %c0_38, %c0_39] : memref<16x7x30xf32, #tpu.memory_space<vmem>>, vector<16x7x30xf32>
    %cst_40 = arith.constant dense<0.000000e+00> : vector<16x7x30xf32>
    %110 = tpu.matmul %108, %103, %cst_40 {dimension_numbers = #tpu.dot_dimension_numbers<[2], [2], [1], [1], [0, 0, 0, 1, 1, 1], [0], [0]>} : vector<16x7x16xf32>, vector<16x30x16xf32>, vector<16x7x30xf32> -> vector<16x7x30xf32>
    %111 = arith.addf %109, %110 : vector<16x7x30xf32>
    %c0_41 = arith.constant 0 : index
    %c0_42 = arith.constant 0 : index
    %c0_43 = arith.constant 0 : index
    %112 = vector.load %arg11[%c0_41, %c0_42, %c0_43] : memref<16x7x30xf32, #tpu.memory_space<vmem>>, vector<16x7x30xf32>
    tpu.vector_store %arg11[%c0_41, %c0_42, %c0_43], %111 {strides = array<i32>} : memref<16x7x30xf32, #tpu.memory_space<vmem>>, vector<16x7x30xf32>,
    %c0_i32_44 = arith.constant 0 : i32
    %113 = arith.cmpi eq, %arg2, %c0_i32_44 : i32
    %114 = arith.extui %113 : i1 to i32
    %c0_i32_45 = arith.constant 0 : i32
    %115 = arith.cmpi ne, %114, %c0_i32_45 : i32
    scf.if %115 {
      %c0_46 = arith.constant 0 : index
      %c0_47 = arith.constant 0 : index
      %c0_48 = arith.constant 0 : index
      %116 = vector.load %arg11[%c0_46, %c0_47, %c0_48] : memref<16x7x30xf32, #tpu.memory_space<vmem>>, vector<16x7x30xf32>
      %117 = vector.extract_strided_slice %116 {offsets = [0, 6, 0], sizes = [16, 1, 30], strides = [1, 1, 1]} : vector<16x7x30xf32> to vector<16x1x30xf32>
      %118 = vector.shape_cast %117 : vector<16x1x30xf32> to vector<16x30xf32>
      %c0_49 = arith.constant 0 : index
      %c0_50 = arith.constant 0 : index
      %c0_51 = arith.constant 0 : index
      %119 = vector.load %arg8[%c0_49, %c0_50, %c0_51] : memref<1x16x6xf32, #tpu.memory_space<vmem>>, vector<1x16x6xf32>
      %120 = vector.shape_cast %119 : vector<1x16x6xf32> to vector<16x6xf32>
      %cst_52 = arith.constant 0.000000e+00 : f32
      %121 = vector.broadcast %cst_52 : f32 to vector<32x16xf32>
      %122 = vector.extract_strided_slice %116 {offsets = [0, 0, 0], sizes = [16, 1, 30], strides = [1, 1, 1]} : vector<16x7x30xf32> to vector<16x1x30xf32>
      %123 = vector.shape_cast %122 : vector<16x1x30xf32> to vector<16x30xf32>
      %124 = vector.extract_strided_slice %120 {offsets = [0, 0], sizes = [16, 1], strides = [1, 1]} : vector<16x6xf32> to vector<16x1xf32>
      %125 = vector.broadcast %124 : vector<16x1xf32> to vector<16x30xf32>
      %126 = arith.mulf %125, %118 : vector<16x30xf32>
      %127 = arith.subf %123, %126 : vector<16x30xf32>
      %c0_53 = arith.constant 0 : index
      %c0_54 = arith.constant 0 : index
      %c0_55 = arith.constant 0 : index
      %128 = vector.load %arg9[%c0_53, %c0_54, %c0_55] : memref<6x32x30xf32, #tpu.memory_space<vmem>>, vector<1x32x30xf32>
      %129 = vector.shape_cast %128 : vector<1x32x30xf32> to vector<32x30xf32>
      %cst_56 = arith.constant dense<0.000000e+00> : vector<32x16xf32>
      %130 = tpu.matmul %129, %127, %cst_56 {dimension_numbers = #tpu.dot_dimension_numbers<[1], [1], [0], [0], [0, 0, 1, 0], [], []>} : vector<32x30xf32>, vector<16x30xf32>, vector<32x16xf32> -> vector<32x16xf32>
      %131 = arith.addf %121, %130 : vector<32x16xf32>
      %132 = vector.extract_strided_slice %116 {offsets = [0, 1, 0], sizes = [16, 1, 30], strides = [1, 1, 1]} : vector<16x7x30xf32> to vector<16x1x30xf32>
      %133 = vector.shape_cast %132 : vector<16x1x30xf32> to vector<16x30xf32>
      %134 = vector.extract_strided_slice %120 {offsets = [0, 1], sizes = [16, 1], strides = [1, 1]} : vector<16x6xf32> to vector<16x1xf32>
      %135 = vector.broadcast %134 : vector<16x1xf32> to vector<16x30xf32>
      %136 = arith.mulf %135, %118 : vector<16x30xf32>
      %137 = arith.subf %133, %136 : vector<16x30xf32>
      %c1_57 = arith.constant 1 : index
      %c0_58 = arith.constant 0 : index
      %c0_59 = arith.constant 0 : index
      %138 = vector.load %arg9[%c1_57, %c0_58, %c0_59] : memref<6x32x30xf32, #tpu.memory_space<vmem>>, vector<1x32x30xf32>
      %139 = vector.shape_cast %138 : vector<1x32x30xf32> to vector<32x30xf32>
      %cst_60 = arith.constant dense<0.000000e+00> : vector<32x16xf32>
      %140 = tpu.matmul %139, %137, %cst_60 {dimension_numbers = #tpu.dot_dimension_numbers<[1], [1], [0], [0], [0, 0, 1, 0], [], []>} : vector<32x30xf32>, vector<16x30xf32>, vector<32x16xf32> -> vector<32x16xf32>
      %141 = arith.addf %131, %140 : vector<32x16xf32>
      %142 = vector.extract_strided_slice %116 {offsets = [0, 2, 0], sizes = [16, 1, 30], strides = [1, 1, 1]} : vector<16x7x30xf32> to vector<16x1x30xf32>
      %143 = vector.shape_cast %142 : vector<16x1x30xf32> to vector<16x30xf32>
      %144 = vector.extract_strided_slice %120 {offsets = [0, 2], sizes = [16, 1], strides = [1, 1]} : vector<16x6xf32> to vector<16x1xf32>
      %145 = vector.broadcast %144 : vector<16x1xf32> to vector<16x30xf32>
      %146 = arith.mulf %145, %118 : vector<16x30xf32>
      %147 = arith.subf %143, %146 : vector<16x30xf32>
      %c2 = arith.constant 2 : index
      %c0_61 = arith.constant 0 : index
      %c0_62 = arith.constant 0 : index
      %148 = vector.load %arg9[%c2, %c0_61, %c0_62] : memref<6x32x30xf32, #tpu.memory_space<vmem>>, vector<1x32x30xf32>
      %149 = vector.shape_cast %148 : vector<1x32x30xf32> to vector<32x30xf32>
      %cst_63 = arith.constant dense<0.000000e+00> : vector<32x16xf32>
      %150 = tpu.matmul %149, %147, %cst_63 {dimension_numbers = #tpu.dot_dimension_numbers<[1], [1], [0], [0], [0, 0, 1, 0], [], []>} : vector<32x30xf32>, vector<16x30xf32>, vector<32x16xf32> -> vector<32x16xf32>
      %151 = arith.addf %141, %150 : vector<32x16xf32>
      %152 = vector.extract_strided_slice %116 {offsets = [0, 3, 0], sizes = [16, 1, 30], strides = [1, 1, 1]} : vector<16x7x30xf32> to vector<16x1x30xf32>
      %153 = vector.shape_cast %152 : vector<16x1x30xf32> to vector<16x30xf32>
      %154 = vector.extract_strided_slice %120 {offsets = [0, 3], sizes = [16, 1], strides = [1, 1]} : vector<16x6xf32> to vector<16x1xf32>
      %155 = vector.broadcast %154 : vector<16x1xf32> to vector<16x30xf32>
      %156 = arith.mulf %155, %118 : vector<16x30xf32>
      %157 = arith.subf %153, %156 : vector<16x30xf32>
      %c3 = arith.constant 3 : index
      %c0_64 = arith.constant 0 : index
      %c0_65 = arith.constant 0 : index
      %158 = vector.load %arg9[%c3, %c0_64, %c0_65] : memref<6x32x30xf32, #tpu.memory_space<vmem>>, vector<1x32x30xf32>
      %159 = vector.shape_cast %158 : vector<1x32x30xf32> to vector<32x30xf32>
      %cst_66 = arith.constant dense<0.000000e+00> : vector<32x16xf32>
      %160 = tpu.matmul %159, %157, %cst_66 {dimension_numbers = #tpu.dot_dimension_numbers<[1], [1], [0], [0], [0, 0, 1, 0], [], []>} : vector<32x30xf32>, vector<16x30xf32>, vector<32x16xf32> -> vector<32x16xf32>
      %161 = arith.addf %151, %160 : vector<32x16xf32>
      %162 = vector.extract_strided_slice %116 {offsets = [0, 4, 0], sizes = [16, 1, 30], strides = [1, 1, 1]} : vector<16x7x30xf32> to vector<16x1x30xf32>
      %163 = vector.shape_cast %162 : vector<16x1x30xf32> to vector<16x30xf32>
      %164 = vector.extract_strided_slice %120 {offsets = [0, 4], sizes = [16, 1], strides = [1, 1]} : vector<16x6xf32> to vector<16x1xf32>
      %165 = vector.broadcast %164 : vector<16x1xf32> to vector<16x30xf32>
      %166 = arith.mulf %165, %118 : vector<16x30xf32>
      %167 = arith.subf %163, %166 : vector<16x30xf32>
      %c4 = arith.constant 4 : index
      %c0_67 = arith.constant 0 : index
      %c0_68 = arith.constant 0 : index
      %168 = vector.load %arg9[%c4, %c0_67, %c0_68] : memref<6x32x30xf32, #tpu.memory_space<vmem>>, vector<1x32x30xf32>
      %169 = vector.shape_cast %168 : vector<1x32x30xf32> to vector<32x30xf32>
      %cst_69 = arith.constant dense<0.000000e+00> : vector<32x16xf32>
      %170 = tpu.matmul %169, %167, %cst_69 {dimension_numbers = #tpu.dot_dimension_numbers<[1], [1], [0], [0], [0, 0, 1, 0], [], []>} : vector<32x30xf32>, vector<16x30xf32>, vector<32x16xf32> -> vector<32x16xf32>
      %171 = arith.addf %161, %170 : vector<32x16xf32>
      %172 = vector.extract_strided_slice %116 {offsets = [0, 5, 0], sizes = [16, 1, 30], strides = [1, 1, 1]} : vector<16x7x30xf32> to vector<16x1x30xf32>
      %173 = vector.shape_cast %172 : vector<16x1x30xf32> to vector<16x30xf32>
      %174 = vector.extract_strided_slice %120 {offsets = [0, 5], sizes = [16, 1], strides = [1, 1]} : vector<16x6xf32> to vector<16x1xf32>
      %175 = vector.broadcast %174 : vector<16x1xf32> to vector<16x30xf32>
      %176 = arith.mulf %175, %118 : vector<16x30xf32>
      %177 = arith.subf %173, %176 : vector<16x30xf32>
      %c5 = arith.constant 5 : index
      %c0_70 = arith.constant 0 : index
      %c0_71 = arith.constant 0 : index
      %178 = vector.load %arg9[%c5, %c0_70, %c0_71] : memref<6x32x30xf32, #tpu.memory_space<vmem>>, vector<1x32x30xf32>
      %179 = vector.shape_cast %178 : vector<1x32x30xf32> to vector<32x30xf32>
      %cst_72 = arith.constant dense<0.000000e+00> : vector<32x16xf32>
      %180 = tpu.matmul %179, %177, %cst_72 {dimension_numbers = #tpu.dot_dimension_numbers<[1], [1], [0], [0], [0, 0, 1, 0], [], []>} : vector<32x30xf32>, vector<16x30xf32>, vector<32x16xf32> -> vector<32x16xf32>
      %181 = arith.addf %171, %180 : vector<32x16xf32>
      %c0_73 = arith.constant 0 : index
      %c0_74 = arith.constant 0 : index
      %c0_75 = arith.constant 0 : index
      %182 = vector.load %arg10[%c0_73, %c0_74, %c0_75] : memref<1x32x16xf32, #tpu.memory_space<vmem>>, vector<1x32x16xf32>
      %183 = vector.shape_cast %182 : vector<1x32x16xf32> to vector<32x16xf32>
      %184 = vector.shape_cast %181 : vector<32x16xf32> to vector<1x32x16xf32>
      tpu.vector_store %arg10[%c0_73, %c0_74, %c0_75], %184 {strides = array<i32>} : memref<1x32x16xf32, #tpu.memory_space<vmem>>, vector<1x32x16xf32>,
    } else {
    }
    return
  }
  func.func @transform_0(%arg0: i32, %arg1: i32, %arg2: i32) -> (i32, i32, i32) {
    %c0_i32 = arith.constant 0 : i32
    return %arg0, %arg1, %arg2 : i32, i32, i32
  }
  func.func @transform_1(%arg0: i32, %arg1: i32, %arg2: i32) -> (i32, i32, i32) {
    %c0_i32 = arith.constant 0 : i32
    %c0_i32_0 = arith.constant 0 : i32
    return %arg0, %c0_i32, %arg2 : i32, i32, i32
  }
  func.func @transform_2(%arg0: i32, %arg1: i32, %arg2: i32) -> (i32, i32, i32) {
    %c0_i32 = arith.constant 0 : i32
    %c0_i32_0 = arith.constant 0 : i32
    return %arg0, %arg1, %c0_i32 : i32, i32, i32
  }
  func.func @transform_3(%arg0: i32, %arg1: i32, %arg2: i32) -> (i32, i32, i32) {
    %c0_i32 = arith.constant 0 : i32
    %c0_i32_0 = arith.constant 0 : i32
    return %arg0, %c0_i32, %arg2 : i32, i32, i32
  }
  func.func @transform_4(%arg0: i32, %arg1: i32, %arg2: i32) -> (i32, i32, i32) {
    %c0_i32 = arith.constant 0 : i32
    %c0_i32_0 = arith.constant 0 : i32
    return %arg0, %c0_i32, %arg2 : i32, i32, i32
  }
  func.func @transform_5(%arg0: i32, %arg1: i32, %arg2: i32) -> (i32, i32, i32) {
    %c0_i32 = arith.constant 0 : i32
    %c0_i32_0 = arith.constant 0 : i32
    return %arg0, %arg1, %c0_i32 : i32, i32, i32
  }
  func.func @transform_6(%arg0: i32, %arg1: i32, %arg2: i32) -> (i32, i32, i32) {
    %c0_i32 = arith.constant 0 : i32
    %c0_i32_0 = arith.constant 0 : i32
    %c0_i32_1 = arith.constant 0 : i32
    %c0_i32_2 = arith.constant 0 : i32
    return %c0_i32, %c0_i32_0, %c0_i32_1 : i32, i32, i32
  }
  func.func @transform_7(%arg0: i32, %arg1: i32, %arg2: i32) -> (i32, i32, i32) {
    %c0_i32 = arith.constant 0 : i32
    %c0_i32_0 = arith.constant 0 : i32
    return %arg0, %c0_i32, %arg1 : i32, i32, i32
  }
}

</mosaic_0001>

<bundles_post_ra>
// kernel: tpu_custom_call.1
= control target key start
LH: loop header
LB: loop body
LE: loop exit
PB: predicated region body
PF: predicated region fallthrough
CT: control target
= control target key end

     0   :  { %12 = vsyncpa [#allocation4], 0  ;;  %s5679_s24 = smov 0   ;;  %s5681_s25 = smov 0   ;;  %s7643_s0 = inlined_call_operand.vmem [shape: f32[2,16,16], index: 0, kind: input, shape index: {}]   ;;  %s7644_s1 = inlined_call_operand.vmem [shape: f32[2,2,16], index: 1, kind: input, shape index: {}]   ;;  %s7645_s2 = inlined_call_operand.vmem [shape: f32[2,16,2], index: 2, kind: input, shape index: {}]   ;;  %s7646_s3 = inlined_call_operand.vmem [shape: f32[2,1,16], index: 3, kind: input, shape index: {}]   ;;  %s7647_s4 = inlined_call_operand.vmem [shape: f32[2,7,16], index: 4, kind: input, shape index: {}]   ;;  %s7648_s5 = inlined_call_operand.vmem [shape: f32[2,16,6], index: 5, kind: input, shape index: {}]   ;;  %s7649_s6 = inlined_call_operand.hbm [shape: f32[6,32,30], index: 6, kind: input, shape index: {}]   ;;  %s7650_s7 = inlined_call_operand.vmem [shape: f32[2,32,16], index: 7, kind: output, shape index: {}]  }
   0x1   :  { %s5683_s26 = smov 0  }
   0x2 LB: > { %s5002_s27 = sadd.s32 4294967295, %s5625_s26   ;;  %s37_s28 = sadd.s32 1, %s5621_s25  ;;  %s5625_s26 = sphi %s5683_s26, %s18_s26   ;;  %s5621_s25 = sphi %s5681_s25, %s7684_s25   ;;  %s5617_s24 = sphi %s5679_s24, %s7683_s24  }
   0x3   : > { %p39_p0 = scmp.ge.s32.totalorder %s37_s28, 2  ;;  %p5004_p1 = scmp.ge.s32.totalorder %s5625_s26, 1 }
   0x4   : > { %p261_p2 = scmp.lt.s32.totalorder %s5625_s26, 3  ;;  %p5704_p4 = scmp.eq.s32.totalorder %s5002_s27, 0 }
   0x5   : > { %s7686_s28 = smov (%p39_p0, %s37_s28), 0  ;;  %s5627_s8 = smov [#allocation3]  }
   0x6   : > { %p5700_p3 = pnand %p5004_p1, %p261_p2  ;;  %s273_s9 = sshll.u32 %s5627_s8, 4  ;;  %s274_s9 = int_to_ptr.vmem [resolvable:$true] %s273_s9 }
   0x7   : > { %s5584_s10 = scalar_lea.vmem %s274_s9, 3072  ;;  %p5592_p11 = scmp.lt.s32.totalorder %s274_s9, %s274_s9 }
   0x8   : > { %p5510_p5 = pneg %p5700_p3  ;;  %p5585_p8 = scmp.ne.s32.totalorder %s274_s9, %s5584_s10 }
   0x9   : > { %p5593_p12 = scmp.lt.s32.totalorder %s5584_s10, %s5584_s10 }
   0xa   : > { %p5511_p6 = pnand %p5704_p4, %p5510_p5 }
   0xb   : > { %p5594_p13 = por %p5593_p12, %p5592_p11 }
   0xc   : > { %p5575_p7 = pneg %p5511_p6 }
   0xe   : > { %p5587_p9 = pnand %p5585_p8, %p5575_p7 }
  0x10   : > { %p5588_p10 = pneg %p5587_p9 }
  0x12   : > { %p5595_p0 = pnand %p5594_p13, %p5588_p10 }
  0x14   : > { %5598 = shalt.err (!%p5595_p0)
}
  0x15   : > { %s5628_s11 = smov 128   ;;  %s5629_s12 = smov 8  }
  0x16   : > { %5513 = dma.hbm_to_vmem [thread:$0]  (!%p5511_p6), %s7649_s6, 3072, %s274_s9, [#allocation4], %s5628_s11, %s5628_s11, %s5629_s12  }
  0x17   : > { %360 = sbr.rel (%p5700_p3) target bundleno = 885 (0x375), region = 48 }
  0x1c   : > { %5612 = dma.done.wait (%p5704_p4), [#allocation4], 3072  }
  0x1d   : > { %5614 = vsyncadd (%p5704_p4), [#allocation4], 4294964224  ;;  %p441_p1 = scmp.lt.s32.totalorder %s5617_s24, 1  ;;  %v5630_v0 = vmov 0   ;;  %v5631_v3 = vmov 1   ;;  %v5632_v6 = vmov 0.0   ;;  %v635_v45 = vlaneseq }
  0x1e   : > { %5552 = vset.pattern.permute.xlu0 %v5630_v0  ;;  %5554 = vset.pattern.permute.xlu1 %v5630_v0  ;;  %vm5633_vm0 = vmmov 0   ;;  %v5634_v43 = vmov 1966171168   ;;  %vm2129_vm9 = vcmask 130048  }
  0x1f   : > { %s7688_s24 = smov (!%p441_p1, %s5617_s24), 1  ;;  %5262 = vmatprep.subr.mxu0 %v5632_v6  ;;  %5273 = vmatprep.subr.mxu1 %v5632_v6  ;;  %v633_v44 = vunpack.c.l.s4 %v5634_v43  ;;  %v5760_v56 = vshrl.u32 %v635_v45, 7 }
  0x20   : > { %s5726_s15 = sshll.u32 %s7688_s24, 4  ;;  %5270 = vmatprep.mubr.msk.f32.mxu0 %vm5633_vm0, %v5632_v6  ;;  %5281 = vmatprep.mubr.msk.f32.mxu1 %vm5633_vm0, %v5632_v6  ;;  %s5011_s22 = sshll.u32 %s7688_s24, 1 }
  0x21   : > { %s468_s18 = scalar_lea.vmem %s7645_s2, %s5726_s15  ;;  %s5736_s21 = scalar_lea.vmem %s7648_s5, %s5726_s15  ;;  %v634_v60 = vunpack.c.0.s8 %v633_v44 }
  0x22   : > { %v526_v1 = vld [vmem:[%s468_s18] sm:$0xff]  ;;  %v527_v2 = vld [vmem:[%s468_s18 + $0x8] sm:$0xff]  ;;  %s459_s29 = scalar_lea.vmem %s7644_s1, %s5011_s22  ;;  %s451_s9 = scalar_lea.vmem %s7643_s0, %s5726_s15 }
  0x23   : > { %534 = vperm.xlu0 %5552, %v526_v1   ;;  %539 = vperm.xlu1 %5554, %v527_v2   ;;  %v3498_v4 = vld [vmem:[%s5736_s21 + $0x8] sm:$0xff]  ;;  %v3497_v5 = vld [vmem:[%s5736_s21] sm:$0xff]  ;;  %s475_s12 = scalar_lea.vmem %s7646_s3, %s7688_s24  ;;  %s5014_s13 = sshll.u32 %s7688_s24, 3 }
  0x24   : > { %v5019_v7 = vld [vmem:[%s459_s29] ss:$0 sm:$0xff]  ;;  %v5020_v11 = vld [vmem:[%s459_s29 + $0x1] ss:$0 sm:$0xff]  ;;  %v523_v33 = vld [vmem:[%s451_s9 + $0x8] sm:$0xff]  ;;  %s6039_s16 = scalar_lea.vmem %s7647_s4, %s5014_s13  ;;  %s5145_s17 = sshll.u32 %s7688_s24, 5 }
  0x25   : > { %v522_v32 = vld [vmem:[%s451_s9] sm:$0xff]  ;;  %v608_v39 = vfloor.f32 %v523_v33  ;;  %s500_s20 = scalar_lea.vmem %s7650_s7, %s5145_s17 }
  0x26   : > { %v5021_v36 = vld [vmem:[%s475_s12] ss:$0 sm:$0xff]  ;;  %v607_v37 = vfloor.f32 %v522_v32 }
  0x27   : > { %5553 = vset.pattern.permute.xlu0 %v5631_v3  ;;  %5555 = vset.pattern.permute.xlu1 %v5631_v3  ;;  %v5500_v47 = vtrunc.f32 %v608_v39  ;;  %v614_v58 = vsub.f32 %v523_v33, %v608_v39 }
  0x28   : > { %551 = vperm.xlu0 %5553, %v526_v1   ;;  %555 = vperm.xlu1 %5555, %v527_v2   ;;  %v5498_v42 = vtrunc.f32 %v607_v37  ;;  %v613_v55 = vsub.f32 %v522_v32, %v607_v37 }
  0x29   : > { %v5501_v62 = vcvt.f32.s32 %v5500_v47 }
  0x2a   : > { %v5499_v59 = vcvt.f32.s32 %v5498_v42  ;;  %v615_v3 = vsub.f32 1.0, %v613_v55 }
  0x2c   : > { %5556 = vset.pattern.permute.xlu0 %v5630_v0  ;;  %3621 = vperm.xlu1 %5555, %v3498_v4  }
  0x2d   : > { %3506 = vperm.xlu0 %5556, %v3498_v4  }
  0x30   : > { %3617 = vperm.xlu1 %5555, %v3497_v5  }
  0x34   : > { %5557 = vset.pattern.permute.xlu1 %v5630_v0 }
  0x35   : > { %3501 = vperm.xlu1 %5557, %v3497_v5   ;;  %v616_v5 = vsub.f32 1.0, %v614_v58 }
  0x9e   : > { %v535_v8 = vpop.permute.xlu0 %534  ;;  %v540_v10 = vpop.permute.xlu1 %539 }
  0x9f   : > { %v542_v9 = vsub.f32 %v5019_v7, %v535_v8  ;;  %v543_v12 = vsub.f32 %v5019_v7, %v540_v10  ;;  %v1043_v7 = vmul.u32 3, %v5499_v59  ;;  %v5765_v8 = vsub.s32 %v634_v60, %v5760_v56 }
  0xa0   : > { %v1044_v10 = vmul.u32 3, %v5501_v62 }
  0xa1   : > { %v544_v14 = vmul.f32 0.6666667, %v542_v9  ;;  %v545_v16 = vmul.f32 0.6666667, %v543_v12 }
  0xa3   : > { %v552_v13 = vpop.permute.xlu0 %551  ;;  %v556_v17 = vpop.permute.xlu1 %555  ;;  %v562_v20 = vmul.f32 %v544_v14, %v544_v14  ;;  %v563_v22 = vmul.f32 %v545_v16, %v545_v16  ;;  %v5773_v16 = vsub.s32 0, %v5760_v56 }
  0xa4   : > { %v558_v15 = vsub.f32 %v5020_v11, %v552_v13  ;;  %v559_v19 = vsub.f32 %v5020_v11, %v556_v17  ;;  %v5776_v17 = vadd.s32 16, %v5760_v56 }
  0xa6   : > { %v560_v18 = vmul.f32 0.6666667, %v558_v15  ;;  %v561_v23 = vmul.f32 0.6666667, %v559_v19  ;;  %v5770_v15 = vadd.s32 24, %v5760_v56 }
  0xa8   : > { %v564_v21 = vmul.f32 %v560_v18, %v560_v18  ;;  %v565_v25 = vmul.f32 %v561_v23, %v561_v23 }
  0xaa   : > { %v566_v24 = vadd.f32 %v564_v21, %v562_v20  ;;  %v567_v27 = vadd.f32 %v565_v25, %v563_v22  ;;  %v5779_v21 = vadd.s32 8, %v5760_v56 }
  0xac   : > { %v568_v26 = vadd.f32 1e-09, %v566_v24  ;;  %v569_v28 = vadd.f32 1e-09, %v567_v27  ;;  %v586_v29 = vsub.f32 1.0, %v567_v27  ;;  %v585_v34 = vsub.f32 1.0, %v566_v24 }
  0xae   : > { %5566 = vrsqrt.f32 %v568_v26  ;;  %v588_v30 = vmul.f32 %v586_v29, %v586_v29  ;;  %v587_v40 = vmul.f32 %v585_v34, %v585_v34  ;;  %vm572_vm1 = vcmp.eq.f32.partialorder %v568_v26, inf }
  0xaf   : > { %5568 = vrsqrt.f32 %v569_v28  ;;  %vm574_vm2 = vcmp.eq.f32.partialorder %v568_v26, 0.0  ;;  %v575_v48 = vand.u32 2147483648, %v568_v26  ;;  %vm579_vm3 = vcmp.eq.f32.partialorder %v569_v28, inf }
  0xb0   : > { %v590_v31 = vmul.f32 %v588_v30, %v586_v29  ;;  %v589_v51 = vmul.f32 %v587_v40, %v585_v34  ;;  %v582_v52 = vand.u32 2147483648, %v569_v28  ;;  %vm581_vm4 = vcmp.eq.f32.partialorder %v569_v28, 0.0 }
  0xb2   : > { %v592_v35 = vmax.f32 %v590_v31, 0.0  ;;  %v591_v63 = vmax.f32 %v589_v51, 0.0 }
  0xb4   : > { %v5758_v38 = vmul.f32 %v5021_v36, %v592_v35  ;;  %v599_v11 = vmul.f32 %v5021_v36, %v591_v63 }
  0xbb   : > { %v5567_v41 = vpop.eup %5566 }
  0xbc   : > { %v571_v46 = vmul.f32 %v5567_v41, %v568_v26  ;;  %v5569_v49 = vpop.eup %5568 }
  0xbd   : > { %v578_v54 = vmul.f32 %v5569_v49, %v569_v28 }
  0xbe   : > { %v573_v50 = vsel %vm572_vm1, %v568_v26, %v571_v46 }
  0xbf   : > { %v576_v53 = vsel %vm574_vm2, %v575_v48, %v573_v50  ;;  %v580_v61 = vsel %vm579_vm3, %v569_v28, %v578_v54 }
  0xc0   : > { %v601_v57 = vmul.f32 3.0, %v576_v53  ;;  %v583_v1 = vsel %vm581_vm4, %v582_v52, %v580_v61 }
  0xc1   : > { %v602_v2 = vmul.f32 3.0, %v583_v1 }
  0xc2   : > { %v5022_v0 = vadd.f32 -0.5, %v601_v57 }
  0xc3   : > { %v5023_v9 = vadd.f32 -0.5, %v602_v2 }
  0xc4   : > { %v5762_v4 = vfloor.f32 %v5022_v0 }
  0xc5   : > { %v606_v14 = vfloor.f32 %v5023_v9 }
  0xc6   : > { %v609_v12 = vsub.f32 %v5022_v0, %v5762_v4  ;;  %v5502_v13 = vtrunc.f32 %v5762_v4  ;;  %vm619_vm5 = vcmp.le.f32.partialorder %v5762_v4, 1.0  ;;  %vm617_vm6 = vcmp.ge.f32.partialorder %v5762_v4, 0.0 }
  0xc7   : > { %v610_v22 = vsub.f32 %v5023_v9, %v606_v14  ;;  %v5504_v23 = vtrunc.f32 %v606_v14  ;;  %vm618_vm7 = vcmp.ge.f32.partialorder %v606_v14, 0.0  ;;  %vm620_vm8 = vcmp.le.f32.partialorder %v606_v14, 1.0 }
  0xc8   : > { %v611_v18 = vsub.f32 1.0, %v609_v12  ;;  %v623_v19 = vmul.f32 %v609_v12, %v599_v11  ;;  %v5503_v20 = vcvt.f32.s32 %v5502_v13 }
  0xc9   : > { %v612_v27 = vsub.f32 1.0, %v610_v22  ;;  %v624_v28 = vmul.f32 %v610_v22, %v5758_v38  ;;  %v5505_v29 = vcvt.f32.s32 %v5504_v23 }
  0xca   : > { %v621_v24 = vmul.f32 %v611_v18, %v599_v11  ;;  %v729_v25 = vmul.f32 %v623_v19, %v615_v3  ;;  %v937_v26 = vmul.f32 %v623_v19, %v613_v55  ;;  %v5784_v33 = vadd.s32 %v5503_v20, %v1043_v7 }
  0xcb   : > { %v622_v37 = vmul.f32 %v612_v27, %v5758_v38  ;;  %v730_v39 = vmul.f32 %v624_v28, %v616_v5  ;;  %v938_v40 = vmul.f32 %v624_v28, %v614_v58  ;;  %v5790_v41 = vadd.s32 %v5505_v29, %v1044_v10 }
  0xcc   : > { %v625_v30 = vmul.f32 %v621_v24, %v615_v3  ;;  %v731_v31 = vsel %vm619_vm5, %v729_v25, 0.0  ;;  %v939_v32 = vsel %vm619_vm5, %v937_v26, 0.0  ;;  %v833_v44 = vmul.f32 %v621_v24, %v613_v55 }
  0xcd   : > { %v735_v34 = vcombine.high %v731_v31, %v731_v31  ;;  %v943_v35 = vcombine.high %v939_v32, %v939_v32  ;;  %v5787_v36 = vrot.slane %v939_v32, %v5765_v8  ;;  %v626_v46 = vmul.f32 %v622_v37, %v616_v5 }
  0xce   : > { %v5794_v42 = vsel %vm617_vm6, %v625_v30, 0.0  ;;  %v732_v38 = vsel %vm620_vm8, %v730_v39, 0.0  ;;  %v834_v48 = vmul.f32 %v622_v37, %v614_v58  ;;  %v940_v49 = vsel %vm620_vm8, %v938_v40, 0.0 }
  0xcf   : > { %v5797_v43 = vrot.slane %v735_v34, %v5765_v8  ;;  %v5800_v45 = vrot.slane %v943_v35, %v5765_v8  ;;  %v958_v47 = vcombine.high %v5787_v36, %v5787_v36  ;;  %v5809_v51 = vsel %vm618_vm7, %v626_v46, 0.0 }
  0xd0   : > { %v784_v52 = vcombine.high %v732_v38, %v732_v38  ;;  %v5820_v57 = vrot.slane %v732_v38, %v5765_v8  ;;  %v836_v58 = vsel %vm618_vm7, %v834_v48, 0.0  ;;  %v5825_v59 = vrot.slane %v5809_v51, %v5765_v8 }
  0xd1   : > { %v5815_v54 = vrot.slane %v5800_v45, %v5765_v8  ;;  %v888_v60 = vcombine.high %v836_v58, %v836_v58  ;;  %v5828_v61 = vrot.slane %v836_v58, %v5765_v8  ;;  %v992_v62 = vcombine.high %v940_v49, %v940_v49 }
  0xd2   : > { %v5831_v63 = vrot.slane %v784_v52, %v5765_v8  ;;  %v999_v0 = vrot.slane %v940_v49, %v5765_v8  ;;  %v638_v1 = vrot.slane %v5794_v42, %v5765_v8  ;;  %v742_v2 = vrot.slane %v731_v31, %v5765_v8 }
  0xd3   : > { %v5840_v5 = vrot.slane %v888_v60, %v5765_v8  ;;  %v5845_v9 = vrot.slane %v992_v62, %v5765_v8  ;;  %v5860_v18 = vrot.slane %v5828_v61, %v5765_v8  ;;  %v835_v20 = vsel %vm617_vm6, %v833_v44, 0.0 }
  0xd4   : > { %v1007_v10 = vcombine.high %v999_v0, %v999_v0  ;;  %v5848_v11 = vrot.slane %v999_v0, %v5765_v8  ;;  %v5851_v12 = vrot.slane %v638_v1, %v5765_v8  ;;  %v5854_v13 = vrot.slane %v742_v2, %v5765_v8 }
  0xd5   : > { %v5868_v22 = vrot.slane %v5845_v9, %v5765_v8  ;;  %v839_v27 = vcombine.high %v835_v20, %v835_v20  ;;  %v846_v4 = vrot.slane %v835_v20, %v5765_v8  ;;  %v5882_v28 = vrot.slane %v5787_v36, %v5765_v8 }
  0xd6   : > { %v5871_v23 = vrot.slane %v1007_v10, %v5765_v8  ;;  %v676_v25 = vcombine.high %v5851_v12, %v5851_v12  ;;  %v780_v26 = vcombine.high %v5854_v13, %v5854_v13  ;;  %v1056_v30 = vrot.slane %v5784_v33, %v5765_v8 }
  0xd7   : > { %v5890_v31 = vrot.slane %v5854_v13, %v5773_v16  ;;  %v646_v32 = vcombine.high %v638_v1, %v638_v1  ;;  %v5893_v34 = vrot.slane %v839_v27, %v5765_v8  ;;  %v5896_v35 = vrot.slane %v846_v4, %v5765_v8 }
  0xd8   : > { %v988_v36 = vcombine.high %v5882_v28, %v5882_v28  ;;  %v5902_v37 = vrot.slane %v5851_v12, %v5773_v16  ;;  %v5905_v39 = vrot.slane %v1056_v30, %v5765_v8  ;;  %v750_v44 = vcombine.high %v742_v2, %v742_v2 }
  0xd9   : > { %v5908_v40 = vrot.slane %v646_v32, %v5765_v8  ;;  %v854_v46 = vcombine.high %v846_v4, %v846_v4  ;;  %v884_v48 = vcombine.high %v5896_v35, %v5896_v35  ;;  %v5916_v49 = vrot.slane %v5882_v28, %v5773_v16 }
  0xda   : > { %v5919_v52 = vrot.slane %v958_v47, %v5765_v8  ;;  %v1094_v58 = vcombine.high %v5905_v39, %v5905_v39  ;;  %v5925_v60 = vrot.slane %v5905_v39, %v5773_v16  ;;  %v5929_v62 = vrot.slane %v5896_v35, %v5773_v16 }
  0xdb   : > { %v5932_v0 = vrot.slane %v750_v44, %v5765_v8  ;;  %v5937_v47 = vrot.slane %v854_v46, %v5765_v8  ;;  %v1064_v10 = vcombine.high %v1056_v30, %v1056_v30  ;;  %v5960_v30 = vrot.slane %v5908_v40, %v5773_v16 }
  0xdc   : > { %v1219_v20 = vsub.s32 %v5770_v15, %v5925_v60  ;;  %v5947_v4 = vrot.slane %v5919_v52, %v5773_v16  ;;  %v1218_v19 = vsub.s32 %v5776_v17, %v5925_v60 }
  0xdd   : > { %v5951_v32 = vrot.slane %v5932_v0, %v5773_v16  ;;  %v5956_v46 = vrot.slane %v1064_v10, %v5765_v8  ;;  %v5966_v14 = vrot.slane %v5937_v47, %v5773_v16 }
  0xde   : > { %vm1283_vm10 = vcmp.eq.s32.totalorder %v1219_v20, 0  ;;  %vm1411_vm11 = vcmp.eq.s32.totalorder %v1219_v20, 3  ;;  %vm1475_vm12 = vcmp.eq.s32.totalorder %v1219_v20, 4  ;;  %vm1347_vm13 = vcmp.eq.s32.totalorder %v1219_v20, 1 }
  0xdf   : > { %v1619_v55 = vsel %vm1475_vm12, %v5916_v49, 0.0  ;;  %v1096_v10 = vcombine.high %v5956_v46, %v5956_v46  ;;  %v1159_v24 = vrot.slane %v5956_v46, %v5773_v16  ;;  %vm1282_vm14 = vcmp.eq.s32.totalorder %v1218_v19, 0 }
  0xe0   : > { %v1763_v7 = vsel %vm1411_vm11, %v5929_v62, %v1619_v55  ;;  %vm1410_vm15 = vcmp.eq.s32.totalorder %v1218_v19, 3  ;;  %vm1474_vm1 = vcmp.eq.s32.totalorder %v1218_v19, 4  ;;  %vm1346_vm2 = vcmp.eq.s32.totalorder %v1218_v19, 1 }
  0xe1   : > { %v1907_v3 = vsel %vm1347_vm13, %v5890_v31, %v1763_v7  ;;  %v1223_v50 = vsub.s32 %v5770_v15, %v1159_v24  ;;  %v1618_v38 = vsel %vm1474_vm1, %v5916_v49, 0.0  ;;  %v1222_v29 = vsub.s32 %v5776_v17, %v1159_v24 }
  0xe2   : > { %v2051_v53 = vsel %vm1283_vm10, %v5902_v37, %v1907_v3  ;;  %v1762_v1 = vsel %vm1410_vm15, %v5929_v62, %v1618_v38  ;;  %v1217_v55 = vsub.s32 %v5779_v21, %v5925_v60  ;;  %v1221_v7 = vsub.s32 %v5779_v21, %v1159_v24 }
  0xe3   : > { %5263 = vmatpush3.xpose.msk.msra.mxu0 %vm2129_vm9, %v2051_v53  ;;  %vm1287_vm3 = vcmp.eq.s32.totalorder %v1223_v50, 0  ;;  %vm1415_vm4 = vcmp.eq.s32.totalorder %v1223_v50, 3  ;;  %vm1479_vm5 = vcmp.eq.s32.totalorder %v1223_v50, 4  ;;  %vm1351_vm6 = vcmp.eq.s32.totalorder %v1223_v50, 1 }
  0xe4   : > { %v1623_v27 = vsel %vm1479_vm5, %v5947_v4, 0.0  ;;  %5264 = vmatprep.subr.mxu0 %v5632_v6  ;;  %v1906_v3 = vsel %vm1346_vm2, %v5890_v31, %v1762_v1  ;;  %vm1286_vm7 = vcmp.eq.s32.totalorder %v1222_v29, 0  ;;  %vm1350_vm8 = vcmp.eq.s32.totalorder %v1222_v29, 1 }
  0xe5   : > { %v1767_v38 = vsel %vm1415_vm4, %v5966_v14, %v1623_v27  ;;  %vm1414_vm10 = vcmp.eq.s32.totalorder %v1222_v29, 3  ;;  %vm1478_vm11 = vcmp.eq.s32.totalorder %v1222_v29, 4  ;;  %v2050_v20 = vsel %vm1282_vm14, %v5902_v37, %v1906_v3 }
  0xe6   : > { %v1911_v53 = vsel %vm1351_vm6, %v5951_v32, %v1767_v38  ;;  %v1622_v44 = vsel %vm1478_vm11, %v5947_v4, 0.0  ;;  %vm1281_vm12 = vcmp.eq.s32.totalorder %v1217_v55, 0  ;;  %vm1409_vm13 = vcmp.eq.s32.totalorder %v1217_v55, 3 }
  0xe7   : > { %v2055_v2 = vsel %vm1287_vm3, %v5960_v30, %v1911_v53  ;;  %5265 = vmatpush3.xpose.msk.msra.mxu0 %vm2129_vm9, %v2050_v20  ;;  %v1766_v1 = vsel %vm1414_vm10, %v5966_v14, %v1622_v44  ;;  %vm1473_vm15 = vcmp.eq.s32.totalorder %v1217_v55, 4  ;;  %vm1345_vm1 = vcmp.eq.s32.totalorder %v1217_v55, 1 }
  0xe8   : > { %5274 = vmatpush3.xpose.msk.msra.mxu1 %vm2129_vm9, %v2055_v2  ;;  %v1910_v27 = vsel %vm1350_vm8, %v5951_v32, %v1766_v1  ;;  %5266 = vmatprep.subr.mxu0 %v5632_v6  ;;  %v1617_v19 = vsel %vm1473_vm15, %v5916_v49, 0.0  ;;  %vm1285_vm14 = vcmp.eq.s32.totalorder %v1221_v7, 0  ;;  %vm1349_vm2 = vcmp.eq.s32.totalorder %v1221_v7, 1 }
  0xe9   : > { %5275 = vmatprep.subr.mxu1 %v5632_v6  ;;  %v1761_v50 = vsel %vm1409_vm13, %v5929_v62, %v1617_v19  ;;  %vm1413_vm3 = vcmp.eq.s32.totalorder %v1221_v7, 3  ;;  %vm1477_vm4 = vcmp.eq.s32.totalorder %v1221_v7, 4  ;;  %v1216_v3 = vsub.s32 %v5760_v56, %v5925_v60 }
  0xea   : > { %v1905_v44 = vsel %vm1345_vm1, %v5890_v31, %v1761_v50  ;;  %v1621_v2 = vsel %vm1477_vm4, %v5947_v4, 0.0  ;;  %v1220_v38 = vsub.s32 %v5760_v56, %v1159_v24  ;;  %v2054_v53 = vsel %vm1286_vm7, %v5960_v30, %v1910_v27 }
  0xeb   : > { %v2049_v20 = vsel %vm1281_vm12, %v5902_v37, %v1905_v44  ;;  %v1765_v1 = vsel %vm1413_vm3, %v5966_v14, %v1621_v2  ;;  %v6017_v19 = vrot.slane %v1094_v58, %v5773_v16  ;;  %vm1280_vm5 = vcmp.eq.s32.totalorder %v1216_v3, 0 }
  0xec   : > { %5276 = vmatpush3.xpose.msk.msra.mxu1 %vm2129_vm9, %v2054_v53  ;;  %5267 = vmatpush3.xpose.msk.msra.mxu0 %vm2129_vm9, %v2049_v20  ;;  %v1909_v24 = vsel %vm1349_vm2, %v5951_v32, %v1765_v1  ;;  %vm1408_vm6 = vcmp.eq.s32.totalorder %v1216_v3, 3  ;;  %v6027_v29 = vrot.slane %v988_v36, %v5773_v16  ;;  %vm1344_vm7 = vcmp.eq.s32.totalorder %v1216_v3, 1 }
  0xed   : > { %5277 = vmatprep.subr.mxu1 %v5632_v6  ;;  %v2053_v39 = vsel %vm1285_vm14, %v5960_v30, %v1909_v24  ;;  %5268 = vmatprep.subr.mxu0 %v5632_v6  ;;  %vm1472_vm8 = vcmp.eq.s32.totalorder %v1216_v3, 4  ;;  %vm1284_vm10 = vcmp.eq.s32.totalorder %v1220_v38, 0  ;;  %vm1412_vm11 = vcmp.eq.s32.totalorder %v1220_v38, 3 }
  0xee   : > { %v1616_v58 = vsel %vm1472_vm8, %v5916_v49, 0.0  ;;  %vm1476_vm12 = vcmp.eq.s32.totalorder %v1220_v38, 4  ;;  %v1227_v60 = vsub.s32 %v5770_v15, %v6017_v19  ;;  %vm1348_vm13 = vcmp.eq.s32.totalorder %v1220_v38, 1 }
  0xef   : > { %v1760_v28 = vsel %vm1408_vm6, %v5929_v62, %v1616_v58  ;;  %v1620_v36 = vsel %vm1476_vm12, %v5947_v4, 0.0  ;;  %v6047_v49 = vrot.slane %v884_v48, %v5773_v16  ;;  %v6056_v62 = vrot.slane %v780_v26, %v5773_v16  ;;  %v6063_v48 = vld [vmem:[%s6039_s16] sm:$0x7f] }
  0xf0   : > { %5278 = vmatpush3.xpose.msk.msra.mxu1 %vm2129_vm9, %v2053_v39  ;;  %v1904_v55 = vsel %vm1344_vm7, %v5890_v31, %v1760_v28  ;;  %v1764_v7 = vsel %vm1412_vm11, %v5966_v14, %v1620_v36  ;;  %vm1291_vm15 = vcmp.eq.s32.totalorder %v1227_v60, 0  ;;  %vm1419_vm1 = vcmp.eq.s32.totalorder %v1227_v60, 3 }
  0xf1   : > { %v2048_v4 = vsel %vm1280_vm5, %v5902_v37, %v1904_v55  ;;  %5279 = vmatprep.subr.mxu1 %v5632_v6  ;;  %v1908_v35 = vsel %vm1348_vm13, %v5951_v32, %v1764_v7  ;;  %vm1483_vm14 = vcmp.eq.s32.totalorder %v1227_v60, 4  ;;  %vm1355_vm2 = vcmp.eq.s32.totalorder %v1227_v60, 1 }
  0xf2   : > { %5269 = vmatpush3.xpose.msk.msra.mxu0 %vm2129_vm9, %v2048_v4  ;;  %v2052_v14 = vsel %vm1284_vm10, %v5960_v30, %v1908_v35  ;;  %v1627_v13 = vsel %vm1483_vm14, %v6027_v29, 0.0  ;;  %v1167_v26 = vrot.slane %v1096_v10, %v5773_v16  ;;  %v6079_v37 = vrot.slane %v676_v25, %v5773_v16 }
  0xf3   : > { %5284 = vmatprep.subr.mxu0 %v5632_v6  ;;  %v1771_v31 = vsel %vm1419_vm1, %v6047_v49, %v1627_v13  ;;  %v7654_v32 = vcombine.high %v5919_v52, %v5919_v52  ;;  %v7655_v46 = vcombine.high %v5937_v47, %v5937_v47  ;;  %v7656_v25 = vcombine.high %v5932_v0, %v5932_v0 }
  0xf4   : > { %5280 = vmatpush3.xpose.msk.msra.mxu1 %vm2129_vm9, %v2052_v14  ;;  %v1915_v27 = vsel %vm1355_vm2, %v6056_v62, %v1771_v31  ;;  %v1231_v12 = vsub.s32 %v5770_v15, %v1167_v26  ;;  %v1226_v52 = vsub.s32 %v5776_v17, %v6017_v19  ;;  %v7657_v44 = vcombine.high %v5908_v40, %v5908_v40 }
  0xf5   : > { %v6085_v30 = vrot.slane %v7654_v32, %v5773_v16  ;;  %v6091_v10 = vrot.slane %v7655_v46, %v5773_v16  ;;  %v6100_v50 = vrot.slane %v7656_v25, %v5773_v16  ;;  %5271 = vmatmul.mubr.msk.f32.vlgmr.msra.gmra.mxu0 %vm2129_vm9, %v6063_v48  ;;  %v2059_v47 = vsel %vm1291_vm15, %v6079_v37, %v1915_v27 }
  0xf6   : > { %5295 = vmatprep.subr.mxu1 %v5632_v6  ;;  %v6113_v2 = vrot.slane %v7657_v44, %v5773_v16  ;;  %v1230_v0 = vsub.s32 %v5776_v17, %v1167_v26  ;;  %5285 = vmatpush3.xpose.msk.msra.mxu0 %vm2129_vm9, %v2059_v47  ;;  %vm1295_vm3 = vcmp.eq.s32.totalorder %v1231_v12, 0  ;;  %vm1423_vm4 = vcmp.eq.s32.totalorder %v1231_v12, 3 }
  0xf7   : > { %vm1487_vm5 = vcmp.eq.s32.totalorder %v1231_v12, 4  ;;  %v1225_v3 = vsub.s32 %v5779_v21, %v6017_v19  ;;  %5292 = vmatprep.mubr.msk.f32.mxu0 %vm5633_vm0, %v5632_v6  ;;  %5282 = vmatmul.mubr.msk.f32.vlgmr.msra.gmra.mxu1 %vm2129_vm9, %v6063_v48  ;;  %vm1359_vm6 = vcmp.eq.s32.totalorder %v1231_v12, 1  ;;  %vm1290_vm7 = vcmp.eq.s32.totalorder %v1226_v52, 0 }
  0xf8   : > { %v1631_v40 = vsel %vm1487_vm5, %v6085_v30, 0.0  ;;  %5286 = vmatprep.subr.mxu0 %v5632_v6  ;;  %vm1418_vm8 = vcmp.eq.s32.totalorder %v1226_v52, 3  ;;  %vm1354_vm10 = vcmp.eq.s32.totalorder %v1226_v52, 1  ;;  %vm1482_vm11 = vcmp.eq.s32.totalorder %v1226_v52, 4  ;;  %5303 = vmatprep.mubr.msk.f32.mxu1 %vm5633_vm0, %v5632_v6 }
  0xf9   : > { %v1775_v38 = vsel %vm1423_vm4, %v6091_v10, %v1631_v40  ;;  %vm1294_vm12 = vcmp.eq.s32.totalorder %v1230_v0, 0  ;;  %v1626_v20 = vsel %vm1482_vm11, %v6027_v29, 0.0  ;;  %vm1422_vm13 = vcmp.eq.s32.totalorder %v1230_v0, 3 }
  0xfa   : > { %v1919_v53 = vsel %vm1359_vm6, %v6100_v50, %v1775_v38  ;;  %vm1486_vm15 = vcmp.eq.s32.totalorder %v1230_v0, 4  ;;  %v1770_v24 = vsel %vm1418_vm8, %v6047_v49, %v1626_v20  ;;  %vm1358_vm1 = vcmp.eq.s32.totalorder %v1230_v0, 1 }
  0xfb   : > { %v2063_v1 = vsel %vm1295_vm3, %v6113_v2, %v1919_v53  ;;  %v1630_v39 = vsel %vm1486_vm15, %v6085_v30, 0.0  ;;  %v1914_v58 = vsel %vm1354_vm10, %v6056_v62, %v1770_v24  ;;  %vm1289_vm14 = vcmp.eq.s32.totalorder %v1225_v3, 0 }
  0xfc   : > { %5296 = vmatpush3.xpose.msk.msra.mxu1 %vm2129_vm9, %v2063_v1  ;;  %v1774_v60 = vsel %vm1422_vm13, %v6091_v10, %v1630_v39  ;;  %vm1417_vm2 = vcmp.eq.s32.totalorder %v1225_v3, 3  ;;  %v2058_v28 = vsel %vm1290_vm7, %v6079_v37, %v1914_v58  ;;  %vm1481_vm3 = vcmp.eq.s32.totalorder %v1225_v3, 4 }
  0xfd   : > { %5297 = vmatprep.subr.mxu1 %v5632_v6  ;;  %v1918_v36 = vsel %vm1358_vm1, %v6100_v50, %v1774_v60  ;;  %v1229_v55 = vsub.s32 %v5779_v21, %v1167_v26  ;;  %5287 = vmatpush3.xpose.msk.msra.mxu0 %vm2129_vm9, %v2058_v28  ;;  %vm1353_vm4 = vcmp.eq.s32.totalorder %v1225_v3, 1  ;;  %v1625_v7 = vsel %vm1481_vm3, %v6027_v29, 0.0 }
  0xfe   : > { %v1224_v4 = vsub.s32 %v5760_v56, %v6017_v19  ;;  %v1228_v35 = vsub.s32 %v5760_v56, %v1167_v26  ;;  %v2062_v14 = vsel %vm1294_vm12, %v6113_v2, %v1918_v36  ;;  %5288 = vmatprep.subr.mxu0 %v5632_v6  ;;  %v1769_v13 = vsel %vm1417_vm2, %v6047_v49, %v1625_v7 }
  0xff   : > { %vm1293_vm5 = vcmp.eq.s32.totalorder %v1229_v55, 0  ;;  %vm1421_vm6 = vcmp.eq.s32.totalorder %v1229_v55, 3  ;;  %v1913_v31 = vsel %vm1353_vm4, %v6056_v62, %v1769_v13  ;;  %vm1357_vm7 = vcmp.eq.s32.totalorder %v1229_v55, 1 }
 0x100   : > { %5298 = vmatpush3.xpose.msk.msra.mxu1 %vm2129_vm9, %v2062_v14  ;;  %vm1485_vm8 = vcmp.eq.s32.totalorder %v1229_v55, 4  ;;  %vm1288_vm10 = vcmp.eq.s32.totalorder %v1224_v4, 0  ;;  %v2057_v19 = vsel %vm1289_vm14, %v6079_v37, %v1913_v31  ;;  %vm1416_vm11 = vcmp.eq.s32.totalorder %v1224_v4, 3 }
 0x101   : > { %5299 = vmatprep.subr.mxu1 %v5632_v6  ;;  %v1629_v26 = vsel %vm1485_vm8, %v6085_v30, 0.0  ;;  %vm1480_vm12 = vcmp.eq.s32.totalorder %v1224_v4, 4  ;;  %5289 = vmatpush3.xpose.msk.msra.mxu0 %vm2129_vm9, %v2057_v19  ;;  %vm1352_vm13 = vcmp.eq.s32.totalorder %v1224_v4, 1  ;;  %vm1356_vm15 = vcmp.eq.s32.totalorder %v1228_v35, 1 }
 0x102   : > { %v1773_v32 = vsel %vm1421_vm6, %v6091_v10, %v1629_v26  ;;  %v1624_v46 = vsel %vm1480_vm12, %v6027_v29, 0.0  ;;  %5290 = vmatprep.subr.mxu0 %v5632_v6  ;;  %vm1420_vm1 = vcmp.eq.s32.totalorder %v1228_v35, 3  ;;  %vm1484_vm14 = vcmp.eq.s32.totalorder %v1228_v35, 4 }
 0x103   : > { %v1917_v27 = vsel %vm1357_vm7, %v6100_v50, %v1773_v32  ;;  %v1768_v12 = vsel %vm1416_vm11, %v6047_v49, %v1624_v46  ;;  %v1628_v47 = vsel %vm1484_vm14, %v6085_v30, 0.0  ;;  %v7658_v29 = vcombine.high %v5794_v42, %v5794_v42 }
 0x104   : > { %v2061_v25 = vsel %vm1293_vm5, %v6113_v2, %v1917_v27  ;;  %v1912_v52 = vsel %vm1352_vm13, %v6056_v62, %v1768_v12  ;;  %v1772_v49 = vsel %vm1420_vm1, %v6091_v10, %v1628_v47  ;;  %v6177_v3 = vrot.slane %v5797_v43, %v5765_v8 }
 0x105   : > { %v645_v44 = vrot.slane %v7658_v29, %v5765_v8  ;;  %5300 = vmatpush3.xpose.msk.msra.mxu1 %vm2129_vm9, %v2061_v25  ;;  %v2056_v0 = vsel %vm1288_vm10, %v6079_v37, %v1912_v52  ;;  %v6181_v62 = vrot.slane %v5893_v34, %v5765_v8  ;;  %vm1292_vm2 = vcmp.eq.s32.totalorder %v1228_v35, 0 }
 0x106   : > { %5291 = vmatpush3.xpose.msk.msra.mxu0 %vm2129_vm9, %v2056_v0  ;;  %5301 = vmatprep.subr.mxu1 %v5632_v6  ;;  %v1916_v42 = vsel %vm1356_vm15, %v6100_v50, %v1772_v49  ;;  %v7659_v30 = vcombine.high %v5784_v33, %v5784_v33  ;;  %v6198_v38 = vrot.slane %v5815_v54, %v5773_v16 }
 0x107   : > { %v6188_v37 = vrot.slane %v645_v44, %v5765_v8  ;;  %v2060_v40 = vsel %vm1292_vm2, %v6113_v2, %v1916_v42  ;;  %5306 = vmatprep.subr.mxu0 %v5632_v6  ;;  %v6202_v53 = vrot.slane %v6181_v62, %v5773_v16  ;;  %v6206_v50 = vrot.slane %v6177_v3, %v5773_v16 }
 0x108   : > { %v1063_v10 = vrot.slane %v7659_v30, %v5765_v8  ;;  %v647_v2 = vcombine.high %v645_v44, %v645_v44  ;;  %v751_v1 = vcombine.high %v5797_v43, %v5797_v43  ;;  %v7660_v24 = vcombine.high %v5893_v34, %v5893_v34 }
 0x109   : > { %v6213_v33 = vrot.slane %v6188_v37, %v5773_v16  ;;  %5302 = vmatpush3.xpose.msk.msra.mxu1 %vm2129_vm9, %v2060_v40  ;;  %5293 = vmatmul.mubr.msk.f32.vlgmr.msra.gmra.mxu0 %vm2129_vm9, %v6063_v48  ;;  %v7661_v58 = vcombine.high %v5800_v45, %v5800_v45  ;;  %v677_v4 = vcombine.high %v6188_v37, %v6188_v37 }
 0x10a   : > { %v6209_v20 = vrot.slane %v1063_v10, %v5765_v8  ;;  %v6224_v39 = vrot.slane %v7660_v24, %v5765_v8  ;;  %v1065_v28 = vcombine.high %v1063_v10, %v1063_v10  ;;  %5317 = vmatprep.subr.mxu1 %v5632_v6  ;;  %v6236_v36 = vrot.slane %v647_v2, %v5765_v8 }
 0x10b   : > { %v6230_v60 = vrot.slane %v7661_v58, %v5765_v8  ;;  %v6239_v55 = vrot.slane %v751_v1, %v5765_v8  ;;  %5314 = vmatprep.mubr.msk.f32.mxu0 %vm5633_vm0, %v5632_v6  ;;  %v781_v46 = vcombine.high %v6177_v3, %v6177_v3 }
 0x10c   : > { %v1171_v43 = vrot.slane %v6209_v20, %v5773_v16  ;;  %v6244_v34 = vrot.slane %v1065_v28, %v5765_v8  ;;  %v6252_v7 = vrot.slane %v6224_v39, %v5773_v16  ;;  %5304 = vmatmul.mubr.msk.f32.vlgmr.msra.gmra.mxu1 %vm2129_vm9, %v6063_v48  ;;  %v6265_v13 = vrot.slane %v6236_v36, %v5773_v16 }
 0x10d   : > { %v6248_v45 = vrot.slane %v6230_v60, %v5773_v16  ;;  %v6261_v14 = vrot.slane %v6239_v55, %v5773_v16  ;;  %5325 = vmatprep.mubr.msk.f32.mxu1 %vm5633_vm0, %v5632_v6  ;;  %v991_v37 = vcombine.high %v6230_v60, %v6230_v60 }
 0x10e   : > { %v1235_v35 = vsub.s32 %v5770_v15, %v1171_v43  ;;  %v1234_v31 = vsub.s32 %v5776_v17, %v1171_v43  ;;  %v1175_v19 = vrot.slane %v6244_v34, %v5773_v16  ;;  %v1233_v26 = vsub.s32 %v5779_v21, %v1171_v43 }
 0x10f   : > { %v6272_v32 = vsub.s32 %v5760_v56, %v1171_v43 }
 0x110   : > { %vm1299_vm3 = vcmp.eq.s32.totalorder %v1235_v35, 0  ;;  %vm1363_vm4 = vcmp.eq.s32.totalorder %v1235_v35, 1  ;;  %vm1427_vm5 = vcmp.eq.s32.totalorder %v1235_v35, 3  ;;  %vm1491_vm6 = vcmp.eq.s32.totalorder %v1235_v35, 4 }
 0x111   : > { %v1635_v27 = vsel %vm1491_vm6, %v6198_v38, 0.0  ;;  %v1239_v12 = vsub.s32 %v5770_v15, %v1175_v19  ;;  %vm1298_vm7 = vcmp.eq.s32.totalorder %v1234_v31, 0  ;;  %vm1362_vm8 = vcmp.eq.s32.totalorder %v1234_v31, 1 }
 0x112   : > { %v1779_v25 = vsel %vm1427_vm5, %v6202_v53, %v1635_v27  ;;  %vm1426_vm10 = vcmp.eq.s32.totalorder %v1234_v31, 3  ;;  %vm1490_vm11 = vcmp.eq.s32.totalorder %v1234_v31, 4  ;;  %v1238_v52 = vsub.s32 %v5776_v17, %v1175_v19 }
 0x113   : > { %v1923_v47 = vsel %vm1363_vm4, %v6206_v50, %v1779_v25  ;;  %vm1303_vm12 = vcmp.eq.s32.totalorder %v1239_v12, 0  ;;  %vm1367_vm13 = vcmp.eq.s32.totalorder %v1239_v12, 1  ;;  %vm1431_vm15 = vcmp.eq.s32.totalorder %v1239_v12, 3 }
 0x114   : > { %v2067_v29 = vsel %vm1299_vm3, %v6213_v33, %v1923_v47  ;;  %vm1495_vm1 = vcmp.eq.s32.totalorder %v1239_v12, 4  ;;  %v1634_v44 = vsel %vm1490_vm11, %v6198_v38, 0.0  ;;  %vm1302_vm14 = vcmp.eq.s32.totalorder %v1238_v52, 0 }
 0x115   : > { %5307 = vmatpush3.xpose.msk.msra.mxu0 %vm2129_vm9, %v2067_v29  ;;  %v1639_v0 = vsel %vm1495_vm1, %v6248_v45, 0.0  ;;  %v1778_v49 = vsel %vm1426_vm10, %v6202_v53, %v1634_v44  ;;  %vm1366_vm2 = vcmp.eq.s32.totalorder %v1238_v52, 1  ;;  %vm1430_vm5 = vcmp.eq.s32.totalorder %v1238_v52, 3 }
 0x116   : > { %v1783_v42 = vsel %vm1431_vm15, %v6252_v7, %v1639_v0  ;;  %5308 = vmatprep.subr.mxu0 %v5632_v6  ;;  %v1922_v30 = vsel %vm1362_vm8, %v6206_v50, %v1778_v49  ;;  %vm1494_vm3 = vcmp.eq.s32.totalorder %v1238_v52, 4  ;;  %vm1297_vm4 = vcmp.eq.s32.totalorder %v1233_v26, 0 }
 0x117   : > { %v1927_v10 = vsel %vm1367_vm13, %v6261_v14, %v1783_v42  ;;  %v2066_v40 = vsel %vm1298_vm7, %v6213_v33, %v1922_v30  ;;  %v1638_v2 = vsel %vm1494_vm3, %v6248_v45, 0.0  ;;  %vm1361_vm6 = vcmp.eq.s32.totalorder %v1233_v26, 1 }
 0x118   : > { %v2071_v1 = vsel %vm1303_vm12, %v6265_v13, %v1927_v10  ;;  %v1782_v24 = vsel %vm1430_vm5, %v6252_v7, %v1638_v2  ;;  %vm1425_vm10 = vcmp.eq.s32.totalorder %v1233_v26, 3  ;;  %vm1489_vm11 = vcmp.eq.s32.totalorder %v1233_v26, 4 }
 0x119   : > { %5318 = vmatpush3.xpose.msk.msra.mxu1 %vm2129_vm9, %v2071_v1  ;;  %5309 = vmatpush3.xpose.msk.msra.mxu0 %vm2129_vm9, %v2066_v40  ;;  %v1926_v58 = vsel %vm1366_vm2, %v6261_v14, %v1782_v24  ;;  %v1633_v28 = vsel %vm1489_vm11, %v6198_v38, 0.0  ;;  %v1237_v43 = vsub.s32 %v5779_v21, %v1175_v19  ;;  %vm1296_vm7 = vcmp.eq.s32.totalorder %v6272_v32, 0  ;;  %v6416_v24 = vld [vmem:[%s5736_s21 + $0x8] sm:$0xff] }
 0x11a   : > { %5319 = vmatprep.subr.mxu1 %v5632_v6  ;;  %v2070_v35 = vsel %vm1302_vm14, %v6265_v13, %v1926_v58  ;;  %5310 = vmatprep.subr.mxu0 %v5632_v6  ;;  %v1777_v31 = vsel %vm1425_vm10, %v6202_v53, %v1633_v28  ;;  %vm1360_vm8 = vcmp.eq.s32.totalorder %v6272_v32, 1  ;;  %vm1424_vm12 = vcmp.eq.s32.totalorder %v6272_v32, 3 }
 0x11b   : > { %v1921_v27 = vsel %vm1361_vm6, %v6206_v50, %v1777_v31  ;;  %vm1301_vm13 = vcmp.eq.s32.totalorder %v1237_v43, 0  ;;  %vm1365_vm15 = vcmp.eq.s32.totalorder %v1237_v43, 1  ;;  %vm1429_vm1 = vcmp.eq.s32.totalorder %v1237_v43, 3 }
 0x11c   : > { %v2065_v12 = vsel %vm1297_vm4, %v6213_v33, %v1921_v27  ;;  %vm1493_vm2 = vcmp.eq.s32.totalorder %v1237_v43, 4  ;;  %vm1488_vm14 = vcmp.eq.s32.totalorder %v6272_v32, 4  ;;  %v1236_v25 = vsub.s32 %v5760_v56, %v1175_v19 }
 0x11d   : > { %5320 = vmatpush3.xpose.msk.msra.mxu1 %vm2129_vm9, %v2070_v35  ;;  %5311 = vmatpush3.xpose.msk.msra.mxu0 %vm2129_vm9, %v2065_v12  ;;  %v1637_v52 = vsel %vm1493_vm2, %v6248_v45, 0.0  ;;  %v1632_v47 = vsel %vm1488_vm14, %v6198_v38, 0.0  ;;  %v885_v29 = vcombine.high %v6181_v62, %v6181_v62  ;;  %v989_v26 = vcombine.high %v5815_v54, %v5815_v54 }
 0x11e   : > { %5321 = vmatprep.subr.mxu1 %v5632_v6  ;;  %v1781_v44 = vsel %vm1429_vm1, %v6252_v7, %v1637_v52  ;;  %5312 = vmatprep.subr.mxu0 %v5632_v6  ;;  %v1776_v19 = vsel %vm1424_vm12, %v6202_v53, %v1632_v47  ;;  %vm1300_vm5 = vcmp.eq.s32.totalorder %v1236_v25, 0  ;;  %vm1364_vm3 = vcmp.eq.s32.totalorder %v1236_v25, 1  ;;  %v6440_v47 = vld [vmem:[%s5736_s21] sm:$0xff] }
 0x11f   : > { %v1925_v38 = vsel %vm1365_vm15, %v6261_v14, %v1781_v44  ;;  %v1920_v62 = vsel %vm1360_vm8, %v6206_v50, %v1776_v19  ;;  %vm1428_vm4 = vcmp.eq.s32.totalorder %v1236_v25, 3  ;;  %vm1492_vm6 = vcmp.eq.s32.totalorder %v1236_v25, 4 }
 0x120   : > { %v2069_v54 = vsel %vm1301_vm13, %v6265_v13, %v1925_v38  ;;  %v2064_v0 = vsel %vm1296_vm7, %v6213_v33, %v1920_v62  ;;  %v1636_v53 = vsel %vm1492_vm6, %v6248_v45, 0.0  ;;  %v1095_v49 = vcombine.high %v6209_v20, %v6209_v20 }
 0x121   : > { %5322 = vmatpush3.xpose.msk.msra.mxu1 %vm2129_vm9, %v2069_v54  ;;  %5313 = vmatpush3.xpose.msk.msra.mxu0 %vm2129_vm9, %v2064_v0  ;;  %v1780_v50 = vsel %vm1428_vm4, %v6252_v7, %v1636_v53  ;;  %v6352_v42 = vrot.slane %v989_v26, %v5773_v16  ;;  %v6355_v30 = vrot.slane %v885_v29, %v5773_v16  ;;  %v5635_v40 = vmov 3  }
 0x122   : > { %5323 = vmatprep.subr.mxu1 %v5632_v6  ;;  %v1924_v33 = vsel %vm1364_vm3, %v6261_v14, %v1780_v50  ;;  %5328 = vmatprep.subr.mxu0 %v5632_v6  ;;  %v6361_v20 = vrot.slane %v1095_v49, %v5773_v16  ;;  %v6367_v45 = vrot.slane %v781_v46, %v5773_v16  ;;  %v5636_v58 = vmov 2  }
 0x123   : > { %v2068_v7 = vsel %vm1300_vm5, %v6265_v13, %v1924_v33  ;;  %v6375_v32 = vrot.slane %v677_v4, %v5773_v16  ;;  %v679_v14 = vcombine.high %v6236_v36, %v6236_v36  ;;  %v783_v10 = vcombine.high %v6239_v55, %v6239_v55  ;;  %5559 = vset.pattern.permute.xlu1 %v5635_v40 }
 0x124   : > { %5315 = vmatmul.mubr.msk.f32.vlgmr.msra.gmra.mxu0 %vm2129_vm9, %v6063_v48  ;;  %v1243_v3 = vsub.s32 %v5770_v15, %v6361_v20  ;;  %v887_v13 = vcombine.high %v6224_v39, %v6224_v39  ;;  %v1097_v36 = vcombine.high %v6244_v34, %v6244_v34  ;;  %v1242_v46 = vsub.s32 %v5776_v17, %v6361_v20 }
 0x125   : > { %5324 = vmatpush3.xpose.msk.msra.mxu1 %vm2129_vm9, %v2068_v7  ;;  %v6393_v55 = vrot.slane %v783_v10, %v5773_v16  ;;  %v6396_v4 = vrot.slane %v679_v14, %v5773_v16  ;;  %v6402_v39 = vsub.s32 %v5779_v21, %v6361_v20  ;;  %5336 = vmatprep.mubr.msk.f32.mxu0 %vm5633_vm0, %v5632_v6 }
 0x126   : > { %vm1307_vm10 = vcmp.eq.s32.totalorder %v1243_v3, 0  ;;  %vm1371_vm11 = vcmp.eq.s32.totalorder %v1243_v3, 1  ;;  %vm1435_vm7 = vcmp.eq.s32.totalorder %v1243_v3, 3  ;;  %vm1499_vm8 = vcmp.eq.s32.totalorder %v1243_v3, 4  ;;  %5339 = vmatprep.subr.mxu1 %v5632_v6  ;;  %4187 = vperm.xlu1 %5559, %v6416_v24  }
 0x127   : > { %v1643_v60 = vsel %vm1499_vm8, %v6352_v42, 0.0  ;;  %v1183_v34 = vrot.slane %v1097_v36, %v5773_v16  ;;  %v6410_v2 = vrot.slane %v991_v37, %v5773_v16  ;;  %v6413_v1 = vrot.slane %v887_v13, %v5773_v16  ;;  %5558 = vset.pattern.permute.xlu0 %v5636_v58 }
 0x128   : > { %v1787_v28 = vsel %vm1435_vm7, %v6355_v30, %v1643_v60  ;;  %5326 = vmatmul.mubr.msk.f32.vlgmr.msra.gmra.mxu1 %vm2129_vm9, %v6063_v48  ;;  %vm1306_vm12 = vcmp.eq.s32.totalorder %v1242_v46, 0  ;;  %vm1370_vm13 = vcmp.eq.s32.totalorder %v1242_v46, 1  ;;  %vm1434_vm15 = vcmp.eq.s32.totalorder %v1242_v46, 3  ;;  %3975 = vperm.xlu0 %5558, %v6416_v24  }
 0x129   : > { %v1931_v43 = vsel %vm1371_vm11, %v6367_v45, %v1787_v28  ;;  %v1247_v35 = vsub.s32 %v5770_v15, %v1183_v34  ;;  %vm1498_vm1 = vcmp.eq.s32.totalorder %v1242_v46, 4  ;;  %v1246_v31 = vsub.s32 %v5776_v17, %v1183_v34  ;;  %5347 = vmatprep.mubr.msk.f32.mxu1 %vm5633_vm0, %v5632_v6 }
 0x12a   : > { %v2075_v27 = vsel %vm1307_vm10, %v6375_v32, %v1931_v43  ;;  %v1642_v12 = vsel %vm1498_vm1, %v6352_v42, 0.0  ;;  %vm1305_vm2 = vcmp.eq.s32.totalorder %v6402_v39, 0  ;;  %vm1369_vm14 = vcmp.eq.s32.totalorder %v6402_v39, 1  ;;  %5560 = vset.pattern.permute.xlu1 %v5636_v58 }
 0x12b   : > { %5329 = vmatpush3.xpose.msk.msra.mxu0 %vm2129_vm9, %v2075_v27  ;;  %vm1311_vm5 = vcmp.eq.s32.totalorder %v1247_v35, 0  ;;  %vm1375_vm3 = vcmp.eq.s32.totalorder %v1247_v35, 1  ;;  %vm1439_vm4 = vcmp.eq.s32.totalorder %v1247_v35, 3  ;;  %vm1503_vm6 = vcmp.eq.s32.totalorder %v1247_v35, 4  ;;  %3971 = vperm.xlu1 %5560, %v6440_v47  }
 0x12c   : > { %v1647_v25 = vsel %vm1503_vm6, %v6410_v2, 0.0  ;;  %5330 = vmatprep.subr.mxu0 %v5632_v6  ;;  %v1786_v52 = vsel %vm1434_vm15, %v6355_v30, %v1642_v12  ;;  %vm1310_vm10 = vcmp.eq.s32.totalorder %v1246_v31, 0  ;;  %vm1374_vm11 = vcmp.eq.s32.totalorder %v1246_v31, 1  ;;  %5561 = vset.pattern.permute.xlu0 %v5635_v40 }
 0x12d   : > { %v1791_v29 = vsel %vm1439_vm4, %v6413_v1, %v1647_v25  ;;  %v1930_v26 = vsel %vm1370_vm13, %v6367_v45, %v1786_v52  ;;  %vm1438_vm7 = vcmp.eq.s32.totalorder %v1246_v31, 3  ;;  %vm1502_vm8 = vcmp.eq.s32.totalorder %v1246_v31, 4  ;;  %4183 = vperm.xlu0 %5561, %v6440_v47  }
 0x12e   : > { %v1935_v44 = vsel %vm1375_vm3, %v6393_v55, %v1791_v29  ;;  %v2074_v19 = vsel %vm1306_vm12, %v6375_v32, %v1930_v26  ;;  %v1646_v38 = vsel %vm1502_vm8, %v6410_v2, 0.0  ;;  %vm1433_vm15 = vcmp.eq.s32.totalorder %v6402_v39, 3 }
 0x12f   : > { %v2079_v62 = vsel %vm1311_vm5, %v6396_v4, %v1935_v44  ;;  %5331 = vmatpush3.xpose.msk.msra.mxu0 %vm2129_vm9, %v2074_v19  ;;  %v1790_v54 = vsel %vm1438_vm7, %v6413_v1, %v1646_v38  ;;  %vm1497_vm13 = vcmp.eq.s32.totalorder %v6402_v39, 4  ;;  %v1245_v0 = vsub.s32 %v5779_v21, %v1183_v34 }
 0x130   : > { %5340 = vmatpush3.xpose.msk.msra.mxu1 %vm2129_vm9, %v2079_v62  ;;  %v1934_v53 = vsel %vm1374_vm11, %v6393_v55, %v1790_v54  ;;  %5332 = vmatprep.subr.mxu0 %v5632_v6  ;;  %v1641_v49 = vsel %vm1497_vm13, %v6352_v42, 0.0  ;;  %v1240_v50 = vsub.s32 %v5760_v56, %v6361_v20  ;;  %v1244_v33 = vsub.s32 %v5760_v56, %v1183_v34 }
 0x131   : > { %5341 = vmatprep.subr.mxu1 %v5632_v6  ;;  %v2078_v7 = vsel %vm1310_vm10, %v6396_v4, %v1934_v53  ;;  %v1785_v14 = vsel %vm1433_vm15, %v6355_v30, %v1641_v49  ;;  %vm1309_vm12 = vcmp.eq.s32.totalorder %v1245_v0, 0  ;;  %vm1373_vm1 = vcmp.eq.s32.totalorder %v1245_v0, 1 }
 0x132   : > { %v1929_v10 = vsel %vm1369_vm14, %v6367_v45, %v1785_v14  ;;  %vm1437_vm5 = vcmp.eq.s32.totalorder %v1245_v0, 3  ;;  %vm1501_vm3 = vcmp.eq.s32.totalorder %v1245_v0, 4  ;;  %vm1304_vm4 = vcmp.eq.s32.totalorder %v1240_v50, 0 }
 0x133   : > { %v2073_v20 = vsel %vm1305_vm2, %v6375_v32, %v1929_v10  ;;  %v1645_v40 = vsel %vm1501_vm3, %v6410_v2, 0.0  ;;  %vm1368_vm6 = vcmp.eq.s32.totalorder %v1240_v50, 1  ;;  %vm1432_vm11 = vcmp.eq.s32.totalorder %v1240_v50, 3 }
 0x134   : > { %5342 = vmatpush3.xpose.msk.msra.mxu1 %vm2129_vm9, %v2078_v7  ;;  %5333 = vmatpush3.xpose.msk.msra.mxu0 %vm2129_vm9, %v2073_v20  ;;  %v1789_v3 = vsel %vm1437_vm5, %v6413_v1, %v1645_v40  ;;  %vm1496_vm10 = vcmp.eq.s32.totalorder %v1240_v50, 4  ;;  %vm1308_vm7 = vcmp.eq.s32.totalorder %v1244_v33, 0  ;;  %vm1372_vm14 = vcmp.eq.s32.totalorder %v1244_v33, 1 }
 0x135   : > { %5343 = vmatprep.subr.mxu1 %v5632_v6  ;;  %v1933_v13 = vsel %vm1373_vm1, %v6393_v55, %v1789_v3  ;;  %5334 = vmatprep.subr.mxu0 %v5632_v6  ;;  %v1640_v37 = vsel %vm1496_vm10, %v6352_v42, 0.0  ;;  %vm1436_vm2 = vcmp.eq.s32.totalorder %v1244_v33, 3  ;;  %vm1500_vm8 = vcmp.eq.s32.totalorder %v1244_v33, 4 }
 0x136   : > { %v2077_v36 = vsel %vm1309_vm12, %v6396_v4, %v1933_v13  ;;  %v1784_v46 = vsel %vm1432_vm11, %v6355_v30, %v1640_v37  ;;  %v1644_v39 = vsel %vm1500_vm8, %v6410_v2, 0.0  ;;  %v6492_v60 = vrot.slane %v5825_v59, %v5765_v8 }
 0x137   : > { %v1928_v34 = vsel %vm1368_vm6, %v6367_v45, %v1784_v46  ;;  %v1788_v58 = vsel %vm1436_vm2, %v6413_v1, %v1644_v39  ;;  %v6499_v42 = vrot.slane %v5820_v57, %v5765_v8  ;;  %v1105_v28 = vrot.slane %v5790_v41, %v5765_v8 }
 0x138   : > { %5344 = vmatpush3.xpose.msk.msra.mxu1 %vm2129_vm9, %v2077_v36  ;;  %v2072_v30 = vsel %vm1304_vm4, %v6375_v32, %v1928_v34  ;;  %v1932_v2 = vsel %vm1372_vm14, %v6393_v55, %v1788_v58  ;;  %v6510_v45 = vrot.slane %v5848_v11, %v5773_v16  ;;  %v6514_v1 = vrot.slane %v5860_v18, %v5773_v16 }
 0x139   : > { %5335 = vmatpush3.xpose.msk.msra.mxu0 %vm2129_vm9, %v2072_v30  ;;  %5345 = vmatprep.subr.mxu1 %v5632_v6  ;;  %v2076_v43 = vsel %vm1308_vm7, %v6396_v4, %v1932_v2  ;;  %v6521_v32 = vrot.slane %v1105_v28, %v5765_v8  ;;  %v6525_v55 = vrot.slane %v6499_v42, %v5773_v16  ;;  %v5638_v46 = vmov 5  }
 0x13a   : > { %5350 = vmatprep.subr.mxu0 %v5632_v6  ;;  %v6530_v35 = vrot.slane %v6492_v60, %v5773_v16  ;;  %v695_v31 = vcombine.high %v5825_v59, %v5825_v59  ;;  %v7662_v4 = vcombine.high %v5820_v57, %v5820_v57  ;;  %v7663_v12 = vcombine.high %v5828_v61, %v5828_v61 }
 0x13b   : > { %v1187_v52 = vrot.slane %v6521_v32, %v5773_v16  ;;  %v1113_v29 = vcombine.high %v1105_v28, %v1105_v28  ;;  %v6550_v26 = vrot.slane %v5871_v23, %v5773_v16  ;;  %v725_v59 = vcombine.high %v6492_v60, %v6492_v60 }
 0x13c   : > { %v6538_v27 = vrot.slane %v7662_v4, %v5765_v8  ;;  %v6544_v25 = vrot.slane %v7663_v12, %v5765_v8  ;;  %v5637_v57 = vmov 4   ;;  %5346 = vmatpush3.xpose.msk.msra.mxu1 %vm2129_vm9, %v2076_v43  ;;  %5337 = vmatmul.mubr.msk.f32.vlgmr.msra.gmra.mxu0 %vm2129_vm9, %v6063_v48  ;;  %v6558_v61 = vrot.slane %v695_v31, %v5765_v8 }
 0x13d   : > { %5562 = vset.pattern.permute.xlu1 %v5637_v57  ;;  %v1251_v38 = vsub.s32 %v5770_v15, %v1187_v52  ;;  %5361 = vmatprep.subr.mxu1 %v5632_v6  ;;  %v6571_v62 = vrot.slane %v1113_v29, %v5765_v8  ;;  %v1250_v54 = vsub.s32 %v5776_v17, %v1187_v52 }
 0x13e   : > { %v6562_v44 = vrot.slane %v6544_v25, %v5773_v16  ;;  %v6566_v19 = vrot.slane %v6538_v27, %v5773_v16  ;;  %v6575_v0 = vsub.s32 %v5779_v21, %v1187_v52  ;;  %v6579_v53 = vrot.slane %v6558_v61, %v5773_v16  ;;  %5358 = vmatprep.mubr.msk.f32.mxu0 %vm5633_vm0, %v5632_v6 }
 0x13f   : > { %v6582_v49 = vsub.s32 %v5760_v56, %v1187_v52  ;;  %v829_v50 = vcombine.high %v6499_v42, %v6499_v42  ;;  %v933_v33 = vcombine.high %v5860_v18, %v5860_v18  ;;  %vm1315_vm15 = vcmp.eq.s32.totalorder %v1251_v38, 0  ;;  %5348 = vmatmul.mubr.msk.f32.vlgmr.msra.gmra.mxu1 %vm2129_vm9, %v6063_v48  ;;  %4399 = vperm.xlu1 %5562, %v6416_v24  }
 0x140   : > { %vm1379_vm13 = vcmp.eq.s32.totalorder %v1251_v38, 1  ;;  %vm1443_vm12 = vcmp.eq.s32.totalorder %v1251_v38, 3  ;;  %vm1507_vm1 = vcmp.eq.s32.totalorder %v1251_v38, 4  ;;  %v6596_v14 = vrot.slane %v6571_v62, %v5773_v16  ;;  %5369 = vmatprep.mubr.msk.f32.mxu1 %vm5633_vm0, %v5632_v6  ;;  %5564 = vset.pattern.permute.xlu0 %v5637_v57 }
 0x141   : > { %v1651_v7 = vsel %vm1507_vm1, %v6510_v45, 0.0  ;;  %vm1314_vm5 = vcmp.eq.s32.totalorder %v1250_v54, 0  ;;  %vm1378_vm3 = vcmp.eq.s32.totalorder %v1250_v54, 1  ;;  %vm1442_vm4 = vcmp.eq.s32.totalorder %v1250_v54, 3  ;;  %4395 = vperm.xlu0 %5564, %v6440_v47  }
 0x142   : > { %v1795_v10 = vsel %vm1443_vm12, %v6514_v1, %v1651_v7  ;;  %vm1506_vm6 = vcmp.eq.s32.totalorder %v1250_v54, 4  ;;  %vm1313_vm11 = vcmp.eq.s32.totalorder %v6575_v0, 0  ;;  %v1255_v40 = vsub.s32 %v5770_v15, %v6596_v14 }
 0x143   : > { %v1939_v20 = vsel %vm1379_vm13, %v6525_v55, %v1795_v10  ;;  %v1650_v3 = vsel %vm1506_vm6, %v6510_v45, 0.0  ;;  %v1254_v13 = vsub.s32 %v5776_v17, %v6596_v14  ;;  %vm1377_vm10 = vcmp.eq.s32.totalorder %v6575_v0, 1  ;;  %5563 = vset.pattern.permute.xlu1 %v5638_v46 }
 0x144   : > { %v2083_v37 = vsel %vm1315_vm15, %v6530_v35, %v1939_v20  ;;  %v1794_v36 = vsel %vm1442_vm4, %v6514_v1, %v1650_v3  ;;  %vm1441_vm7 = vcmp.eq.s32.totalorder %v6575_v0, 3  ;;  %vm1319_vm14 = vcmp.eq.s32.totalorder %v1255_v40, 0  ;;  %4611 = vperm.xlu1 %5563, %v6416_v24  }
 0x145   : > { %5351 = vmatpush3.xpose.msk.msra.mxu0 %vm2129_vm9, %v2083_v37  ;;  %vm1383_vm2 = vcmp.eq.s32.totalorder %v1255_v40, 1  ;;  %vm1447_vm8 = vcmp.eq.s32.totalorder %v1255_v40, 3  ;;  %vm1511_vm13 = vcmp.eq.s32.totalorder %v1255_v40, 4  ;;  %v1938_v34 = vsel %vm1378_vm3, %v6525_v55, %v1794_v36  ;;  %5565 = vset.pattern.permute.xlu0 %v5638_v46 }
 0x146   : > { %v1655_v39 = vsel %vm1511_vm13, %v6550_v26, 0.0  ;;  %5352 = vmatprep.subr.mxu0 %v5632_v6  ;;  %vm1318_vm15 = vcmp.eq.s32.totalorder %v1254_v13, 0  ;;  %vm1382_vm12 = vcmp.eq.s32.totalorder %v1254_v13, 1  ;;  %v2082_v28 = vsel %vm1314_vm5, %v6530_v35, %v1938_v34  ;;  %v6790_v34 = vld [vmem:[%s6039_s16] sm:$0x7f] }
 0x147   : > { %v1799_v58 = vsel %vm1447_vm8, %v6562_v44, %v1655_v39  ;;  %vm1446_vm1 = vcmp.eq.s32.totalorder %v1254_v13, 3  ;;  %vm1510_vm4 = vcmp.eq.s32.totalorder %v1254_v13, 4  ;;  %vm1505_vm6 = vcmp.eq.s32.totalorder %v6575_v0, 4 }
 0x148   : > { %v1943_v30 = vsel %vm1383_vm2, %v6566_v19, %v1799_v58  ;;  %v1654_v24 = vsel %vm1510_vm4, %v6550_v26, 0.0  ;;  %v1253_v2 = vsub.s32 %v5779_v21, %v6596_v14  ;;  %v1649_v4 = vsel %vm1505_vm6, %v6510_v45, 0.0  ;;  %4607 = vperm.xlu1 %5563, %v6440_v47  }
 0x149   : > { %v2087_v43 = vsel %vm1319_vm14, %v6579_v53, %v1943_v30  ;;  %5353 = vmatpush3.xpose.msk.msra.mxu0 %vm2129_vm9, %v2082_v28  ;;  %v1798_v31 = vsel %vm1446_vm1, %v6562_v44, %v1654_v24  ;;  %vm1312_vm5 = vcmp.eq.s32.totalorder %v6582_v49, 0  ;;  %v1793_v52 = vsel %vm1441_vm7, %v6514_v1, %v1649_v4 }
 0x14a   : > { %5362 = vmatpush3.xpose.msk.msra.mxu1 %vm2129_vm9, %v2087_v43  ;;  %v1942_v12 = vsel %vm1382_vm12, %v6566_v19, %v1798_v31  ;;  %5354 = vmatprep.subr.mxu0 %v5632_v6  ;;  %vm1317_vm3 = vcmp.eq.s32.totalorder %v1253_v2, 0  ;;  %vm1381_vm14 = vcmp.eq.s32.totalorder %v1253_v2, 1  ;;  %v1937_v47 = vsel %vm1377_vm10, %v6525_v55, %v1793_v52 }
 0x14b   : > { %5363 = vmatprep.subr.mxu1 %v5632_v6  ;;  %v2086_v29 = vsel %vm1318_vm15, %v6579_v53, %v1942_v12  ;;  %vm1445_vm2 = vcmp.eq.s32.totalorder %v1253_v2, 3  ;;  %vm1509_vm8 = vcmp.eq.s32.totalorder %v1253_v2, 4  ;;  %v2081_v57 = vsel %vm1313_vm11, %v6530_v35, %v1937_v47 }
 0x14c   : > { %v1653_v38 = vsel %vm1509_vm8, %v6550_v26, 0.0  ;;  %vm1376_vm7 = vcmp.eq.s32.totalorder %v6582_v49, 1  ;;  %vm1440_vm13 = vcmp.eq.s32.totalorder %v6582_v49, 3  ;;  %vm1504_vm15 = vcmp.eq.s32.totalorder %v6582_v49, 4 }
 0x14d   : > { %5355 = vmatpush3.xpose.msk.msra.mxu0 %vm2129_vm9, %v2081_v57  ;;  %v1797_v54 = vsel %vm1445_vm2, %v6562_v44, %v1653_v38  ;;  %v1252_v7 = vsub.s32 %v5760_v56, %v6596_v14  ;;  %v1143_v10 = vcombine.high %v6521_v32, %v6521_v32  ;;  %v1648_v20 = vsel %vm1504_vm15, %v6510_v45, 0.0 }
 0x14e   : > { %5364 = vmatpush3.xpose.msk.msra.mxu1 %vm2129_vm9, %v2086_v29  ;;  %v1941_v0 = vsel %vm1381_vm14, %v6566_v19, %v1797_v54  ;;  %5356 = vmatprep.subr.mxu0 %v5632_v6  ;;  %v7664_v40 = vcombine.high %v5848_v11, %v5848_v11  ;;  %v6677_v32 = vrot.slane %v933_v33, %v5773_v16  ;;  %vm7651_vm4 = vcmask 243712  }
 0x14f   : > { %5365 = vmatprep.subr.mxu1 %v5632_v6  ;;  %v2085_v14 = vsel %vm1317_vm3, %v6579_v53, %v1941_v0  ;;  %v1792_v13 = vsel %vm1440_vm13, %v6514_v1, %v1648_v20  ;;  %vm1316_vm11 = vcmp.eq.s32.totalorder %v1252_v7, 0  ;;  %vm1380_vm10 = vcmp.eq.s32.totalorder %v1252_v7, 1  ;;  %506 = vst.msk [vmem:[#allocation2] sm:$0x7f] %vm7651_vm4, %v5632_v6  ;;  %507 = vst.msk [vmem:[#allocation2 + $0x8] sm:$0x7f] %vm7651_vm4, %v5632_v6 }
 0x150   : > { %v6671_v3 = vrot.slane %v7664_v40, %v5773_v16  ;;  %v1936_v11 = vsel %vm1376_vm7, %v6525_v55, %v1792_v13  ;;  %vm1444_vm12 = vcmp.eq.s32.totalorder %v1252_v7, 3  ;;  %vm1508_vm1 = vcmp.eq.s32.totalorder %v1252_v7, 4  ;;  %508 = vst.msk [vmem:[#allocation2 + $0x10] sm:$0x7f] %vm7651_vm4, %v5632_v6  ;;  %509 = vst.msk [vmem:[#allocation2 + $0x18] sm:$0x7f] %vm7651_vm4, %v5632_v6 }
 0x151   : > { %v6687_v45 = vrot.slane %v1143_v10, %v5773_v16  ;;  %v2080_v18 = vsel %vm1312_vm5, %v6530_v35, %v1936_v11  ;;  %v1652_v33 = vsel %vm1508_vm1, %v6550_v26, 0.0  ;;  %v6697_v1 = vrot.slane %v829_v50, %v5773_v16  ;;  %510 = vst.msk [vmem:[#allocation2 + $0x20] sm:$0x7f] %vm7651_vm4, %v5632_v6  ;;  %511 = vst.msk [vmem:[#allocation2 + $0x28] sm:$0x7f] %vm7651_vm4, %v5632_v6 }
 0x152   : > { %v6703_v55 = vrot.slane %v725_v59, %v5773_v16  ;;  %5366 = vmatpush3.xpose.msk.msra.mxu1 %vm2129_vm9, %v2085_v14  ;;  %5357 = vmatpush3.xpose.msk.msra.mxu0 %vm2129_vm9, %v2080_v18  ;;  %v1796_v35 = vsel %vm1444_vm12, %v6562_v44, %v1652_v33  ;;  %v727_v42 = vcombine.high %v6558_v61, %v6558_v61 }
 0x153   : > { %v1259_v26 = vsub.s32 %v5770_v15, %v6687_v45  ;;  %5367 = vmatprep.subr.mxu1 %v5632_v6  ;;  %v1940_v60 = vsel %vm1380_vm10, %v6566_v19, %v1796_v35  ;;  %5372 = vmatprep.subr.mxu0 %v5632_v6  ;;  %v831_v59 = vcombine.high %v6538_v27, %v6538_v27 }
 0x154   : > { %v935_v44 = vcombine.high %v6544_v25, %v6544_v25  ;;  %512 = vst.msk [vmem:[#allocation2 + $0x30] sm:$0x7f] %vm7651_vm4, %v5632_v6  ;;  %513 = vst.msk [vmem:[#allocation2 + $0x38] sm:$0x7f] %vm7651_vm4, %v5632_v6  ;;  %v2084_v27 = vsel %vm1316_vm11, %v6579_v53, %v1940_v60  ;;  %v1039_v25 = vcombine.high %v5871_v23, %v5871_v23 }
 0x155   : > { %514 = vst.msk [vmem:[#allocation2 + $0x40] sm:$0x7f] %vm7651_vm4, %v5632_v6  ;;  %515 = vst.msk [vmem:[#allocation2 + $0x48] sm:$0x7f] %vm7651_vm4, %v5632_v6  ;;  %vm1323_vm6 = vcmp.eq.s32.totalorder %v1259_v26, 0  ;;  %vm1387_vm5 = vcmp.eq.s32.totalorder %v1259_v26, 1  ;;  %5359 = vmatmul.mubr.msk.f32.vlgmr.msra.gmra.mxu0 %vm2129_vm9, %v6063_v48  ;;  %v1145_v61 = vcombine.high %v6571_v62, %v6571_v62  ;;  %v6766_v49 = vrot.slane %v831_v59, %v5773_v16 }
 0x156   : > { %516 = vst.msk [vmem:[#allocation2 + $0x50] sm:$0x7f] %vm7651_vm4, %v5632_v6  ;;  %517 = vst.msk [vmem:[#allocation2 + $0x58] sm:$0x7f] %vm7651_vm4, %v5632_v6  ;;  %vm1451_vm3 = vcmp.eq.s32.totalorder %v1259_v26, 3  ;;  %vm1515_vm14 = vcmp.eq.s32.totalorder %v1259_v26, 4  ;;  %v6761_v19 = vrot.slane %v935_v44, %v5773_v16  ;;  %5368 = vmatpush3.xpose.msk.msra.mxu1 %vm2129_vm9, %v2084_v27  ;;  %v6769_v48 = vrot.slane %v727_v42, %v5773_v16 }
 0x157   : > { %518 = vst.msk [vmem:[#allocation2 + $0x60] sm:$0x7f] %vm7651_vm4, %v5632_v6  ;;  %519 = vst.msk [vmem:[#allocation2 + $0x68] sm:$0x7f] %vm7651_vm4, %v5632_v6  ;;  %v1659_v53 = vsel %vm1515_vm14, %v6671_v3, 0.0  ;;  %v1258_v23 = vsub.s32 %v5776_v17, %v6687_v45  ;;  %5380 = vmatprep.mubr.msk.f32.mxu0 %vm5633_vm0, %v5632_v6  ;;  %5383 = vmatprep.subr.mxu1 %v5632_v6  ;;  %v6778_v50 = vrot.slane %v1145_v61, %v5773_v16 }
 0x158   : > { %520 = vst.msk [vmem:[#allocation2 + $0x70] sm:$0x7f] %vm7651_vm4, %v5632_v6  ;;  %521 = vst.msk [vmem:[#allocation2 + $0x78] sm:$0x7f] %vm7651_vm4, %v5632_v6  ;;  %v1803_v62 = vsel %vm1451_vm3, %v6677_v32, %v1659_v53  ;;  %v6781_v37 = vrot.slane %v1039_v25, %v5773_v16  ;;  %v1257_v36 = vsub.s32 %v5779_v21, %v6687_v45 }
 0x159   : > { %v1947_v46 = vsel %vm1387_vm5, %v6697_v1, %v1803_v62  ;;  %vm1322_vm2 = vcmp.eq.s32.totalorder %v1258_v23, 0  ;;  %vm1386_vm8 = vcmp.eq.s32.totalorder %v1258_v23, 1  ;;  %vm1450_vm7 = vcmp.eq.s32.totalorder %v1258_v23, 3  ;;  %5370 = vmatmul.mubr.msk.f32.vlgmr.msra.gmra.mxu1 %vm2129_vm9, %v6790_v34 }
 0x15a   : > { %v2091_v39 = vsel %vm1323_vm6, %v6703_v55, %v1947_v46  ;;  %v1263_v58 = vsub.s32 %v5770_v15, %v6778_v50  ;;  %vm1514_vm13 = vcmp.eq.s32.totalorder %v1258_v23, 4  ;;  %v1262_v28 = vsub.s32 %v5776_v17, %v6778_v50  ;;  %5391 = vmatprep.mubr.msk.f32.mxu1 %vm5633_vm0, %v5632_v6 }
 0x15b   : > { %5373 = vmatpush3.xpose.msk.msra.mxu0 %vm2129_vm9, %v2091_v39  ;;  %v1658_v30 = vsel %vm1514_vm13, %v6671_v3, 0.0  ;;  %vm1321_vm15 = vcmp.eq.s32.totalorder %v1257_v36, 0  ;;  %vm1385_vm11 = vcmp.eq.s32.totalorder %v1257_v36, 1  ;;  %vm1449_vm10 = vcmp.eq.s32.totalorder %v1257_v36, 3 }
 0x15c   : > { %vm1327_vm12 = vcmp.eq.s32.totalorder %v1263_v58, 0  ;;  %vm1391_vm1 = vcmp.eq.s32.totalorder %v1263_v58, 1  ;;  %vm1455_vm6 = vcmp.eq.s32.totalorder %v1263_v58, 3  ;;  %vm1519_vm5 = vcmp.eq.s32.totalorder %v1263_v58, 4  ;;  %5374 = vmatprep.subr.mxu0 %v5632_v6 }
 0x15d   : > { %v1663_v24 = vsel %vm1519_vm5, %v6781_v37, 0.0  ;;  %v1802_v2 = vsel %vm1450_vm7, %v6677_v32, %v1658_v30  ;;  %vm1326_vm3 = vcmp.eq.s32.totalorder %v1262_v28, 0  ;;  %vm1390_vm14 = vcmp.eq.s32.totalorder %v1262_v28, 1 }
 0x15e   : > { %v1807_v43 = vsel %vm1455_vm6, %v6761_v19, %v1663_v24  ;;  %v1946_v31 = vsel %vm1386_vm8, %v6697_v1, %v1802_v2  ;;  %vm1454_vm13 = vcmp.eq.s32.totalorder %v1262_v28, 3  ;;  %vm1518_vm4 = vcmp.eq.s32.totalorder %v1262_v28, 4 }
 0x15f   : > { %v1951_v4 = vsel %vm1391_vm1, %v6766_v49, %v1807_v43  ;;  %v2090_v12 = vsel %vm1322_vm2, %v6703_v55, %v1946_v31  ;;  %v1662_v52 = vsel %vm1518_vm4, %v6781_v37, 0.0  ;;  %vm1513_vm5 = vcmp.eq.s32.totalorder %v1257_v36, 4 }
 0x160   : > { %v2095_v29 = vsel %vm1327_vm12, %v6769_v48, %v1951_v4  ;;  %5375 = vmatpush3.xpose.msk.msra.mxu0 %vm2129_vm9, %v2090_v12  ;;  %v1806_v47 = vsel %vm1454_vm13, %v6761_v19, %v1662_v52  ;;  %v1657_v57 = vsel %vm1513_vm5, %v6671_v3, 0.0  ;;  %v1261_v38 = vsub.s32 %v5779_v21, %v6778_v50 }
 0x161   : > { %5384 = vmatpush3.xpose.msk.msra.mxu1 %vm2129_vm9, %v2095_v29  ;;  %v1950_v54 = vsel %vm1390_vm14, %v6766_v49, %v1806_v47  ;;  %5376 = vmatprep.subr.mxu0 %v5632_v6  ;;  %v1801_v7 = vsel %vm1449_vm10, %v6677_v32, %v1657_v57  ;;  %v1256_v10 = vsub.s32 %v5760_v56, %v6687_v45 }
 0x162   : > { %5385 = vmatprep.subr.mxu1 %v5632_v6  ;;  %v2094_v0 = vsel %vm1326_vm3, %v6769_v48, %v1950_v54  ;;  %v1945_v20 = vsel %vm1385_vm11, %v6697_v1, %v1801_v7  ;;  %vm1325_vm4 = vcmp.eq.s32.totalorder %v1261_v38, 0  ;;  %vm1389_vm2 = vcmp.eq.s32.totalorder %v1261_v38, 1 }
 0x163   : > { %v2089_v40 = vsel %vm1321_vm15, %v6703_v55, %v1945_v20  ;;  %vm1453_vm8 = vcmp.eq.s32.totalorder %v1261_v38, 3  ;;  %vm1517_vm7 = vcmp.eq.s32.totalorder %v1261_v38, 4  ;;  %vm1320_vm12 = vcmp.eq.s32.totalorder %v1256_v10, 0 }
 0x164   : > { %5377 = vmatpush3.xpose.msk.msra.mxu0 %vm2129_vm9, %v2089_v40  ;;  %v1661_v14 = vsel %vm1517_vm7, %v6781_v37, 0.0  ;;  %vm1384_vm10 = vcmp.eq.s32.totalorder %v1256_v10, 1  ;;  %vm1448_vm1 = vcmp.eq.s32.totalorder %v1256_v10, 3  ;;  %vm1512_vm6 = vcmp.eq.s32.totalorder %v1256_v10, 4 }
 0x165   : > { %5386 = vmatpush3.xpose.msk.msra.mxu1 %vm2129_vm9, %v2094_v0  ;;  %v1805_v13 = vsel %vm1453_vm8, %v6761_v19, %v1661_v14  ;;  %5378 = vmatprep.subr.mxu0 %v5632_v6  ;;  %v1656_v11 = vsel %vm1512_vm6, %v6671_v3, 0.0  ;;  %v1260_v45 = vsub.s32 %v5760_v56, %v6778_v50  ;;  %v7665_v18 = vcombine.high %v5809_v51, %v5809_v51 }
 0x166   : > { %5387 = vmatprep.subr.mxu1 %v5632_v6  ;;  %v1949_v35 = vsel %vm1389_vm2, %v6766_v49, %v1805_v13  ;;  %v1800_v26 = vsel %vm1448_vm1, %v6677_v32, %v1656_v11  ;;  %v814_v42 = vrot.slane %v5831_v63, %v5765_v8  ;;  %v918_v3 = vrot.slane %v5840_v5, %v5765_v8 }
 0x167   : > { %v694_v33 = vrot.slane %v7665_v18, %v5765_v8  ;;  %v2093_v60 = vsel %vm1325_vm4, %v6769_v48, %v1949_v35  ;;  %v1944_v59 = vsel %vm1384_vm10, %v6697_v1, %v1800_v26  ;;  %vm1324_vm15 = vcmp.eq.s32.totalorder %v1260_v45, 0 }
 0x168   : > { %vm1388_vm11 = vcmp.eq.s32.totalorder %v1260_v45, 1  ;;  %v2088_v51 = vsel %vm1320_vm12, %v6703_v55, %v1944_v59  ;;  %vm1452_vm3 = vcmp.eq.s32.totalorder %v1260_v45, 3  ;;  %vm1516_vm14 = vcmp.eq.s32.totalorder %v1260_v45, 4 }
 0x169   : > { %v6860_v32 = vrot.slane %v694_v33, %v5765_v8  ;;  %5388 = vmatpush3.xpose.msk.msra.mxu1 %vm2129_vm9, %v2093_v60  ;;  %5379 = vmatpush3.xpose.msk.msra.mxu0 %vm2129_vm9, %v2088_v51  ;;  %v1660_v44 = vsel %vm1516_vm14, %v6781_v37, 0.0  ;;  %v1098_v27 = vcombine.high %v5790_v41, %v5790_v41  ;;  %v6869_v1 = vrot.slane %v5868_v22, %v5773_v16 }
 0x16a   : > { %v6872_v55 = vrot.slane %v918_v3, %v5773_v16  ;;  %5389 = vmatprep.subr.mxu1 %v5632_v6  ;;  %v1804_v25 = vsel %vm1452_vm3, %v6761_v19, %v1660_v44  ;;  %5394 = vmatprep.subr.mxu0 %v5632_v6  ;;  %v6878_v61 = vrot.slane %v814_v42, %v5773_v16 }
 0x16b   : > { %v6882_v53 = vrot.slane %v6860_v32, %v5773_v16  ;;  %v1948_v41 = vsel %vm1388_vm11, %v6766_v49, %v1804_v25  ;;  %v1112_v23 = vrot.slane %v1098_v27, %v5765_v8  ;;  %v696_v62 = vcombine.high %v694_v33, %v694_v33 }
 0x16c   : > { %v800_v50 = vcombine.high %v5831_v63, %v5831_v63  ;;  %v2092_v19 = vsel %vm1324_vm15, %v6769_v48, %v1948_v41  ;;  %5381 = vmatmul.mubr.msk.f32.vlgmr.msra.gmra.mxu0 %vm2129_vm9, %v6790_v34  ;;  %v7666_v37 = vcombine.high %v5840_v5, %v5840_v5  ;;  %v7667_v49 = vcombine.high %v5845_v9, %v5845_v9 }
 0x16d   : > { %v726_v63 = vcombine.high %v6860_v32, %v6860_v32  ;;  %5390 = vmatpush3.xpose.msk.msra.mxu1 %vm2129_vm9, %v2092_v19  ;;  %v1128_v48 = vrot.slane %v1112_v23, %v5765_v8  ;;  %v6910_v39 = vrot.slane %v696_v62, %v5765_v8  ;;  %v1114_v58 = vcombine.high %v1112_v23, %v1112_v23 }
 0x16e   : > { %v6897_v36 = vrot.slane %v7666_v37, %v5765_v8  ;;  %v6903_v46 = vrot.slane %v7667_v49, %v5765_v8  ;;  %v6913_v5 = vrot.slane %v800_v50, %v5765_v8  ;;  %5405 = vmatprep.subr.mxu1 %v5632_v6  ;;  %5402 = vmatprep.mubr.msk.f32.mxu0 %vm5633_vm0, %v5632_v6 }
 0x16f   : > { %v830_v30 = vcombine.high %v814_v42, %v814_v42  ;;  %v1203_v24 = vrot.slane %v1128_v48, %v5773_v16  ;;  %v6928_v2 = vrot.slane %v1114_v58, %v5765_v8  ;;  %v6936_v31 = vrot.slane %v6910_v39, %v5773_v16 }
 0x170   : > { %v6918_v9 = vrot.slane %v6903_v46, %v5773_v16  ;;  %v6922_v28 = vrot.slane %v6897_v36, %v5773_v16  ;;  %v6932_v43 = vrot.slane %v6913_v5, %v5773_v16  ;;  %5392 = vmatmul.mubr.msk.f32.vlgmr.msra.gmra.mxu1 %vm2129_vm9, %v6790_v34  ;;  %v934_v4 = vcombine.high %v918_v3, %v918_v3 }
 0x171   : > { %v1038_v12 = vcombine.high %v5868_v22, %v5868_v22  ;;  %v1144_v52 = vcombine.high %v1128_v48, %v1128_v48  ;;  %v6943_v29 = vrot.slane %v830_v30, %v5773_v16  ;;  %v1267_v8 = vsub.s32 %v5770_v15, %v1203_v24  ;;  %5413 = vmatprep.mubr.msk.f32.mxu1 %vm5633_vm0, %v5632_v6 }
 0x172   : > { %v6948_v47 = vrot.slane %v6928_v2, %v5773_v16  ;;  %v1266_v57 = vsub.s32 %v5776_v17, %v1203_v24  ;;  %v1265_v38 = vsub.s32 %v5779_v21, %v1203_v24  ;;  %v6955_v54 = vsub.s32 %v5760_v56, %v1203_v24 }
 0x173   : > { %v6958_v22 = vrot.slane %v1144_v52, %v5773_v16  ;;  %v6961_v7 = vrot.slane %v1038_v12, %v5773_v16  ;;  %v6964_v10 = vrot.slane %v934_v4, %v5773_v16  ;;  %vm1331_vm13 = vcmp.eq.s32.totalorder %v1267_v8, 0 }
 0x174   : > { %vm1395_vm5 = vcmp.eq.s32.totalorder %v1267_v8, 1  ;;  %vm1459_vm4 = vcmp.eq.s32.totalorder %v1267_v8, 3  ;;  %vm1523_vm2 = vcmp.eq.s32.totalorder %v1267_v8, 4  ;;  %v1271_v20 = vsub.s32 %v5770_v15, %v6948_v47 }
 0x175   : > { %v1667_v0 = vsel %vm1523_vm2, %v6869_v1, 0.0  ;;  %vm1330_vm8 = vcmp.eq.s32.totalorder %v1266_v57, 0  ;;  %vm1394_vm7 = vcmp.eq.s32.totalorder %v1266_v57, 1  ;;  %vm1458_vm12 = vcmp.eq.s32.totalorder %v1266_v57, 3 }
 0x176   : > { %v1811_v40 = vsel %vm1459_vm4, %v6872_v55, %v1667_v0  ;;  %vm1522_vm10 = vcmp.eq.s32.totalorder %v1266_v57, 4  ;;  %v1270_v14 = vsub.s32 %v5776_v17, %v6948_v47  ;;  %vm1335_vm1 = vcmp.eq.s32.totalorder %v1271_v20, 0 }
 0x177   : > { %v1955_v13 = vsel %vm1395_vm5, %v6878_v61, %v1811_v40  ;;  %vm1399_vm6 = vcmp.eq.s32.totalorder %v1271_v20, 1  ;;  %vm1463_vm15 = vcmp.eq.s32.totalorder %v1271_v20, 3  ;;  %vm1527_vm11 = vcmp.eq.s32.totalorder %v1271_v20, 4 }
 0x178   : > { %v2099_v11 = vsel %vm1331_vm13, %v6882_v53, %v1955_v13  ;;  %v1666_v45 = vsel %vm1522_vm10, %v6869_v1, 0.0  ;;  %vm1334_vm3 = vcmp.eq.s32.totalorder %v1270_v14, 0  ;;  %v1671_v18 = vsel %vm1527_vm11, %v6918_v9, 0.0 }
 0x179   : > { %5395 = vmatpush3.xpose.msk.msra.mxu0 %vm2129_vm9, %v2099_v11  ;;  %v1810_v33 = vsel %vm1458_vm12, %v6872_v55, %v1666_v45  ;;  %vm1398_vm14 = vcmp.eq.s32.totalorder %v1270_v14, 1  ;;  %vm1462_vm4 = vcmp.eq.s32.totalorder %v1270_v14, 3  ;;  %v1815_v35 = vsel %vm1463_vm15, %v6922_v28, %v1671_v18 }
 0x17a   : > { %5396 = vmatprep.subr.mxu0 %v5632_v6  ;;  %v1954_v26 = vsel %vm1394_vm7, %v6878_v61, %v1810_v33  ;;  %vm1526_vm13 = vcmp.eq.s32.totalorder %v1270_v14, 4  ;;  %vm1329_vm5 = vcmp.eq.s32.totalorder %v1265_v38, 0  ;;  %v1959_v42 = vsel %vm1399_vm6, %v6932_v43, %v1815_v35 }
 0x17b   : > { %v2098_v3 = vsel %vm1330_vm8, %v6882_v53, %v1954_v26  ;;  %v1670_v60 = vsel %vm1526_vm13, %v6918_v9, 0.0  ;;  %vm1393_vm2 = vcmp.eq.s32.totalorder %v1265_v38, 1  ;;  %v2103_v59 = vsel %vm1335_vm1, %v6936_v31, %v1959_v42 }
 0x17c   : > { %v1814_v51 = vsel %vm1462_vm4, %v6922_v28, %v1670_v60  ;;  %vm1457_vm12 = vcmp.eq.s32.totalorder %v1265_v38, 3  ;;  %vm1521_vm10 = vcmp.eq.s32.totalorder %v1265_v38, 4  ;;  %5406 = vmatpush3.xpose.msk.msra.mxu1 %vm2129_vm9, %v2103_v59  ;;  %v1269_v25 = vsub.s32 %v5779_v21, %v6948_v47 }
 0x17d   : > { %5397 = vmatpush3.xpose.msk.msra.mxu0 %vm2129_vm9, %v2098_v3  ;;  %v1958_v44 = vsel %vm1398_vm14, %v6932_v43, %v1814_v51  ;;  %v1665_v27 = vsel %vm1521_vm10, %v6869_v1, 0.0  ;;  %vm1328_vm8 = vcmp.eq.s32.totalorder %v6955_v54, 0  ;;  %5407 = vmatprep.subr.mxu1 %v5632_v6  ;;  %vm1392_vm7 = vcmp.eq.s32.totalorder %v6955_v54, 1 }
 0x17e   : > { %v2102_v41 = vsel %vm1334_vm3, %v6936_v31, %v1958_v44  ;;  %5398 = vmatprep.subr.mxu0 %v5632_v6  ;;  %v1809_v23 = vsel %vm1457_vm12, %v6872_v55, %v1665_v27  ;;  %vm1456_vm1 = vcmp.eq.s32.totalorder %v6955_v54, 3  ;;  %vm1333_vm6 = vcmp.eq.s32.totalorder %v1269_v25, 0 }
 0x17f   : > { %v1953_v62 = vsel %vm1393_vm2, %v6878_v61, %v1809_v23  ;;  %vm1397_vm15 = vcmp.eq.s32.totalorder %v1269_v25, 1  ;;  %vm1461_vm11 = vcmp.eq.s32.totalorder %v1269_v25, 3  ;;  %vm1525_vm14 = vcmp.eq.s32.totalorder %v1269_v25, 4 }
 0x180   : > { %v2097_v50 = vsel %vm1329_vm5, %v6882_v53, %v1953_v62  ;;  %vm1520_vm3 = vcmp.eq.s32.totalorder %v6955_v54, 4  ;;  %v1268_v19 = vsub.s32 %v5760_v56, %v6948_v47  ;;  %5408 = vmatpush3.xpose.msk.msra.mxu1 %vm2129_vm9, %v2102_v41  ;;  %v1669_v37 = vsel %vm1525_vm14, %v6918_v9, 0.0 }
 0x181   : > { %5399 = vmatpush3.xpose.msk.msra.mxu0 %vm2129_vm9, %v2097_v50  ;;  %v1664_v49 = vsel %vm1520_vm3, %v6869_v1, 0.0  ;;  %v1275_v48 = vsub.s32 %v5770_v15, %v6958_v22  ;;  %v7023_v58 = vrot.slane %v726_v63, %v5773_v16  ;;  %5409 = vmatprep.subr.mxu1 %v5632_v6  ;;  %v1813_v30 = vsel %vm1461_vm11, %v6922_v28, %v1669_v37 }
 0x182   : > { %5400 = vmatprep.subr.mxu0 %v5632_v6  ;;  %v1808_v24 = vsel %vm1456_vm1, %v6872_v55, %v1664_v49  ;;  %vm1332_vm4 = vcmp.eq.s32.totalorder %v1268_v19, 0  ;;  %vm1396_vm13 = vcmp.eq.s32.totalorder %v1268_v19, 1  ;;  %v1957_v1 = vsel %vm1397_vm15, %v6932_v43, %v1813_v30  ;;  %v2113_v49 = vld [vmem:[#allocation2] sm:$0x7f] }
 0x183   : > { %v1952_v32 = vsel %vm1392_vm7, %v6878_v61, %v1808_v24  ;;  %vm1460_vm5 = vcmp.eq.s32.totalorder %v1268_v19, 3  ;;  %vm1524_vm2 = vcmp.eq.s32.totalorder %v1268_v19, 4  ;;  %v2101_v63 = vsel %vm1333_vm6, %v6936_v31, %v1957_v1 }
 0x184   : > { %v2096_v4 = vsel %vm1328_vm8, %v6882_v53, %v1952_v32  ;;  %v1668_v55 = vsel %vm1524_vm2, %v6918_v9, 0.0  ;;  %vm1339_vm12 = vcmp.eq.s32.totalorder %v1275_v48, 0  ;;  %5410 = vmatpush3.xpose.msk.msra.mxu1 %vm2129_vm9, %v2101_v63  ;;  %vm1403_vm10 = vcmp.eq.s32.totalorder %v1275_v48, 1  ;;  %v2115_v63 = vld [vmem:[#allocation2 + $0x10] sm:$0x7f] }
 0x185   : > { %5401 = vmatpush3.xpose.msk.msra.mxu0 %vm2129_vm9, %v2096_v4  ;;  %v1812_v12 = vsel %vm1460_vm5, %v6922_v28, %v1668_v55  ;;  %vm1467_vm7 = vcmp.eq.s32.totalorder %v1275_v48, 3  ;;  %vm1531_vm1 = vcmp.eq.s32.totalorder %v1275_v48, 4  ;;  %5411 = vmatprep.subr.mxu1 %v5632_v6  ;;  %v728_v9 = vcombine.high %v6910_v39, %v6910_v39 }
 0x186   : > { %v1956_v61 = vsel %vm1396_vm13, %v6932_v43, %v1812_v12  ;;  %5416 = vmatprep.subr.mxu0 %v5632_v6  ;;  %v1675_v53 = vsel %vm1531_vm1, %v6961_v7, 0.0  ;;  %v832_v52 = vcombine.high %v6913_v5, %v6913_v5  ;;  %v936_v47 = vcombine.high %v6897_v36, %v6897_v36  ;;  %v2116_v12 = vld [vmem:[#allocation2 + $0x18] sm:$0x7f] }
 0x187   : > { %v2100_v28 = vsel %vm1332_vm4, %v6936_v31, %v1956_v61  ;;  %v1819_v8 = vsel %vm1467_vm7, %v6964_v10, %v1675_v53  ;;  %v1040_v43 = vcombine.high %v6903_v46, %v6903_v46  ;;  %v1146_v39 = vcombine.high %v6928_v2, %v6928_v2 }
 0x188   : > { %5403 = vmatmul.mubr.msk.f32.vlgmr.msra.gmra.mxu0 %vm2129_vm9, %v6790_v34  ;;  %v1963_v57 = vsel %vm1403_vm10, %v6943_v29, %v1819_v8  ;;  %v7067_v5 = vrot.slane %v832_v52, %v5773_v16  ;;  %v7070_v31 = vrot.slane %v728_v9, %v5773_v16  ;;  %5412 = vmatpush3.xpose.msk.msra.mxu1 %vm2129_vm9, %v2100_v28  ;;  %v2117_v52 = vld [vmem:[#allocation2 + $0x20] sm:$0x7f] }
 0x189   : > { %v2107_v36 = vsel %vm1339_vm12, %v7023_v58, %v1963_v57  ;;  %v7076_v46 = vrot.slane %v1040_v43, %v5773_v16  ;;  %v7079_v38 = vrot.slane %v936_v47, %v5773_v16  ;;  %v1274_v2 = vsub.s32 %v5776_v17, %v6958_v22  ;;  %5427 = vmatprep.subr.mxu1 %v5632_v6  ;;  %v2118_v47 = vld [vmem:[#allocation2 + $0x28] sm:$0x7f] }
 0x18a   : > { %5417 = vmatpush3.xpose.msk.msra.mxu0 %vm2129_vm9, %v2107_v36  ;;  %v1215_v54 = vrot.slane %v1146_v39, %v5773_v16  ;;  %v1273_v0 = vsub.s32 %v5779_v21, %v6958_v22  ;;  %v7090_v20 = vsub.s32 %v5760_v56, %v6958_v22  ;;  %5424 = vmatprep.mubr.msk.f32.mxu0 %vm5633_vm0, %v5632_v6 }
 0x18b   : > { %5418 = vmatprep.subr.mxu0 %v5632_v6  ;;  %vm1338_vm8 = vcmp.eq.s32.totalorder %v1274_v2, 0  ;;  %vm1402_vm6 = vcmp.eq.s32.totalorder %v1274_v2, 1  ;;  %vm1466_vm15 = vcmp.eq.s32.totalorder %v1274_v2, 3  ;;  %vm1530_vm11 = vcmp.eq.s32.totalorder %v1274_v2, 4  ;;  %5414 = vmatmul.mubr.msk.f32.vlgmr.msra.gmra.mxu1 %vm2129_vm9, %v6790_v34 }
 0x18c   : > { %v1279_v16 = vsub.s32 %v5770_v15, %v1215_v54  ;;  %v1674_v40 = vsel %vm1530_vm11, %v6961_v7, 0.0  ;;  %v1278_v14 = vsub.s32 %v5776_v17, %v1215_v54  ;;  %vm1337_vm14 = vcmp.eq.s32.totalorder %v1273_v0, 0  ;;  %5435 = vmatprep.mubr.msk.f32.mxu1 %vm5633_vm0, %v5632_v6 }
 0x18d   : > { %v1818_v22 = vsel %vm1466_vm15, %v6964_v10, %v1674_v40  ;;  %vm1401_vm3 = vcmp.eq.s32.totalorder %v1273_v0, 1  ;;  %vm1465_vm4 = vcmp.eq.s32.totalorder %v1273_v0, 3  ;;  %vm1529_vm13 = vcmp.eq.s32.totalorder %v1273_v0, 4  ;;  %v3612_v40 = vld [vmem:[#allocation3] sm:$0xff] }
 0x18e   : > { %vm1343_vm5 = vcmp.eq.s32.totalorder %v1279_v16, 0  ;;  %vm1407_vm2 = vcmp.eq.s32.totalorder %v1279_v16, 1  ;;  %vm1471_vm12 = vcmp.eq.s32.totalorder %v1279_v16, 3  ;;  %vm1535_vm10 = vcmp.eq.s32.totalorder %v1279_v16, 4  ;;  %v3675_v16 = vld [vmem:[#allocation3 + $0x20] sm:$0xff] }
 0x18f   : > { %v1679_v13 = vsel %vm1535_vm10, %v7076_v46, 0.0  ;;  %v1962_v15 = vsel %vm1402_vm6, %v6943_v29, %v1818_v22  ;;  %vm1342_vm7 = vcmp.eq.s32.totalorder %v1278_v14, 0  ;;  %vm1406_vm1 = vcmp.eq.s32.totalorder %v1278_v14, 1 }
 0x190   : > { %v1823_v17 = vsel %vm1471_vm12, %v7079_v38, %v1679_v13  ;;  %v2106_v11 = vsel %vm1338_vm8, %v7023_v58, %v1962_v15  ;;  %vm1470_vm15 = vcmp.eq.s32.totalorder %v1278_v14, 3  ;;  %vm1534_vm11 = vcmp.eq.s32.totalorder %v1278_v14, 4  ;;  %v2121_v14 = vld [vmem:[#allocation2 + $0x40] sm:$0x7f]  ;;  %v2122_v15 = vld [vmem:[#allocation2 + $0x48] sm:$0x7f] }
 0x191   : > { %v1967_v45 = vsel %vm1407_vm2, %v7067_v5, %v1823_v17  ;;  %5419 = vmatpush3.xpose.msk.msra.mxu0 %vm2129_vm9, %v2106_v11  ;;  %v1678_v18 = vsel %vm1534_vm11, %v7076_v46, 0.0  ;;  %v1673_v33 = vsel %vm1529_vm13, %v6961_v7, 0.0  ;;  %v1277_v35 = vsub.s32 %v5779_v21, %v1215_v54 }
 0x192   : > { %v2111_v26 = vsel %vm1343_vm5, %v7070_v31, %v1967_v45  ;;  %v1822_v42 = vsel %vm1470_vm15, %v7079_v38, %v1678_v18  ;;  %5420 = vmatprep.subr.mxu0 %v5632_v6  ;;  %v1817_v3 = vsel %vm1465_vm4, %v6964_v10, %v1673_v33  ;;  %vm1400_vm4 = vcmp.eq.s32.totalorder %v7090_v20, 1 }
 0x193   : > { %5428 = vmatpush3.xpose.msk.msra.mxu1 %vm2129_vm9, %v2111_v26  ;;  %v1966_v60 = vsel %vm1406_vm1, %v7067_v5, %v1822_v42  ;;  %v1961_v59 = vsel %vm1401_vm3, %v6943_v29, %v1817_v3  ;;  %vm1341_vm0 = vcmp.eq.s32.totalorder %v1277_v35, 0  ;;  %vm1405_vm8 = vcmp.eq.s32.totalorder %v1277_v35, 1 }
 0x194   : > { %5429 = vmatprep.subr.mxu1 %v5632_v6  ;;  %v2110_v21 = vsel %vm1342_vm7, %v7070_v31, %v1966_v60  ;;  %v2105_v51 = vsel %vm1337_vm14, %v7023_v58, %v1961_v59  ;;  %vm1469_vm6 = vcmp.eq.s32.totalorder %v1277_v35, 3  ;;  %vm1533_vm13 = vcmp.eq.s32.totalorder %v1277_v35, 4 }
 0x195   : > { %5421 = vmatpush3.xpose.msk.msra.mxu0 %vm2129_vm9, %v2105_v51  ;;  %v1677_v44 = vsel %vm1533_vm13, %v7076_v46, 0.0  ;;  %vm1464_vm3 = vcmp.eq.s32.totalorder %v7090_v20, 3  ;;  %vm1528_vm5 = vcmp.eq.s32.totalorder %v7090_v20, 4  ;;  %vm1336_vm2 = vcmp.eq.s32.totalorder %v7090_v20, 0 }
 0x196   : > { %v1821_v27 = vsel %vm1469_vm6, %v7079_v38, %v1677_v44  ;;  %5422 = vmatprep.subr.mxu0 %v5632_v6  ;;  %v1672_v25 = vsel %vm1528_vm5, %v6961_v7, 0.0  ;;  %v1276_v41 = vsub.s32 %v5760_v56, %v1215_v54  ;;  %vm7668_vm1 = vcmask 243712  }
 0x197   : > { %5430 = vmatpush3.xpose.msk.msra.mxu1 %vm2129_vm9, %v2110_v21  ;;  %v1965_v23 = vsel %vm1405_vm8, %v7067_v5, %v1821_v27  ;;  %v1816_v62 = vsel %vm1464_vm3, %v6964_v10, %v1672_v25  ;;  %vm7669_vm15 = vmmov %vm7668_vm1  ;;  %vm3723_vm3 = vcmask 244736  }
 0x198   : > { %5431 = vmatprep.subr.mxu1 %v5632_v6  ;;  %v2109_v50 = vsel %vm1341_vm0, %v7070_v31, %v1965_v23  ;;  %v1960_v19 = vsel %vm1400_vm4, %v6943_v29, %v1816_v62  ;;  %vm1404_vm14 = vcmp.eq.s32.totalorder %v1276_v41, 1  ;;  %vm1468_vm12 = vcmp.eq.s32.totalorder %v1276_v41, 3  ;;  %vm7670_vm11 = vmmov %vm7668_vm1  ;;  %v7194_v62 = vpop.permute.xlu1 %3621 }
 0x199   : > { %v2104_v37 = vsel %vm1336_vm2, %v7023_v58, %v1960_v19  ;;  %vm1532_vm10 = vcmp.eq.s32.totalorder %v1276_v41, 4  ;;  %vm1340_vm7 = vcmp.eq.s32.totalorder %v1276_v41, 0  ;;  %v2114_v58 = vld [vmem:[#allocation2 + $0x8] sm:$0x7f]  ;;  %vm7671_vm0 = vmmov %vm7668_vm1 }
 0x19a   : > { %5423 = vmatpush3.xpose.msk.msra.mxu0 %vm2129_vm9, %v2104_v37  ;;  %v1676_v56 = vsel %vm1532_vm10, %v7076_v46, 0.0  ;;  %vm7672_vm8 = vmmov %vm7671_vm0  ;;  %vm3533_vm10 = vcmask 1043459  }
 0x19b   : > { %5432 = vmatpush3.xpose.msk.msra.mxu1 %vm2129_vm9, %v2109_v50  ;;  %v1820_v7 = vsel %vm1468_vm12, %v7079_v38, %v1676_v56  ;;  %vm7673_vm6 = vmmov %vm7671_vm0  ;;  %v2120_v38 = vld [vmem:[#allocation2 + $0x38] sm:$0x7f]  ;;  %vm3530_vm12 = vcmask 1042434  }
 0x19c   : > { %5433 = vmatprep.subr.mxu1 %v5632_v6  ;;  %v1964_v10 = vsel %vm1404_vm14, %v7067_v5, %v1820_v7  ;;  %vm7674_vm13 = vmmov %vm7671_vm0  ;;  %vm3527_vm14 = vcmask 1041409  }
 0x19d   : > { %v2108_v29 = vsel %vm1340_vm7, %v7070_v31, %v1964_v10  ;;  %5425 = vmatmul.mubr.msk.f32.vlgmr.msra.gmra.mxu0 %vm2129_vm9, %v6790_v34  ;;  %v2119_v31 = vld [vmem:[#allocation2 + $0x30] sm:$0x7f]  ;;  %vm7675_vm4 = vmmov %vm7671_vm0  ;;  %vm3536_vm7 = vcmask 1044484  }
 0x19e   : > { %5442 = vmatprep.mubr.msk.f32.mxu0 %vm3723_vm3, %v3675_v16  ;;  %vm7676_vm5 = vmmov %vm7671_vm0  ;;  %v2123_v10 = vld [vmem:[#allocation2 + $0x50] sm:$0x7f] }
 0x19f   : > { %5434 = vmatpush3.xpose.msk.msra.mxu1 %vm2129_vm9, %v2108_v29  ;;  %vm7677_vm2 = vmmov %vm7671_vm0 }
 0x1a2   : > { %5436 = vmatmul.mubr.msk.f32.vlgmr.msra.gmra.mxu1 %vm2129_vm9, %v6790_v34 }
 0x1a3   : > { %5452 = vmatprep.mubr.msk.f32.mxu1 %vm3723_vm3, %v3612_v40 }
 0x1b5   : > { %v2211_v48 = vpop.f32.mrf.mxu0 }
 0x1b6   : > { %v3445_v30 = vadd.f32 %v2211_v48, %v2113_v49 }
 0x1b7   : > { %v2293_v24 = vpop.f32.mrf.mxu1  ;;  %v5272_v1 = vpop.f32.mrf.mxu0 }
 0x1b8   : > { %3462 = vst.msk [vmem:[#allocation2] sm:$0x7f] %vm7668_vm1, %v3445_v30  ;;  %v3446_v6 = vadd.f32 %v2293_v24, %v2114_v58  ;;  %vm3539_vm1 = vcmask 1045509   ;;  %v3618_v58 = vpop.permute.xlu1 %3617  ;;  %v2124_v1 = vld [vmem:[#allocation2 + $0x58] sm:$0x7f] }
 0x1b9   : > { %v5283_v32 = vpop.f32.mrf.mxu1 }
 0x1ba   : > { %3463 = vst.msk [vmem:[#allocation2 + $0x8] sm:$0x7f] %vm7669_vm15, %v3446_v6  ;;  %vm3541_vm15 = vcmask 1046534  }
 0x1bf   : > { %v7172_v18 = vld [vmem:[#allocation2] sm:$0x7f] }
 0x1c0   : > { %v3525_v42 = vrot.slane %v7172_v18, 6 }
 0x1c1   : > { %v7174_v33 = vld [vmem:[#allocation2 + $0x8] sm:$0x7f] }
 0x1c2   : > { %v3526_v3 = vrot.slane %v7174_v33, 5 }
 0x1c4   : > { %v3528_v51 = vsel %vm3527_vm14, %v3526_v3, %v3525_v42 }
 0x1c9   : > { %v2375_v4 = vpop.f32.mrf.mxu0 }
 0x1ca   : > { %v3447_v55 = vadd.f32 %v2375_v4, %v2115_v63  ;;  %v3502_v4 = vpop.permute.xlu1 %3501 }
 0x1cb   : > { %v5294_v61 = vpop.f32.mrf.mxu0 }
 0x1cc   : > { %3464 = vst.msk [vmem:[#allocation2 + $0x10] sm:$0x7f] %vm7670_vm11, %v3447_v55  ;;  %v2457_v34 = vpop.f32.mrf.mxu1  ;;  %vm3544_vm11 = vcmask 1047559  }
 0x1cd   : > { %v3448_v53 = vadd.f32 %v2457_v34, %v2116_v12 }
 0x1ce   : > { %v5305_v9 = vpop.f32.mrf.mxu1  ;;  %v7211_v34 = vpop.permute.xlu1 %4187 }
 0x1cf   : > { %3465 = vst.msk [vmem:[#allocation2 + $0x18] sm:$0x7f] %vm7671_vm0, %v3448_v53 }
 0x1d3   : > { %v7176_v26 = vld [vmem:[#allocation2 + $0x10] sm:$0x7f] }
 0x1d4   : > { %v3529_v59 = vrot.slane %v7176_v26, 4 }
 0x1d6   : > { %v7181_v60 = vld [vmem:[#allocation2 + $0x18] sm:$0x7f]  ;;  %v3531_v25 = vsel %vm3530_vm12, %v3529_v59, %v3528_v51 }
 0x1d7   : > { %v3532_v44 = vrot.slane %v7181_v60, 3 }
 0x1d9   : > { %v3534_v50 = vsel %vm3533_vm10, %v3532_v44, %v3531_v25 }
 0x1e4   : > { %v2539_v28 = vpop.f32.mrf.mxu0 }
 0x1e5   : > { %v3449_v8 = vadd.f32 %v2539_v28, %v2117_v52  ;;  %v7217_v28 = vpop.permute.xlu0 %3506 }
 0x1e6   : > { %v5316_v43 = vpop.f32.mrf.mxu0 }
 0x1e7   : > { %3466 = vst.msk [vmem:[#allocation2 + $0x20] sm:$0x7f] %vm7672_vm8, %v3449_v8  ;;  %vm7678_vm8 = vmmov %vm7671_vm0 }
 0x1e8   : > { %v2621_v57 = vpop.f32.mrf.mxu1 }
 0x1e9   : > { %v3450_v39 = vadd.f32 %v2621_v57, %v2118_v47  ;;  %v3972_v57 = vpop.permute.xlu1 %3971 }
 0x1ea   : > { %v5327_v5 = vpop.f32.mrf.mxu1 }
 0x1eb   : > { %3467 = vst.msk [vmem:[#allocation2 + $0x28] sm:$0x7f] %vm7673_vm6, %v3450_v39  ;;  %vm7679_vm6 = vmmov %vm7671_vm0 }
 0x1ed   : > { %v7228_v16 = vpop.permute.xlu1 %4399 }
 0x1ee   : > { %v7184_v21 = vld [vmem:[#allocation2 + $0x20] sm:$0x7f] }
 0x1ef   : > { %v3535_v41 = vrot.slane %v7184_v21, 2 }
 0x1f1   : > { %v3537_v37 = vsel %vm3536_vm7, %v3535_v41, %v3534_v50 }
 0x1f2   : > { %v7188_v27 = vld [vmem:[#allocation2 + $0x28] sm:$0x7f] }
 0x1f3   : > { %v3538_v19 = vrot.slane %v7188_v27, 1 }
 0x1f5   : > { %v3540_v29 = vsel %vm3539_vm1, %v3538_v19, %v3537_v37 }
 0x1fc   : > { %v2703_v36 = vpop.f32.mrf.mxu0 }
 0x1fd   : > { %v3451_v46 = vadd.f32 %v2703_v36, %v2119_v31 }
 0x1fe   : > { %v5338_v2 = vpop.f32.mrf.mxu0 }
 0x1ff   : > { %3468 = vst.msk [vmem:[#allocation2 + $0x30] sm:$0x7f] %vm7674_vm13, %v3451_v46  ;;  %v2785_v54 = vpop.f32.mrf.mxu1  ;;  %v7222_v46 = vpop.permute.xlu0 %3975  ;;  %vm7680_vm13 = vmmov %vm7671_vm0 }
 0x200   : > { %v3452_v0 = vadd.f32 %v2785_v54, %v2120_v38 }
 0x201   : > { %v5349_v20 = vpop.f32.mrf.mxu1 }
 0x202   : > { %3469 = vst.msk [vmem:[#allocation2 + $0x38] sm:$0x7f] %vm7675_vm4, %v3452_v0  ;;  %vm7681_vm4 = vmmov %vm7671_vm0 }
 0x206   : > { %v7199_v56 = vld [vmem:[#allocation2 + $0x30] sm:$0x7f] }
 0x207   : > { %v3542_v49 = vsel %vm3541_vm15, %v7199_v56, %v3540_v29 }
 0x209   : > { %v7192_v23 = vld [vmem:[#allocation2 + $0x38] sm:$0x7f] }
 0x20a   : > { %v3543_v7 = vrot.slane %v7192_v23, 7 }
 0x20c   : > { %v7206_v30 = vsel %vm3544_vm11, %v3543_v7, %v3542_v49  ;;  %v7244_v7 = vpop.permute.xlu1 %4611 }
 0x20d   : > { %v3624_v32 = vmul.f32 %v3618_v58, %v7206_v30  ;;  %v7215_v52 = vmul.f32 %v7206_v30, %v3502_v4 }
 0x20f   : > { %v3628_v61 = vrot.slane %v3624_v32, 7  ;;  %v3629_v53 = vrot.slane %v3624_v32, 1  ;;  %v3630_v47 = vrot.slane %v3624_v32, 2  ;;  %v3566_v39 = vrot.slane %v7215_v52, 1 }
 0x210   : > { %v3659_v5 = vsub.f32 %v7174_v33, %v3624_v32  ;;  %v3631_v31 = vrot.slane %v3624_v32, 3  ;;  %v3567_v54 = vrot.slane %v7215_v52, 2  ;;  %v3632_v20 = vrot.slane %v3624_v32, 4 }
 0x211   : > { %v3658_v9 = vsub.f32 %v7172_v18, %v3628_v61  ;;  %v3660_v8 = vsub.f32 %v7176_v26, %v3629_v53  ;;  %v3661_v38 = vsub.f32 %v7181_v60, %v3630_v47  ;;  %v3597_v0 = vsub.f32 %v7174_v33, %v3566_v39 }
 0x212   : > { %v3662_v40 = vsub.f32 %v7184_v21, %v3631_v31  ;;  %v3663_v42 = vsub.f32 %v7188_v27, %v3632_v20  ;;  %v3568_v59 = vrot.slane %v7215_v52, 3  ;;  %v3634_v44 = vrot.slane %v3624_v32, 6 }
 0x213   : > { %v3695_v43 = vrot.slane %v3658_v9, 1  ;;  %v3697_v36 = vrot.slane %v3660_v8, 7  ;;  %v3596_v41 = vsub.f32 %v7172_v18, %v7215_v52  ;;  %v3571_v61 = vrot.slane %v7215_v52, 6 }
 0x214   : > { %v3701_v25 = vrot.slane %v3662_v40, 5 }
 0x215   : > { %v2867_v22 = vpop.f32.mrf.mxu0  ;;  %v3696_v2 = vsel %vm3527_vm14, %v3659_v5, %v3695_v43 }
 0x216   : > { %v3453_v13 = vadd.f32 %v2867_v22, %v2121_v14  ;;  %v3698_v14 = vsel %vm3530_vm12, %v3697_v36, %v3696_v2  ;;  %v3699_v22 = vrot.slane %v3661_v38, 6  ;;  %v3572_v38 = vrot.slane %v7215_v52, 7 }
 0x217   : > { %v5360_v17 = vpop.f32.mrf.mxu0 }
 0x218   : > { %3470 = vst.msk [vmem:[#allocation2 + $0x40] sm:$0x7f] %vm7676_vm5, %v3453_v13  ;;  %v3598_v13 = vsub.f32 %v7176_v26, %v3567_v54  ;;  %v2125_v17 = vld [vmem:[#allocation2 + $0x60] sm:$0x7f]  ;;  %v3700_v3 = vsel %vm3533_vm10, %v3699_v22, %v3698_v14  ;;  %v3602_v22 = vsub.f32 %v7199_v56, %v3571_v61  ;;  %vm7682_vm5 = vmmov %vm7671_vm0 }
 0x219   : > { %v2949_v11 = vpop.f32.mrf.mxu1  ;;  %v3702_v49 = vsel %vm3536_vm7, %v3701_v25, %v3700_v3 }
 0x21a   : > { %v3454_v45 = vadd.f32 %v2949_v11, %v2122_v15  ;;  %v7234_v15 = vmul.f32 %v3972_v57, %v7206_v30  ;;  %v3841_v11 = vrot.slane %v3597_v0, 7  ;;  %v3843_v37 = vrot.slane %v3598_v13, 6  ;;  %v4608_v0 = vpop.permute.xlu1 %4607 }
 0x21b   : > { %v5371_v35 = vpop.f32.mrf.mxu1 }
 0x21c   : > { %3471 = vst.msk [vmem:[#allocation2 + $0x48] sm:$0x7f] %vm7677_vm2, %v3454_v45  ;;  %v4184_v45 = vpop.permute.xlu0 %4183  ;;  %v3633_v35 = vrot.slane %v3624_v32, 5  ;;  %v3982_v58 = vrot.slane %v7234_v15, 6  ;;  %v3569_v32 = vrot.slane %v7215_v52, 4 }
 0x21d   : > { %v7242_v50 = vmul.f32 %v4184_v45, %v7206_v30 }
 0x21e   : > { %v4012_v57 = vsub.f32 %v7172_v18, %v3982_v58  ;;  %v3600_v2 = vsub.f32 %v7184_v21, %v3569_v32  ;;  %v3986_v32 = vrot.slane %v7234_v15, 3 }
 0x21f   : > { %v4194_v5 = vrot.slane %v7242_v50, 5  ;;  %v4195_v31 = vrot.slane %v7242_v50, 6 }
 0x220   : > { %v4396_v53 = vpop.permute.xlu0 %4395  ;;  %v4049_v45 = vrot.slane %v4012_v57, 2 }
 0x221   : > { %v7267_v20 = vmul.f32 %v4396_v53, %v7206_v30  ;;  %v4225_v3 = vsub.f32 %v7174_v33, %v4195_v31 }
 0x22c   : > { %v3031_v48 = vpop.f32.mrf.mxu0 }
 0x22d   : > { %v3455_v24 = vadd.f32 %v3031_v48, %v2123_v10  ;;  %v2126_v10 = vld [vmem:[#allocation2 + $0x68] sm:$0x7f]  ;;  %v3842_v48 = vsel %vm3527_vm14, %v3841_v11, %v3596_v41  ;;  %v3984_v11 = vrot.slane %v7234_v15, 1 }
 0x22e   : > { %v5382_v6 = vpop.f32.mrf.mxu0  ;;  %v3844_v47 = vsel %vm3530_vm12, %v3843_v37, %v3842_v48  ;;  %v3985_v37 = vrot.slane %v7234_v15, 2  ;;  %v4407_v48 = vrot.slane %v7267_v20, 5 }
 0x22f   : > { %3472 = vst.msk [vmem:[#allocation2 + $0x50] sm:$0x7f] %vm7671_vm0, %v3455_v24  ;;  %v3983_v24 = vrot.slane %v7234_v15, 7  ;;  %v3703_v6 = vrot.slane %v3663_v42, 4  ;;  %v4224_v42 = vsub.f32 %v7172_v18, %v4194_v5 }
 0x230   : > { %v3113_v63 = vpop.f32.mrf.mxu1  ;;  %v4016_v53 = vsub.f32 %v7184_v21, %v3985_v37 }
 0x231   : > { %v3456_v55 = vadd.f32 %v3113_v63, %v2124_v1  ;;  %v3664_v1 = vsub.f32 %v7199_v56, %v3633_v35  ;;  %v3599_v63 = vsub.f32 %v7181_v60, %v3568_v59  ;;  %v3704_v8 = vsel %vm3539_vm1, %v3703_v6, %v3702_v49  ;;  %v7291_v6 = vld [vmem:[#allocation2 + $0x40] sm:$0x7f] }
 0x232   : > { %v5393_v12 = vpop.f32.mrf.mxu1  ;;  %v4013_v39 = vsub.f32 %v7174_v33, %v3983_v24  ;;  %v7278_v59 = vmul.f32 %v4608_v0, %v7206_v30  ;;  %v4406_v49 = vrot.slane %v7267_v20, 4  ;;  %v4015_v30 = vsub.f32 %v7181_v60, %v3984_v11 }
 0x233   : > { %3473 = vst.msk [vmem:[#allocation2 + $0x58] sm:$0x7f] %vm7678_vm8, %v3456_v55  ;;  %v3665_v55 = vsub.f32 %v7192_v23, %v3634_v44  ;;  %v3570_v12 = vrot.slane %v7215_v52, 5  ;;  %v3705_v36 = vrot.slane %v3664_v1, 3  ;;  %v3845_v54 = vrot.slane %v3599_v63, 5 }
 0x234   : > { %v4196_v52 = vrot.slane %v7242_v50, 7  ;;  %v4050_v35 = vrot.slane %v4013_v39, 1  ;;  %v3847_v44 = vrot.slane %v3600_v2, 4  ;;  %v4261_v24 = vrot.slane %v4224_v42, 3 }
 0x235   : > { %v3707_v40 = vrot.slane %v3665_v55, 2  ;;  %v3601_v14 = vsub.f32 %v7188_v27, %v3570_v12  ;;  %v3706_v13 = vsel %vm3541_vm15, %v3705_v36, %v3704_v8  ;;  %v4262_v1 = vrot.slane %v4225_v3, 2  ;;  %v7301_v8 = vld [vmem:[#allocation2 + $0x48] sm:$0x7f] }
 0x236   : > { %v4051_v58 = vsel %vm3527_vm14, %v4050_v35, %v4049_v45  ;;  %v3987_v63 = vrot.slane %v7234_v15, 4  ;;  %v4014_v55 = vsub.f32 %v7176_v26, %v7234_v15  ;;  %v4436_v57 = vsub.f32 %v7172_v18, %v4406_v49  ;;  %v7326_v37 = vld [vmem:[#allocation2 + $0x50] sm:$0x7f] }
 0x237   : > { %v7282_v25 = vsel %vm3544_vm11, %v3707_v40, %v3706_v13  ;;  %v3849_v41 = vrot.slane %v3601_v14, 3  ;;  %v4437_v39 = vsub.f32 %v7174_v33, %v4407_v48  ;;  %v3546_v5 = vrot.slane %v7291_v6, 6 }
 0x238   : > { %v4053_v31 = vrot.slane %v4015_v30, 7  ;;  %v4263_v36 = vsel %vm3527_vm14, %v4262_v1, %v4261_v24  ;;  %v7312_v0 = vsub.f32 %v7199_v56, %v3987_v63  ;;  %v3547_v14 = vrot.slane %v7301_v8, 5  ;;  %v2128_v30 = vld [vmem:[#allocation2 + $0x78] sm:$0x7f] }
 0x239   : > { %v4055_v13 = vrot.slane %v4016_v53, 6  ;;  %v4409_v45 = vrot.slane %v7267_v20, 7  ;;  %v4473_v35 = vrot.slane %v4436_v57, 4  ;;  %v4474_v42 = vrot.slane %v4437_v39, 3 }
 0x23a   : > { %v4059_v49 = vrot.slane %v7312_v0, 4  ;;  %v4199_v48 = vrot.slane %v7242_v50, 3  ;;  %v4200_v24 = vrot.slane %v7242_v50, 4  ;;  %v7341_v53 = vld [vmem:[#allocation2 + $0x58] sm:$0x7f]  ;;  %v4620_v0 = vrot.slane %v7278_v59, 5 }
 0x23b   : > { %v4439_v63 = vsub.f32 %v7181_v60, %v4409_v45 }
 0x248   : > { %v3195_v51 = vpop.f32.mrf.mxu0 }
 0x249   : > { %v3457_v19 = vadd.f32 %v3195_v51, %v2125_v17  ;;  %v3846_v17 = vsel %vm3533_vm10, %v3845_v54, %v3844_v47  ;;  %v3603_v51 = vsub.f32 %v7192_v23, %v3572_v38  ;;  %v4052_v47 = vsel %vm3530_vm12, %v4014_v55, %v4051_v58  ;;  %v2127_v38 = vld [vmem:[#allocation2 + $0x70] sm:$0x7f] }
 0x24a   : > { %v5404_v29 = vpop.f32.mrf.mxu0  ;;  %v4017_v54 = vsub.f32 %v7188_v27, %v3986_v32  ;;  %v4618_v55 = vrot.slane %v7278_v59, 3 }
 0x24b   : > { %3474 = vst.msk [vmem:[#allocation2 + $0x60] sm:$0x7f] %vm7679_vm6, %v3457_v19  ;;  %v3277_v4 = vpop.f32.mrf.mxu1  ;;  %v3851_v19 = vrot.slane %v3602_v22, 2  ;;  %v4226_v29 = vsub.f32 %v7176_v26, %v4196_v52  ;;  %v3853_v61 = vrot.slane %v3603_v51, 1  ;;  %v4054_v22 = vsel %vm3533_vm10, %v4053_v31, %v4052_v47 }
 0x24c   : > { %v3458_v9 = vadd.f32 %v3277_v4, %v2126_v10  ;;  %v3848_v10 = vsel %vm3536_vm7, %v3847_v44, %v3846_v17  ;;  %v3988_v4 = vrot.slane %v7234_v15, 5  ;;  %v4197_v15 = vrot.slane %v7242_v50, 1 }
 0x24d   : > { %v5415_v43 = vpop.f32.mrf.mxu1  ;;  %v3850_v12 = vsel %vm3539_vm1, %v3849_v41, %v3848_v10  ;;  %v4198_v51 = vrot.slane %v7242_v50, 2  ;;  %v4227_v44 = vsub.f32 %v7181_v60, %v7242_v50  ;;  %v4056_v58 = vsel %vm3536_vm7, %v4055_v13, %v4054_v22 }
 0x24e   : > { %3475 = vst.msk [vmem:[#allocation2 + $0x68] sm:$0x7f] %vm7680_vm13, %v3458_v9  ;;  %v4408_v9 = vrot.slane %v7267_v20, 6  ;;  %v4264_v43 = vrot.slane %v4226_v29, 1  ;;  %v3852_v2 = vsel %vm3541_vm15, %v3851_v19, %v3850_v12  ;;  %v7315_v40 = vsub.f32 %v7192_v23, %v3988_v4 }
 0x24f   : > { %v4228_v41 = vsub.f32 %v7184_v21, %v4197_v15  ;;  %v7329_v10 = vsel %vm3544_vm11, %v3853_v61, %v3852_v2  ;;  %v4057_v29 = vrot.slane %v4017_v54, 5  ;;  %v4475_v4 = vsel %vm3527_vm14, %v4474_v42, %v4473_v35 }
 0x250   : > { %v4438_v17 = vsub.f32 %v7176_v26, %v4408_v9  ;;  %v4265_v52 = vsel %vm3530_vm12, %v4264_v43, %v4263_v36  ;;  %v4619_v12 = vrot.slane %v7278_v59, 4  ;;  %v3548_v9 = vsel %vm3527_vm14, %v3547_v14, %v3546_v5 }
 0x251   : > { %v4266_v1 = vsel %vm3533_vm10, %v4227_v44, %v4265_v52  ;;  %v3549_v47 = vrot.slane %v7326_v37, 4  ;;  %v4229_v50 = vsub.f32 %v7188_v27, %v4198_v51  ;;  %v4267_v43 = vrot.slane %v4228_v41, 7 }
 0x252   : > { %v4476_v32 = vrot.slane %v4438_v17, 2  ;;  %v7346_v39 = vld [vmem:[#allocation2 + $0x60] sm:$0x7f]  ;;  %v4058_v31 = vsel %vm3539_vm1, %v4057_v29, %v4056_v58  ;;  %v4230_v15 = vsub.f32 %v7199_v56, %v4199_v48  ;;  %v4410_v36 = vrot.slane %v7267_v20, 1 }
 0x253   : > { %v4231_v2 = vsub.f32 %v7192_v23, %v4200_v24  ;;  %v4268_v54 = vsel %vm3536_vm7, %v4267_v43, %v4266_v1  ;;  %v3551_v14 = vrot.slane %v7341_v53, 3  ;;  %v4478_v22 = vrot.slane %v4439_v63, 1 }
 0x254   : > { %v4477_v5 = vsel %vm3530_vm12, %v4476_v32, %v4475_v4  ;;  %v4648_v13 = vsub.f32 %v7172_v18, %v4618_v55  ;;  %v4649_v17 = vsub.f32 %v7174_v33, %v4619_v12  ;;  %v3550_v52 = vsel %vm3530_vm12, %v3549_v47, %v3548_v9 }
 0x255   : > { %v3553_v45 = vrot.slane %v7346_v39, 2  ;;  %v4269_v35 = vrot.slane %v4229_v50, 6  ;;  %v4411_v42 = vrot.slane %v7267_v20, 2  ;;  %v4412_v51 = vrot.slane %v7267_v20, 3 }
 0x256   : > { %v4441_v44 = vsub.f32 %v7188_v27, %v4410_v36  ;;  %v4479_v41 = vsel %vm3533_vm10, %v4478_v22, %v4477_v5  ;;  %v4440_v33 = vsub.f32 %v7184_v21, %v7267_v20  ;;  %v4650_v29 = vsub.f32 %v7176_v26, %v4620_v0 }
 0x257   : > { %v4270_v18 = vsel %vm3539_vm1, %v4269_v35, %v4268_v54  ;;  %v3552_v48 = vsel %vm3533_vm10, %v3551_v14, %v3550_v52  ;;  %v4685_v58 = vrot.slane %v4648_v13, 5  ;;  %v4686_v24 = vrot.slane %v4649_v17, 4 }
 0x258   : > { %v3554_v1 = vsel %vm3536_vm7, %v3553_v45, %v3552_v48  ;;  %v4060_v32 = vsel %vm3541_vm15, %v4059_v49, %v4058_v31  ;;  %v4442_v63 = vsub.f32 %v7199_v56, %v4411_v42  ;;  %v4480_v4 = vsel %vm3536_vm7, %v4440_v33, %v4479_v41 }
 0x259   : > { %v7382_v26 = vsub.f32 %v7192_v23, %v4412_v51  ;;  %v4481_v12 = vrot.slane %v4441_v44, 7  ;;  %v4061_v47 = vrot.slane %v7315_v40, 3  ;;  %v4273_v50 = vrot.slane %v4231_v2, 4 }
 0x25a   : > { %v4688_v43 = vrot.slane %v4650_v29, 3  ;;  %v4687_v36 = vsel %vm3527_vm14, %v4686_v24, %v4685_v58  ;;  %v4623_v0 = vrot.slane %v7278_v59, 1 }
 0x25b   : > { %v7398_v54 = vsel %vm3544_vm11, %v4061_v47, %v4060_v32  ;;  %v4485_v5 = vrot.slane %v7382_v26, 5  ;;  %v4665_v26 = vld [vmem:[#allocation3 + $0xa0] sm:$0xff] }
 0x25c   : > { %v7414_v17 = vsel %vm3530_vm12, %v4688_v43, %v4687_v36 }
 0x25d   : > { %v3359_v11 = vpop.f32.mrf.mxu0 }
 0x25e   : > { %v3459_v3 = vadd.f32 %v3359_v11, %v2127_v38  ;;  %v7359_v11 = vld [vmem:[#allocation2 + $0x68] sm:$0x7f] }
 0x25f   : > { %v5426_v19 = vpop.f32.mrf.mxu0 }
 0x260   : > { %3476 = vst.msk [vmem:[#allocation2 + $0x70] sm:$0x7f] %vm7681_vm4, %v3459_v3  ;;  %v4271_v3 = vrot.slane %v4230_v15, 5  ;;  %v4621_v19 = vrot.slane %v7278_v59, 6  ;;  %v4482_v15 = vsel %vm3539_vm1, %v4481_v12, %v4480_v4 }
 0x262   : > { %v3441_v61 = vpop.f32.mrf.mxu1  ;;  %v4272_v20 = vsel %vm3541_vm15, %v4271_v3, %v4270_v18  ;;  %v7389_v49 = vsub.f32 %v7181_v60, %v4621_v19  ;;  %v4483_v60 = vrot.slane %v4442_v63, 6 }
 0x263   : > { %v3460_v57 = vadd.f32 %v3441_v61, %v2128_v30  ;;  %v3555_v30 = vrot.slane %v7359_v11, 1  ;;  %v4622_v61 = vrot.slane %v7278_v59, 7  ;;  %v7401_v40 = vsel %vm3544_vm11, %v4273_v50, %v4272_v20 }
 0x264   : > { %v5437_v38 = vpop.f32.mrf.mxu1  ;;  %v7411_v13 = vsel %vm3541_vm15, %v4483_v60, %v4482_v15  ;;  %v4690_v52 = vrot.slane %v7389_v49, 2 }
 0x265   : > { %3477 = vst.msk [vmem:[#allocation2 + $0x78] sm:$0x7f] %vm7682_vm5, %v3460_v57  ;;  %v3556_v57 = vsel %vm3539_vm1, %v3555_v30, %v3554_v1  ;;  %v7407_v14 = vsub.f32 %v7184_v21, %v4622_v61 }
 0x267   : > { %v7378_v55 = vld [vmem:[#allocation2 + $0x70] sm:$0x7f] }
 0x268   : > { %v3557_v38 = vsel %vm3541_vm15, %v7378_v55, %v3556_v57 }
 0x26c   : > { %v7385_v9 = vld [vmem:[#allocation2 + $0x78] sm:$0x7f] }
 0x26d   : > { %v3558_v31 = vrot.slane %v7385_v9, 7 }
 0x26f   : > { %v3559_v2 = vsel %vm3544_vm11, %v3558_v31, %v3557_v38 }
 0x270   : > { %v3625_v22 = vmul.f32 %v7194_v62, %v3559_v2  ;;  %v3563_v45 = vmul.f32 %v3559_v2, %v7217_v28  ;;  %v7419_v35 = vmul.f32 %v7222_v46, %v3559_v2  ;;  %v7422_v42 = vmul.f32 %v7211_v34, %v3559_v2 }
 0x271   : > { %v7425_v21 = vmul.f32 %v7228_v16, %v3559_v2  ;;  %v7428_v19 = vmul.f32 %v7244_v7, %v3559_v2 }
 0x272   : > { %v3635_v62 = vrot.slane %v3625_v22, 7  ;;  %v3636_v3 = vrot.slane %v3625_v22, 1  ;;  %v3637_v51 = vrot.slane %v3625_v22, 2  ;;  %v3638_v44 = vrot.slane %v3625_v22, 3 }
 0x273   : > { %v3639_v41 = vrot.slane %v3625_v22, 4  ;;  %v3640_v18 = vrot.slane %v3625_v22, 5  ;;  %v3641_v33 = vrot.slane %v3625_v22, 6  ;;  %v3667_v16 = vsub.f32 %v7301_v8, %v3625_v22 }
 0x274   : > { %v3666_v28 = vsub.f32 %v7291_v6, %v3635_v62  ;;  %v3668_v46 = vsub.f32 %v7326_v37, %v3636_v3  ;;  %v3669_v34 = vsub.f32 %v7341_v53, %v3637_v51  ;;  %v3670_v29 = vsub.f32 %v7346_v39, %v3638_v44 }
 0x275   : > { %v3671_v48 = vsub.f32 %v7359_v11, %v3639_v41  ;;  %v3672_v30 = vsub.f32 %v7378_v55, %v3640_v18  ;;  %v3673_v58 = vsub.f32 %v7385_v9, %v3641_v33  ;;  %v3573_v32 = vrot.slane %v3563_v45, 1 }
 0x276   : > { %v3709_v24 = vrot.slane %v3666_v28, 1  ;;  %v3711_v1 = vrot.slane %v3668_v46, 7  ;;  %v3713_v7 = vrot.slane %v3669_v34, 6  ;;  %v3715_v63 = vrot.slane %v3670_v29, 5 }
 0x277   : > { %v3717_v4 = vrot.slane %v3671_v48, 4  ;;  %v3719_v20 = vrot.slane %v3672_v30, 3  ;;  %v3574_v12 = vrot.slane %v3563_v45, 2  ;;  %v3575_v47 = vrot.slane %v3563_v45, 3 }
 0x278   : > { %v3710_v61 = vsel %vm3527_vm14, %v3667_v16, %v3709_v24  ;;  %v3576_v50 = vrot.slane %v3563_v45, 4  ;;  %v3577_v43 = vrot.slane %v3563_v45, 5  ;;  %v3721_v31 = vrot.slane %v3673_v58, 2 }
 0x279   : > { %v3712_v57 = vsel %vm3530_vm12, %v3711_v1, %v3710_v61  ;;  %v3578_v15 = vrot.slane %v3563_v45, 6  ;;  %v3579_v36 = vrot.slane %v3563_v45, 7  ;;  %v3605_v60 = vsub.f32 %v7301_v8, %v3573_v32 }
 0x27a   : > { %v3714_v38 = vsel %vm3533_vm10, %v3713_v7, %v3712_v57  ;;  %v3606_v2 = vsub.f32 %v7326_v37, %v3574_v12  ;;  %v3607_v22 = vsub.f32 %v7341_v53, %v3575_v47  ;;  %v3608_v3 = vsub.f32 %v7346_v39, %v3576_v50 }
 0x27b   : > { %v3716_v62 = vsel %vm3536_vm7, %v3715_v63, %v3714_v38  ;;  %v3609_v51 = vsub.f32 %v7359_v11, %v3577_v43  ;;  %v3610_v44 = vsub.f32 %v7378_v55, %v3578_v15  ;;  %v3604_v18 = vsub.f32 %v7291_v6, %v3563_v45 }
 0x27c   : > { %v3718_v41 = vsel %vm3539_vm1, %v3717_v4, %v3716_v62  ;;  %v3855_v33 = vrot.slane %v3605_v60, 7  ;;  %v3857_v28 = vrot.slane %v3606_v2, 6  ;;  %v3611_v34 = vsub.f32 %v7385_v9, %v3579_v36 }
 0x27d   : > { %v3720_v46 = vsel %vm3541_vm15, %v3719_v20, %v3718_v41  ;;  %v3859_v29 = vrot.slane %v3607_v22, 5  ;;  %v3861_v16 = vrot.slane %v3608_v3, 4  ;;  %v3863_v58 = vrot.slane %v3609_v51, 3  ;;  %v3676_v41 = vld [vmem:[#allocation3 + $0x28] sm:$0xff] }
 0x27e   : > { %v3722_v48 = vsel %vm3544_vm11, %v3721_v31, %v3720_v46  ;;  %v3856_v30 = vsel %vm3527_vm14, %v3855_v33, %v3604_v18  ;;  %v3865_v24 = vrot.slane %v3610_v44, 2  ;;  %v3989_v45 = vrot.slane %v7419_v35, 6  ;;  %v3677_v46 = vld [vmem:[#allocation3 + $0x30] sm:$0xff] }
 0x27f   : > { %5438 = vmatprep.subr.msk.mxu0 %vm3723_vm3, %v3722_v48  ;;  %v3858_v1 = vsel %vm3530_vm12, %v3857_v28, %v3856_v30  ;;  %v3990_v7 = vrot.slane %v7419_v35, 7  ;;  %v3991_v32 = vrot.slane %v7419_v35, 1  ;;  %v3992_v4 = vrot.slane %v7419_v35, 2 }
 0x280   : > { %v3860_v63 = vsel %vm3533_vm10, %v3859_v29, %v3858_v1  ;;  %5439 = vmatpush3.xpose.msk.msra.mxu0 %vm3723_vm3, %v3722_v48  ;;  %v3993_v20 = vrot.slane %v7419_v35, 3  ;;  %v3994_v12 = vrot.slane %v7419_v35, 4  ;;  %v3995_v47 = vrot.slane %v7419_v35, 5 }
 0x281   : > { %v3862_v61 = vsel %vm3536_vm7, %v3861_v16, %v3860_v63  ;;  %5440 = vmatprep.subr.msk.mxu0 %vm3723_vm3, %v7282_v25  ;;  %v4020_v50 = vsub.f32 %v7291_v6, %v3989_v45  ;;  %v4021_v43 = vsub.f32 %v7301_v8, %v3990_v7  ;;  %v3867_v31 = vrot.slane %v3611_v34, 1  ;;  %v3678_v63 = vld [vmem:[#allocation3 + $0x38] sm:$0xff] }
 0x282   : > { %v3864_v57 = vsel %vm3539_vm1, %v3863_v58, %v3862_v61  ;;  %v4023_v15 = vsub.f32 %v7341_v53, %v3991_v32  ;;  %v4024_v36 = vsub.f32 %v7346_v39, %v3992_v4  ;;  %v4022_v60 = vsub.f32 %v7326_v37, %v7419_v35 }
 0x283   : > { %v3866_v38 = vsel %vm3541_vm15, %v3865_v24, %v3864_v57  ;;  %v4025_v2 = vsub.f32 %v7359_v11, %v3993_v20  ;;  %v4026_v22 = vsub.f32 %v7378_v55, %v3994_v12  ;;  %v4027_v3 = vsub.f32 %v7385_v9, %v3995_v47  ;;  %v4029_v47 = vld [vmem:[#allocation3 + $0x40] sm:$0xff] }
 0x284   : > { %v3868_v62 = vsel %vm3544_vm11, %v3867_v31, %v3866_v38  ;;  %5441 = vmatpush3.xpose.msk.msra.mxu0 %vm3723_vm3, %v7282_v25  ;;  %v4063_v51 = vrot.slane %v4020_v50, 2  ;;  %v4064_v44 = vrot.slane %v4021_v43, 1  ;;  %v4067_v18 = vrot.slane %v4023_v15, 7  ;;  %v3613_v15 = vld [vmem:[#allocation3 + $0x8] sm:$0xff] }
 0x285   : > { %5448 = vmatprep.subr.msk.mxu1 %vm3723_vm3, %v3868_v62  ;;  %v4069_v33 = vrot.slane %v4024_v36, 6  ;;  %v4071_v28 = vrot.slane %v4025_v2, 5  ;;  %v4073_v35 = vrot.slane %v4026_v22, 4  ;;  %v4201_v29 = vrot.slane %v7422_v42, 5  ;;  %v3614_v22 = vld [vmem:[#allocation3 + $0x10] sm:$0xff] }
 0x286   : > { %5449 = vmatpush3.xpose.msk.msra.mxu1 %vm3723_vm3, %v3868_v62  ;;  %v4065_v34 = vsel %vm3527_vm14, %v4064_v44, %v4063_v51  ;;  %v4202_v25 = vrot.slane %v7422_v42, 6  ;;  %v4203_v16 = vrot.slane %v7422_v42, 7  ;;  %v4204_v30 = vrot.slane %v7422_v42, 1 }
 0x287   : > { %5450 = vmatprep.subr.msk.mxu1 %vm3723_vm3, %v7329_v10  ;;  %v4066_v48 = vsel %vm3530_vm12, %v4022_v60, %v4065_v34  ;;  %v4205_v58 = vrot.slane %v7422_v42, 2  ;;  %v4206_v24 = vrot.slane %v7422_v42, 3  ;;  %5443 = vmatmul.mubr.msk.f32.vlgmr.msra.gmra.mxu0 %vm3723_vm3, %v3676_v41  ;;  %v4207_v45 = vrot.slane %v7422_v42, 4 }
 0x288   : > { %v4068_v1 = vsel %vm3533_vm10, %v4067_v18, %v4066_v48  ;;  %v4232_v7 = vsub.f32 %v7291_v6, %v4201_v29  ;;  %v4233_v32 = vsub.f32 %v7301_v8, %v4202_v25  ;;  %5445 = vmatprep.mubr.msk.f32.mxu0 %vm3723_vm3, %v3677_v46  ;;  %v4075_v20 = vrot.slane %v4027_v3, 3 }
 0x289   : > { %v4070_v4 = vsel %vm3536_vm7, %v4069_v33, %v4068_v1  ;;  %v4234_v12 = vsub.f32 %v7326_v37, %v4203_v16  ;;  %v4236_v61 = vsub.f32 %v7346_v39, %v4204_v30  ;;  %v4235_v43 = vsub.f32 %v7341_v53, %v7422_v42  ;;  %v4241_v30 = vld [vmem:[#allocation3 + $0x60] sm:$0xff] }
 0x28a   : > { %5451 = vmatpush3.xpose.msk.msra.mxu1 %vm3723_vm3, %v7329_v10  ;;  %v4072_v50 = vsel %vm3539_vm1, %v4071_v28, %v4070_v4  ;;  %v4237_v57 = vsub.f32 %v7359_v11, %v4205_v58  ;;  %v4238_v31 = vsub.f32 %v7378_v55, %v4206_v24  ;;  %v4275_v38 = vrot.slane %v4232_v7, 3  ;;  %v3615_v28 = vld [vmem:[#allocation3 + $0x18] sm:$0xff] }
 0x28b   : > { %v4074_v36 = vsel %vm3541_vm15, %v4073_v35, %v4072_v50  ;;  %v4276_v60 = vrot.slane %v4233_v32, 2  ;;  %v4278_v2 = vrot.slane %v4234_v12, 1  ;;  %5446 = vmatmul.mubr.msk.f32.gmra.mxu0 %vm3723_vm3, %v3678_v63  ;;  %v4239_v62 = vsub.f32 %v7385_v9, %v4207_v45  ;;  %v4030_v50 = vld [vmem:[#allocation3 + $0x48] sm:$0xff] }
 0x28c   : > { %v4076_v10 = vsel %vm3544_vm11, %v4075_v20, %v4074_v36  ;;  %v4281_v3 = vrot.slane %v4236_v61, 7  ;;  %v4283_v51 = vrot.slane %v4237_v57, 6  ;;  %5462 = vmatprep.mubr.msk.f32.mxu0 %vm3723_vm3, %v4029_v47  ;;  %v4285_v44 = vrot.slane %v4238_v31, 5 }
 0x28d   : > { %5458 = vmatprep.subr.msk.mxu0 %vm3723_vm3, %v4076_v10  ;;  %v4277_v42 = vsel %vm3527_vm14, %v4276_v60, %v4275_v38  ;;  %5453 = vmatmul.mubr.msk.f32.vlgmr.msra.gmra.mxu1 %vm3723_vm3, %v3613_v15  ;;  %v4413_v41 = vrot.slane %v7425_v21, 4  ;;  %v4414_v18 = vrot.slane %v7425_v21, 5  ;;  %v4415_v35 = vrot.slane %v7425_v21, 6 }
 0x28e   : > { %v4279_v33 = vsel %vm3530_vm12, %v4278_v2, %v4277_v42  ;;  %5459 = vmatpush3.xpose.msk.msra.mxu0 %vm3723_vm3, %v4076_v10  ;;  %5455 = vmatprep.mubr.msk.f32.mxu1 %vm3723_vm3, %v3614_v22  ;;  %v4416_v46 = vrot.slane %v7425_v21, 7  ;;  %v4417_v34 = vrot.slane %v7425_v21, 1  ;;  %v4418_v25 = vrot.slane %v7425_v21, 2 }
 0x28f   : > { %v4280_v29 = vsel %vm3533_vm10, %v4235_v43, %v4279_v33  ;;  %5460 = vmatprep.subr.msk.mxu0 %vm3723_vm3, %v7398_v54  ;;  %v4419_v16 = vrot.slane %v7425_v21, 3  ;;  %v4444_v48 = vsub.f32 %v7291_v6, %v4413_v41  ;;  %v4445_v24 = vsub.f32 %v7301_v8, %v4414_v18  ;;  %v4453_v33 = vld [vmem:[#allocation3 + $0x80] sm:$0xff] }
 0x290   : > { %v4282_v58 = vsel %vm3536_vm7, %v4281_v3, %v4280_v29  ;;  %v4446_v1 = vsub.f32 %v7326_v37, %v4415_v35  ;;  %v4447_v45 = vsub.f32 %v7341_v53, %v4416_v46  ;;  %v4287_v32 = vrot.slane %v4239_v62, 4 }
 0x291   : > { %v4284_v7 = vsel %vm3539_vm1, %v4283_v51, %v4282_v58  ;;  %5456 = vmatmul.mubr.msk.f32.gmra.mxu1 %vm3723_vm3, %v3615_v28  ;;  %v4449_v63 = vsub.f32 %v7359_v11, %v4417_v34  ;;  %v4691_v4 = vsel %vm3533_vm10, %v4690_v52, %v7414_v17  ;;  %v4450_v12 = vsub.f32 %v7378_v55, %v4418_v25  ;;  %v4031_v52 = vld [vmem:[#allocation3 + $0x50] sm:$0xff]  ;;  %v4032_v51 = vld [vmem:[#allocation3 + $0x58] sm:$0xff] }
 0x292   : > { %v4286_v20 = vsel %vm3541_vm15, %v4285_v44, %v4284_v7  ;;  %5461 = vmatpush3.xpose.msk.msra.mxu0 %vm3723_vm3, %v7398_v54  ;;  %v4487_v61 = vrot.slane %v4444_v48, 4  ;;  %v4488_v47 = vrot.slane %v4445_v24, 3  ;;  %5472 = vmatprep.mubr.msk.f32.mxu1 %vm3723_vm3, %v4241_v30  ;;  %v4448_v57 = vsub.f32 %v7346_v39, %v7425_v21 }
 0x293   : > { %v4288_v43 = vsel %vm3544_vm11, %v4287_v32, %v4286_v20  ;;  %v4451_v49 = vsub.f32 %v7385_v9, %v4419_v16  ;;  %v4490_v17 = vrot.slane %v4446_v1, 2  ;;  %v4492_v31 = vrot.slane %v4447_v45, 1  ;;  %v4242_v16 = vld [vmem:[#allocation3 + $0x68] sm:$0xff] }
 0x294   : > { %5468 = vmatprep.subr.msk.mxu1 %vm3723_vm3, %v4288_v43  ;;  %v4489_v54 = vsel %vm3527_vm14, %v4488_v47, %v4487_v61  ;;  %v4495_v15 = vrot.slane %v4449_v63, 7  ;;  %v4625_v36 = vrot.slane %v7428_v19, 3  ;;  %v4626_v60 = vrot.slane %v7428_v19, 4  ;;  %v4454_v61 = vld [vmem:[#allocation3 + $0x88] sm:$0xff] }
 0x295   : > { %5469 = vmatpush3.xpose.msk.msra.mxu1 %vm3723_vm3, %v4288_v43  ;;  %v4491_v38 = vsel %vm3530_vm12, %v4490_v17, %v4489_v54  ;;  %v4627_v21 = vrot.slane %v7428_v19, 5  ;;  %v4628_v2 = vrot.slane %v7428_v19, 6  ;;  %5463 = vmatmul.mubr.msk.f32.vlgmr.msra.gmra.mxu0 %vm3723_vm3, %v4030_v50  ;;  %v4497_v10 = vrot.slane %v4450_v12, 6  ;;  %v4667_v17 = vld [vmem:[#allocation3 + $0xb0] sm:$0xff] }
 0x296   : > { %5470 = vmatprep.subr.msk.mxu1 %vm3723_vm3, %v7401_v40  ;;  %v4493_v22 = vsel %vm3533_vm10, %v4492_v31, %v4491_v38  ;;  %v4629_v62 = vrot.slane %v7428_v19, 7  ;;  %v4630_v3 = vrot.slane %v7428_v19, 1  ;;  %5465 = vmatprep.mubr.msk.f32.mxu0 %vm3723_vm3, %v4031_v52  ;;  %v4656_v44 = vsub.f32 %v7291_v6, %v4625_v36  ;;  %v4668_v52 = vld [vmem:[#allocation3 + $0xb8] sm:$0xff] }
 0x297   : > { %v4494_v42 = vsel %vm3536_vm7, %v4448_v57, %v4493_v22  ;;  %v4657_v41 = vsub.f32 %v7301_v8, %v4626_v60  ;;  %v4658_v18 = vsub.f32 %v7326_v37, %v4627_v21  ;;  %v4499_v35 = vrot.slane %v4451_v49, 5  ;;  %v4456_v57 = vld [vmem:[#allocation3 + $0x98] sm:$0xff]  ;;  %v4666_v49 = vld [vmem:[#allocation3 + $0xa8] sm:$0xff] }
 0x298   : > { %v4496_v28 = vsel %vm3539_vm1, %v4495_v15, %v4494_v42  ;;  %v4631_v46 = vrot.slane %v7428_v19, 2  ;;  %v4659_v34 = vsub.f32 %v7341_v53, %v4628_v2  ;;  %v4660_v25 = vsub.f32 %v7346_v39, %v4629_v62  ;;  %v4243_v53 = vld [vmem:[#allocation3 + $0x70] sm:$0xff] }
 0x299   : > { %5471 = vmatpush3.xpose.msk.msra.mxu1 %vm3723_vm3, %v7401_v40  ;;  %v4498_v29 = vsel %vm3541_vm15, %v4497_v10, %v4496_v28  ;;  %v4699_v6 = vrot.slane %v4656_v44, 5  ;;  %v4692_v8 = vrot.slane %v7407_v14, 1  ;;  %5466 = vmatmul.mubr.msk.f32.gmra.mxu0 %vm3723_vm3, %v4032_v51  ;;  %v4700_v48 = vrot.slane %v4657_v41, 4 }
 0x29a   : > { %v4500_v37 = vsel %vm3544_vm11, %v4499_v35, %v4498_v29  ;;  %v4702_v30 = vrot.slane %v4658_v18, 3  ;;  %v4624_v58 = vrot.slane %v7278_v59, 2  ;;  %5482 = vmatprep.mubr.msk.f32.mxu0 %vm3723_vm3, %v4453_v33  ;;  %v4662_v40 = vsub.f32 %v7378_v55, %v4630_v3 }
 0x29b   : > { %5478 = vmatprep.subr.msk.mxu0 %vm3723_vm3, %v4500_v37  ;;  %v4653_v39 = vsub.f32 %v7188_v27, %v7278_v59  ;;  %v4654_v14 = vsub.f32 %v7199_v56, %v4623_v0  ;;  %v4693_v24 = vsel %vm3536_vm7, %v4692_v8, %v4691_v4  ;;  %v4663_v1 = vsub.f32 %v7385_v9, %v4631_v46  ;;  %v4244_v56 = vld [vmem:[#allocation3 + $0x78] sm:$0xff] }
 0x29c   : > { %v4701_v45 = vsel %vm3527_vm14, %v4700_v48, %v4699_v6  ;;  %v4704_v7 = vrot.slane %v4659_v34, 2  ;;  %5473 = vmatmul.mubr.msk.f32.vlgmr.msra.gmra.mxu1 %vm3723_vm3, %v4242_v16  ;;  %5479 = vmatpush3.xpose.msk.msra.mxu0 %vm3723_vm3, %v4500_v37  ;;  %v4486_v27 = vsel %vm3544_vm11, %v4485_v5, %v7411_v13  ;;  %v4706_v55 = vrot.slane %v4660_v25, 1 }
 0x29d   : > { %v4703_v59 = vsel %vm3530_vm12, %v4702_v30, %v4701_v45  ;;  %5480 = vmatprep.subr.msk.mxu0 %vm3723_vm3, %v4486_v27  ;;  %5475 = vmatprep.mubr.msk.f32.mxu1 %vm3723_vm3, %v4243_v53  ;;  %v4661_v9 = vsub.f32 %v7359_v11, %v7428_v19  ;;  %v4655_v32 = vsub.f32 %v7192_v23, %v4624_v58  ;;  %v4709_v13 = vrot.slane %v4662_v40, 7  ;;  %v4455_v23 = vld [vmem:[#allocation3 + $0x90] sm:$0xff] }
 0x29e   : > { %v4705_v0 = vsel %vm3533_vm10, %v4704_v7, %v4703_v59  ;;  %v4694_v63 = vsel %vm3539_vm1, %v4653_v39, %v4693_v24  ;;  %v4695_v4 = vrot.slane %v4654_v14, 7  ;;  %v4711_v12 = vrot.slane %v4663_v1, 6 }
 0x29f   : > { %v4707_v5 = vsel %vm3536_vm7, %v4706_v55, %v4705_v0  ;;  %v4697_v50 = vrot.slane %v4655_v32, 6 }
 0x2a0   : > { %v4708_v20 = vsel %vm3539_vm1, %v4661_v9, %v4707_v5  ;;  %5476 = vmatmul.mubr.msk.f32.gmra.mxu1 %vm3723_vm3, %v4244_v56  ;;  %5481 = vmatpush3.xpose.msk.msra.mxu0 %vm3723_vm3, %v4486_v27  ;;  %v4696_v19 = vsel %vm3541_vm15, %v4695_v4, %v4694_v63 }
 0x2a1   : > { %v4710_v11 = vsel %vm3541_vm15, %v4709_v13, %v4708_v20  ;;  %5492 = vmatprep.mubr.msk.f32.mxu1 %vm3723_vm3, %v4665_v26  ;;  %v4698_v43 = vsel %vm3544_vm11, %v4697_v50, %v4696_v19 }
 0x2a2   : > { %v4712_v47 = vsel %vm3544_vm11, %v4711_v12, %v4710_v11 }
 0x2a3   : > { %5488 = vmatprep.subr.msk.mxu1 %vm3723_vm3, %v4712_v47  ;;  %5483 = vmatmul.mubr.msk.f32.vlgmr.msra.gmra.mxu0 %vm3723_vm3, %v4454_v61 }
 0x2a4   : > { %5489 = vmatpush3.xpose.msk.msra.mxu1 %vm3723_vm3, %v4712_v47  ;;  %5485 = vmatprep.mubr.msk.f32.mxu0 %vm3723_vm3, %v4455_v23 }
 0x2a5   : > { %5490 = vmatprep.subr.msk.mxu1 %vm3723_vm3, %v4698_v43 }
 0x2a7   : > { %5486 = vmatmul.mubr.msk.f32.gmra.mxu0 %vm3723_vm3, %v4456_v57 }
 0x2a8   : > { %5491 = vmatpush3.xpose.msk.msra.mxu1 %vm3723_vm3, %v4698_v43 }
 0x2ab   : > { %5493 = vmatmul.mubr.msk.f32.vlgmr.msra.gmra.mxu1 %vm3723_vm3, %v4666_v49 }
 0x2ac   : > { %5495 = vmatprep.mubr.msk.f32.mxu1 %vm3723_vm3, %v4667_v17 }
 0x2af   : > { %5496 = vmatmul.mubr.msk.f32.gmra.mxu1 %vm3723_vm3, %v4668_v52 }
 0x347   : > { %v5444_v54 = vpop.f32.mrf.mxu0 }
 0x349   : > { %v3806_v31 = vpop.f32.mrf.mxu0 }
 0x34b   : > { %v5447_v36 = vpop.f32.mrf.mxu0 }
 0x34d   : > { %v5454_v15 = vpop.f32.mrf.mxu1  ;;  %v3816_v60 = vpop.f32.mrf.mxu0 }
 0x34e   : > { %v3957_v44 = vadd.f32 %v5454_v15, %v5444_v54 }
 0x34f   : > { %v3951_v38 = vpop.f32.mrf.mxu1 }
 0x350   : > { %v3952_v41 = vadd.f32 %v3951_v38, %v3806_v31 }
 0x351   : > { %v5457_v21 = vpop.f32.mrf.mxu1 }
 0x352   : > { %v3967_v35 = vadd.f32 %v5457_v21, %v5447_v36 }
 0x353   : > { %v3961_v10 = vpop.f32.mrf.mxu1 }
 0x354   : > { %v3962_v29 = vadd.f32 %v3961_v10, %v3816_v60 }
 0x355   : > { %v5464_v2 = vpop.f32.mrf.mxu0 }
 0x356   : > { %v4179_v18 = vadd.f32 %v5464_v2, %v3957_v44 }
 0x357   : > { %v4159_v22 = vpop.f32.mrf.mxu0 }
 0x358   : > { %v4178_v46 = vadd.f32 %v4159_v22, %v3952_v41 }
 0x359   : > { %v5467_v62 = vpop.f32.mrf.mxu0 }
 0x35a   : > { %v4181_v6 = vadd.f32 %v5467_v62, %v3967_v35 }
 0x35b   : > { %v4169_v42 = vpop.f32.mrf.mxu0 }
 0x35c   : > { %v5474_v3 = vpop.f32.mrf.mxu1  ;;  %v4180_v48 = vadd.f32 %v4169_v42, %v3962_v29 }
 0x35d   : > { %v4391_v25 = vadd.f32 %v5474_v3, %v4179_v18 }
 0x35e   : > { %v4371_v51 = vpop.f32.mrf.mxu1 }
 0x35f   : > { %v4390_v37 = vadd.f32 %v4371_v51, %v4178_v46 }
 0x360   : > { %v5477_v33 = vpop.f32.mrf.mxu1 }
 0x361   : > { %v4393_v58 = vadd.f32 %v5477_v33, %v4181_v6 }
 0x362   : > { %v4381_v16 = vpop.f32.mrf.mxu1 }
 0x363   : > { %v5484_v28 = vpop.f32.mrf.mxu0  ;;  %v4392_v14 = vadd.f32 %v4381_v16, %v4180_v48 }
 0x364   : > { %v4603_v30 = vadd.f32 %v5484_v28, %v4391_v25 }
 0x365   : > { %v4583_v34 = vpop.f32.mrf.mxu0 }
 0x366   : > { %v4602_v53 = vadd.f32 %v4583_v34, %v4390_v37 }
 0x367   : > { %v5487_v8 = vpop.f32.mrf.mxu0 }
 0x368   : > { %v4605_v1 = vadd.f32 %v5487_v8, %v4393_v58 }
 0x369   : > { %v4593_v39 = vpop.f32.mrf.mxu0 }
 0x36a   : > { %v4604_v27 = vadd.f32 %v4593_v39, %v4392_v14 }
 0x36b   : > { %v5494_v40 = vpop.f32.mrf.mxu1 }
 0x36c   : > { %v4815_v24 = vadd.f32 %v5494_v40, %v4603_v30 }
 0x36d   : > { %v4795_v45 = vpop.f32.mrf.mxu1 }
 0x36e   : > { %4819 = vst.msk [vmem:[%s500_s20 + $0x8] sm:$0xff] %vm2129_vm9, %v4815_v24  ;;  %v4814_v7 = vadd.f32 %v4795_v45, %v4602_v53 }
 0x36f   : > { %v5497_v59 = vpop.f32.mrf.mxu1 }
 0x370   : > { %4818 = vst.msk [vmem:[%s500_s20] sm:$0xff] %vm2129_vm9, %v4814_v7  ;;  %v4817_v55 = vadd.f32 %v5497_v59, %v4605_v1 }
 0x371   : > { %v4805_v56 = vpop.f32.mrf.mxu1 }
 0x372   : > { %4821 = vst.msk [vmem:[%s500_s20 + $0x18] sm:$0xff] %vm2129_vm9, %v4817_v55  ;;  %v4816_v9 = vadd.f32 %v4805_v56, %v4604_v27 }
 0x374   : > { %4820 = vst.msk [vmem:[%s500_s20 + $0x10] sm:$0xff] %vm2129_vm9, %v4816_v9 }
 0x375 PF: > { %s18_s26 = sadd.s32 1, %s5625_s26   ;;  %s7683_s24 = smov %s5621_s25 }
 0x376   : > { %p15_p2 = scmp.ge.s32.totalorder %s18_s26, 4   ;;  %s7684_s25 = smov %s7686_s28 }
 0x378   :  { %17 = sbr.rel (!%p15_p2) target bundleno = 2 (0x2), region = 111 }
 0x37d   :  { %4849 = vsyncpa [#allocation4], 1 }
 0x37e   :  { %4851 = vsyncpa [#allocation4 + $0x1], 1 }

</bundles_post_ra>
